<compile_context>
chip_gen: v7x
topology: tpu7x:2x2x1
jax: 0.10.0
libtpu: 0.0.40
codegen_flags: <defaults>
</compile_context>

<pallas_src>
import jax
import jax.numpy as jnp
from jax import lax
from jax.experimental import pallas as pl
from jax.experimental.pallas import tpu as pltpu


# ------------------------------- kernel --------------------------------------

def _make_bottleneck_kernel(cin, planes, pe, hs, ws, stride, nb, sc_conv,
                            out_dtype):
    """Fused Bottleneck kernel for Nb images (one grid point).

    x is pre-split host-side into S*S spatial phases (S = stride), image-major:
    the x block has shape (nb*S*S, hs, ws, cin) with hs = H//S, ws = W//S.
    """
    S = stride
    nph = S * S
    m = hs * ws           # output pixels per image
    M1 = nb * nph * m     # conv1 matmul rows (= nb * H * W)
    M2 = nb * m           # conv2/conv3/shortcut matmul rows
    pad = 2 if S == 1 else 1

    def kernel(*refs):
        if sc_conv:
            (x_ref, w1_ref, b1_ref, w2_ref, b2_ref, w3_ref, b3_ref,
             wsc_ref, bsc_ref, o_ref, pad_ref) = refs
        else:
            (x_ref, w1_ref, b1_ref, w2_ref, b2_ref, w3_ref, b3_ref,
             o_ref, pad_ref) = refs

        f32, bf16 = jnp.float32, jnp.bfloat16

        # Zero ONLY the halo; the interior is fully overwritten below.  Done
        # every step so each core's private scratch is always valid under
        # "parallel" megacore sharding of the batch axis.
        zrow = jnp.zeros((nph * nb, 1, ws + pad, planes), bf16)
        zcol = jnp.zeros((nph * nb, hs + pad, 1, planes), bf16)
        pad_ref[:, 0:1, :, :] = zrow
        pad_ref[:, :, 0:1, :] = zcol
        if pad == 2:
            pad_ref[:, hs + 1:hs + 2, :, :] = zrow
            pad_ref[:, :, ws + 1:ws + 2, :] = zcol

        # Hoisted weight / bias reads (avoid re-emitting load+broadcast in the
        # unrolled loops below).
        w1 = w1_ref[...]
        b1 = b1_ref[...]
        b2 = b2_ref[...]
        w3 = w3_ref[...]
        b3 = b3_ref[...]

        # conv1 (1x1) + folded BN1 + ReLU: ONE matmul over all images & phases.
        xall = x_ref[...]                                  # (nb*nph, hs, ws, cin) bf16
        o1 = jnp.dot(xall.reshape(M1, cin), w1, preferred_element_type=f32) + b1
        o1 = jnp.maximum(o1, 0.0).astype(bf16)
        o1 = o1.reshape(nb, nph * hs, ws, planes)          # rows ordered (b, ph, y)
        for ph in range(nph):                              # scatter into padded scratch
            pad_ref[ph * nb:(ph + 1) * nb, 1:1 + hs, 1:1 + ws, :] = (
                o1[:, ph * hs:(ph + 1) * hs])

        # conv2 (3x3, stride S) + folded BN2 + ReLU: 9 accumulated tap matmuls;
        # each tap is a contiguous window of one phase's padded bf16 scratch.
        acc = jnp.zeros((M2, planes), f32)
        for dy in range(3):
            for dx in range(3):
                if S == 1:
                    ph, ro, co = 0, dy, dx
                else:
                    ph = ((dy - 1) % S) * S + ((dx - 1) % S)
                    ro, co = (0 if dy == 0 else 1), (0 if dx == 0 else 1)
                win = pad_ref[ph * nb:(ph + 1) * nb, ro:ro + hs, co:co + ws, :]
                acc = acc + jnp.dot(win.reshape(M2, planes),
                                    w2_ref[3 * dy + dx],
                                    preferred_element_type=f32)
        o2 = jnp.maximum(acc + b2, 0.0).astype(bf16)

        # conv3 (1x1) + folded BN3.
        o3 = jnp.dot(o2, w3, preferred_element_type=f32) + b3

        # shortcut: 1x1 conv (stride S) + BN == matmul on spatial phase (0,0),
        # or identity (cin == pe, stride == 1).
        xsc = xall.reshape(nb, nph * hs, ws, cin)[:, 0:hs].reshape(M2, cin)
        if sc_conv:
            sc = jnp.dot(xsc, wsc_ref[...],
                         preferred_element_type=f32) + bsc_ref[...]
        else:
            sc = xsc.astype(f32)  # NOTE: identity residual adds bf16-rounded x

        o_ref[...] = (jnp.maximum(o3 + sc, 0.0)
                      .reshape(nb, m, pe).astype(out_dtype))

    return kernel


# --------------------------- VMEM sizing helpers -------------------------------

_VMEM_STEP_BUDGET = 24 << 20   # per-step working-set target (fits v7x 64 MiB VMEM)
_VMEM_LIMIT_BYTES = 48 << 20   # raise scoped-VMEM limit (v5e/v6e defaults 16/32 MiB)


def _vmem_step_bytes(nb, S, hs, ws, cin, planes, pe, pad, out_isz, w_bytes):
    """Rough per-grid-step VMEM estimate: double-buffered blocks + scratch + temps."""
    m, nph = hs * ws, S * S
    x_blk = nb * nph * m * cin * 2 * 2                      # bf16 input block x2 buffers
    o_blk = nb * m * pe * out_isz * 2                       # output block x2 buffers
    scr = nph * nb * (hs + pad) * (ws + pad) * planes * 2   # bf16 pad scratch
    tmp = (nb * nph * m * (cin * 2 + planes * 6)            # x2d copy + conv1 f32/bf16
           + nb * m * (planes * 6 + pe * 12))               # acc/o2/o3/sc/result
    return x_blk + o_blk + scr + 2 * w_bytes + tmp


def _pick_batch_block(N, S, hs, ws, cin, planes, pe, pad, out_isz, w_bytes):
    for nb in sorted((d for d in range(1, N + 1) if N % d == 0), reverse=True):
        if _vmem_step_bytes(nb, S, hs, ws, cin, planes, pe, pad,
                            out_isz, w_bytes) <= _VMEM_STEP_BUDGET:
            return nb
    return 1


# ------------------------------- wrapper --------------------------------------

def bottleneck_forward(x_nchw, params, *, stride, batch_block=None,
                       out_dtype=jnp.float32):
    """Fused Bottleneck forward. x: (N, Cin, H, W) f32 -> (N, 4*planes, Ho, Wo)."""
    N, Cin, H, W = x_nchw.shape
    planes = params['w1'].shape[1]
    pe = params['w3'].shape[1]
    sc_conv = 'wsc' in params
    S = int(stride)
    # ResNet Bottleneck only ever uses stride 1 or 2; the tap/phase mapping in
    # the kernel is derived (and validated) for exactly those.
    assert S in (1, 2), "stride must be 1 or 2"
    assert H % S == 0 and W % S == 0, "H and W must be divisible by the stride"
    hs, ws = H // S, W // S
    pad = 2 if S == 1 else 1

    # NCHW -> NHWC, cast to bf16 (half the HBM bytes), space-to-depth into S*S
    # spatial phases (image-major) so the strided 3x3 conv needs only
    # contiguous in-kernel slices.
    x = jnp.transpose(x_nchw, (0, 2, 3, 1)).astype(jnp.bfloat16)
    x = x.reshape(N, hs, S, ws, S, Cin).transpose(0, 2, 4, 1, 3, 5)
    x = x.reshape(N * S * S, hs, ws, Cin)

    bf, f32 = jnp.bfloat16, jnp.float32
    args = [
        x,
        params['w1'].astype(bf), params['b1'].reshape(1, planes).astype(f32),
        params['w2'].astype(bf), params['b2'].reshape(1, planes).astype(f32),
        params['w3'].astype(bf), params['b3'].reshape(1, pe).astype(f32),
    ]
    if sc_conv:
        args += [params['wsc'].astype(bf), params['bsc'].reshape(1, pe).astype(f32)]

    w_bytes = sum(int(a.size) * a.dtype.itemsize for a in args[1:])
    out_isz = jnp.dtype(out_dtype).itemsize
    if batch_block is None:
        Nb = _pick_batch_block(N, S, hs, ws, Cin, planes, pe, pad, out_isz, w_bytes)
    else:
        Nb = int(batch_block)
        assert N % Nb == 0, "batch_block must divide the batch size"

    def const_spec(shape):
        rank = len(shape)
        return pl.BlockSpec(shape, lambda n, _r=rank: (0,) * _r)

    in_specs = [pl.BlockSpec((Nb * S * S, hs, ws, Cin), lambda n: (n, 0, 0, 0))]
    in_specs += [const_spec(a.shape) for a in args[1:]]

    kernel = _make_bottleneck_kernel(Cin, planes, pe, hs, ws, S, Nb, sc_conv,
                                     out_dtype)

    out = pl.pallas_call(
        kernel,
        grid=(N // Nb,),
        in_specs=in_specs,
        out_specs=pl.BlockSpec((Nb, hs * ws, pe), lambda n: (n, 0, 0)),
        out_shape=jax.ShapeDtypeStruct((N, hs * ws, pe), out_dtype),
        scratch_shapes=[pltpu.VMEM((S * S * Nb, hs + pad, ws + pad, planes),
                                   jnp.bfloat16)],
        compiler_params=pltpu.CompilerParams(
            dimension_semantics=("parallel",),   # batch axis -> both v7x TCs
            vmem_limit_bytes=_VMEM_LIMIT_BYTES),
    )(*args)

    return out.reshape(N, hs, ws, pe).transpose(0, 3, 1, 2)  # back to NCHW


# ------------------------------- parameters -----------------------------------

def init_bottleneck_params(key, in_planes, planes, stride):
    """He-init conv weights with eval-mode BatchNorm folded in:
       w_eff = w * gamma*rsqrt(var+eps), b_eff = beta - mean*gamma*rsqrt(var+eps)."""
    expansion = 4
    pe = expansion * planes

    def conv_bn(k, cin, cout, ksz):
        kw, kg, kb, km, kv = jax.random.split(k, 5)
        w = jax.random.normal(kw, (ksz, ksz, cin, cout), jnp.float32)
        w = w * jnp.sqrt(2.0 / (ksz * ksz * cin))
        gamma = 1.0 + 0.1 * jax.random.normal(kg, (cout,), jnp.float32)
        beta = 0.1 * jax.random.normal(kb, (cout,), jnp.float32)
        mean = 0.1 * jax.random.normal(km, (cout,), jnp.float32)
        var = 1.0 + 0.1 * jax.random.uniform(kv, (cout,), jnp.float32)
        scale = gamma * lax.rsqrt(var + 1e-5)
        return w * scale, beta - mean * scale

    k1, k2, k3, k4 = jax.random.split(key, 4)
    w1, b1 = conv_bn(k1, in_planes, planes, 1)
    w2, b2 = conv_bn(k2, planes, planes, 3)
    w3, b3 = conv_bn(k3, planes, pe, 1)
    p = {
        'w1': w1.reshape(in_planes, planes), 'b1': b1,
        'w2': w2.reshape(9, planes, planes), 'b2': b2,   # taps ordered (dy*3 + dx)
        'w3': w3.reshape(planes, pe), 'b3': b3,
    }
    if stride != 1 or in_planes != pe:
        wsc, bsc = conv_bn(k4, in_planes, pe, 1)
        p['wsc'] = wsc.reshape(in_planes, pe)
        p['bsc'] = bsc
    return p


# ------------------------------- pure-JAX reference ----------------------------

def bottleneck_ref(x_nchw, p, stride):
    x = jnp.transpose(x_nchw, (0, 2, 3, 1)).astype(jnp.float32)
    planes = p['w1'].shape[1]
    o = jnp.maximum(jnp.einsum('nhwc,cd->nhwd', x, p['w1']) + p['b1'], 0.0)
    o = lax.conv_general_dilated(
        o, p['w2'].reshape(3, 3, planes, planes),
        window_strides=(stride, stride), padding=((1, 1), (1, 1)),
        dimension_numbers=('NHWC', 'HWIO', 'NHWC'))
    o = jnp.maximum(o + p['b2'], 0.0)
    o = jnp.einsum('nhwc,cd->nhwd', o, p['w3']) + p['b3']
    if 'wsc' in p:
        sc = jnp.einsum('nhwc,cd->nhwd', x[:, ::stride, ::stride, :], p['wsc']) + p['bsc']
    else:
        sc = x
    return jnp.transpose(jnp.maximum(o + sc, 0.0), (0, 3, 1, 2))


# ------------------------------- main ------------------------------------------

def _assert_close(name, y, ref):
    err = float(jnp.max(jnp.abs(y - ref)))
    scale = float(jnp.max(jnp.abs(ref)))
    assert err <= 0.05 * scale + 0.05, f"{name}: max_abs_err={err}, ref_scale={scale}"


if __name__ == "__main__":
    key = jax.random.PRNGKey(0)
    kx1, kx2, kp1, kp2 = jax.random.split(key, 4)

    fwd = jax.jit(bottleneck_forward, static_argnames=("stride", "batch_block"))

    # Case 1: downsampling Bottleneck (stride=2 -> 1x1-conv + BN shortcut).
    # Explicit batch_block=2 -> grid of 2 steps, 2 images fused per step.
    n, cin, h, w, planes, stride = 4, 32, 16, 16, 32, 2
    x1 = jax.random.normal(kx1, (n, cin, h, w), jnp.float32)
    p1 = init_bottleneck_params(kp1, cin, planes, stride)
    y1 = fwd(x1, p1, stride=stride, batch_block=2)
    jax.block_until_ready(y1)
    assert y1.shape == (n, 4 * planes, h // stride, w // stride), y1.shape
    assert bool(jnp.all(jnp.isfinite(y1)))
    _assert_close("stride2", y1, bottleneck_ref(x1, p1, stride))

    # Case 2: identity-shortcut Bottleneck (stride=1, in_planes == 4*planes).
    # Auto-chosen batch block (fits the whole mini-batch in one grid step).
    n2, cin2, planes2, stride2 = 2, 128, 32, 1
    x2 = jax.random.normal(kx2, (n2, cin2, h, w), jnp.float32)
    p2 = init_bottleneck_params(kp2, cin2, planes2, stride2)
    y2 = fwd(x2, p2, stride=stride2)
    jax.block_until_ready(y2)
    assert y2.shape == (n2, 4 * planes2, h, w), y2.shape
    assert bool(jnp.all(jnp.isfinite(y2)))
    _assert_close("identity", y2, bottleneck_ref(x2, p2, stride2))

    print("KERNEL_OK")
</pallas_src>

<mosaic_0001>
module attributes {stable_mosaic.version = 11 : i64} {
  func.func @kernel(%arg0: i32, %arg1: memref<8x8x8x32xbf16, #tpu.memory_space<vmem>>, %arg2: memref<32x32xbf16, #tpu.memory_space<vmem>>, %arg3: memref<1x32xf32, #tpu.memory_space<vmem>>, %arg4: memref<9x32x32xbf16, #tpu.memory_space<vmem>>, %arg5: memref<1x32xf32, #tpu.memory_space<vmem>>, %arg6: memref<32x128xbf16, #tpu.memory_space<vmem>>, %arg7: memref<1x128xf32, #tpu.memory_space<vmem>>, %arg8: memref<32x128xbf16, #tpu.memory_space<vmem>>, %arg9: memref<1x128xf32, #tpu.memory_space<vmem>>, %arg10: memref<2x64x128xf32, #tpu.memory_space<vmem>>, %arg11: memref<8x9x9x32xbf16, #tpu.memory_space<vmem>>) attributes {dimension_semantics = [#tpu.dimension_semantics<parallel>], iteration_bounds = array<i64: 2>, scalar_prefetch = 0 : i64, scratch_operands = 1 : i64, tpu.core_type = #tpu.core_type<tc>, window_params = [{transform_indices = @transform_0, window_bounds = array<i64: 8, 8, 8, 32>}, {pipeline_mode = #tpu.pipeline_mode<synchronous>, transform_indices = @transform_1, window_bounds = array<i64: 32, 32>}, {pipeline_mode = #tpu.pipeline_mode<synchronous>, transform_indices = @transform_2, window_bounds = array<i64: 1, 32>}, {pipeline_mode = #tpu.pipeline_mode<synchronous>, transform_indices = @transform_3, window_bounds = array<i64: 9, 32, 32>}, {pipeline_mode = #tpu.pipeline_mode<synchronous>, transform_indices = @transform_4, window_bounds = array<i64: 1, 32>}, {pipeline_mode = #tpu.pipeline_mode<synchronous>, transform_indices = @transform_5, window_bounds = array<i64: 32, 128>}, {pipeline_mode = #tpu.pipeline_mode<synchronous>, transform_indices = @transform_6, window_bounds = array<i64: 1, 128>}, {pipeline_mode = #tpu.pipeline_mode<synchronous>, transform_indices = @transform_7, window_bounds = array<i64: 32, 128>}, {pipeline_mode = #tpu.pipeline_mode<synchronous>, transform_indices = @transform_8, window_bounds = array<i64: 1, 128>}, {transform_indices = @transform_9, window_bounds = array<i64: 2, 64, 128>}]} {
    %cst = arith.constant 0.000000e+00 : bf16
    %0 = vector.broadcast %cst : bf16 to vector<8x1x9x32xbf16>
    %cst_0 = arith.constant 0.000000e+00 : bf16
    %1 = vector.broadcast %cst_0 : bf16 to vector<8x9x1x32xbf16>
    %c0 = arith.constant 0 : index
    %c0_1 = arith.constant 0 : index
    %c0_2 = arith.constant 0 : index
    %c0_3 = arith.constant 0 : index
    %2 = vector.load %arg11[%c0, %c0_1, %c0_2, %c0_3] : memref<8x9x9x32xbf16, #tpu.memory_space<vmem>>, vector<8x1x9x32xbf16>
    tpu.vector_store %arg11[%c0, %c0_1, %c0_2, %c0_3], %0 {strides = array<i32>} : memref<8x9x9x32xbf16, #tpu.memory_space<vmem>>, vector<8x1x9x32xbf16>,
    %c0_4 = arith.constant 0 : index
    %c0_5 = arith.constant 0 : index
    %c0_6 = arith.constant 0 : index
    %c0_7 = arith.constant 0 : index
    %3 = vector.load %arg11[%c0_4, %c0_5, %c0_6, %c0_7] : memref<8x9x9x32xbf16, #tpu.memory_space<vmem>>, vector<8x9x1x32xbf16>
    tpu.vector_store %arg11[%c0_4, %c0_5, %c0_6, %c0_7], %1 {strides = array<i32>} : memref<8x9x9x32xbf16, #tpu.memory_space<vmem>>, vector<8x9x1x32xbf16>,
    %c0_8 = arith.constant 0 : index
    %c0_9 = arith.constant 0 : index
    %4 = vector.load %arg2[%c0_8, %c0_9] : memref<32x32xbf16, #tpu.memory_space<vmem>>, vector<32x32xbf16>
    %c0_10 = arith.constant 0 : index
    %c0_11 = arith.constant 0 : index
    %5 = vector.load %arg3[%c0_10, %c0_11] : memref<1x32xf32, #tpu.memory_space<vmem>>, vector<1x32xf32>
    %c0_12 = arith.constant 0 : index
    %c0_13 = arith.constant 0 : index
    %6 = vector.load %arg5[%c0_12, %c0_13] : memref<1x32xf32, #tpu.memory_space<vmem>>, vector<1x32xf32>
    %c0_14 = arith.constant 0 : index
    %c0_15 = arith.constant 0 : index
    %7 = vector.load %arg6[%c0_14, %c0_15] : memref<32x128xbf16, #tpu.memory_space<vmem>>, vector<32x128xbf16>
    %c0_16 = arith.constant 0 : index
    %c0_17 = arith.constant 0 : index
    %8 = vector.load %arg7[%c0_16, %c0_17] : memref<1x128xf32, #tpu.memory_space<vmem>>, vector<1x128xf32>
    %c0_18 = arith.constant 0 : index
    %c0_19 = arith.constant 0 : index
    %c0_20 = arith.constant 0 : index
    %c0_21 = arith.constant 0 : index
    %9 = vector.load %arg1[%c0_18, %c0_19, %c0_20, %c0_21] : memref<8x8x8x32xbf16, #tpu.memory_space<vmem>>, vector<8x8x8x32xbf16>
    %10 = vector.shape_cast %9 : vector<8x8x8x32xbf16> to vector<512x32xbf16>
    %cst_22 = arith.constant dense<0.000000e+00> : vector<512x32xf32>
    %11 = tpu.matmul %10, %4, %cst_22 {dimension_numbers = #tpu.dot_dimension_numbers<[1], [0], [0], [1], [0, 0, 1, 1], [], []>} : vector<512x32xbf16>, vector<32x32xbf16>, vector<512x32xf32> -> vector<512x32xf32>
    %12 = vector.broadcast %5 : vector<1x32xf32> to vector<512x32xf32>
    %13 = arith.addf %11, %12 : vector<512x32xf32>
    %cst_23 = arith.constant 0.000000e+00 : f32
    %14 = vector.broadcast %cst_23 : f32 to vector<512x32xf32>
    %15 = arith.maximumf %13, %14 : vector<512x32xf32>
    %16 = arith.truncf %15 : vector<512x32xf32> to vector<512x32xbf16>
    %17 = vector.shape_cast %16 : vector<512x32xbf16> to vector<2x32x8x32xbf16>
    %18 = vector.extract_strided_slice %17 {offsets = [0, 0, 0, 0], sizes = [2, 8, 8, 32], strides = [1, 1, 1, 1]} : vector<2x32x8x32xbf16> to vector<2x8x8x32xbf16>
    %c0_24 = arith.constant 0 : index
    %c1 = arith.constant 1 : index
    %c1_25 = arith.constant 1 : index
    %c0_26 = arith.constant 0 : index
    %19 = vector.load %arg11[%c0_24, %c1, %c1_25, %c0_26] : memref<8x9x9x32xbf16, #tpu.memory_space<vmem>>, vector<2x8x8x32xbf16>
    tpu.vector_store %arg11[%c0_24, %c1, %c1_25, %c0_26], %18 {strides = array<i32>} : memref<8x9x9x32xbf16, #tpu.memory_space<vmem>>, vector<2x8x8x32xbf16>,
    %20 = vector.extract_strided_slice %17 {offsets = [0, 8, 0, 0], sizes = [2, 8, 8, 32], strides = [1, 1, 1, 1]} : vector<2x32x8x32xbf16> to vector<2x8x8x32xbf16>
    %c2 = arith.constant 2 : index
    %c1_27 = arith.constant 1 : index
    %c1_28 = arith.constant 1 : index
    %c0_29 = arith.constant 0 : index
    %21 = vector.load %arg11[%c2, %c1_27, %c1_28, %c0_29] : memref<8x9x9x32xbf16, #tpu.memory_space<vmem>>, vector<2x8x8x32xbf16>
    tpu.vector_store %arg11[%c2, %c1_27, %c1_28, %c0_29], %20 {strides = array<i32>} : memref<8x9x9x32xbf16, #tpu.memory_space<vmem>>, vector<2x8x8x32xbf16>,
    %22 = vector.extract_strided_slice %17 {offsets = [0, 16, 0, 0], sizes = [2, 8, 8, 32], strides = [1, 1, 1, 1]} : vector<2x32x8x32xbf16> to vector<2x8x8x32xbf16>
    %c4 = arith.constant 4 : index
    %c1_30 = arith.constant 1 : index
    %c1_31 = arith.constant 1 : index
    %c0_32 = arith.constant 0 : index
    %23 = vector.load %arg11[%c4, %c1_30, %c1_31, %c0_32] : memref<8x9x9x32xbf16, #tpu.memory_space<vmem>>, vector<2x8x8x32xbf16>
    tpu.vector_store %arg11[%c4, %c1_30, %c1_31, %c0_32], %22 {strides = array<i32>} : memref<8x9x9x32xbf16, #tpu.memory_space<vmem>>, vector<2x8x8x32xbf16>,
    %24 = vector.extract_strided_slice %17 {offsets = [0, 24, 0, 0], sizes = [2, 8, 8, 32], strides = [1, 1, 1, 1]} : vector<2x32x8x32xbf16> to vector<2x8x8x32xbf16>
    %c6 = arith.constant 6 : index
    %c1_33 = arith.constant 1 : index
    %c1_34 = arith.constant 1 : index
    %c0_35 = arith.constant 0 : index
    %25 = vector.load %arg11[%c6, %c1_33, %c1_34, %c0_35] : memref<8x9x9x32xbf16, #tpu.memory_space<vmem>>, vector<2x8x8x32xbf16>
    tpu.vector_store %arg11[%c6, %c1_33, %c1_34, %c0_35], %24 {strides = array<i32>} : memref<8x9x9x32xbf16, #tpu.memory_space<vmem>>, vector<2x8x8x32xbf16>,
    %cst_36 = arith.constant 0.000000e+00 : f32
    %26 = vector.broadcast %cst_36 : f32 to vector<128x32xf32>
    %c6_37 = arith.constant 6 : index
    %c0_38 = arith.constant 0 : index
    %c0_39 = arith.constant 0 : index
    %c0_40 = arith.constant 0 : index
    %27 = vector.load %arg11[%c6_37, %c0_38, %c0_39, %c0_40] : memref<8x9x9x32xbf16, #tpu.memory_space<vmem>>, vector<2x8x8x32xbf16>
    %28 = vector.shape_cast %27 : vector<2x8x8x32xbf16> to vector<128x32xbf16>
    %c0_41 = arith.constant 0 : index
    %c0_42 = arith.constant 0 : index
    %c0_43 = arith.constant 0 : index
    %29 = vector.load %arg4[%c0_41, %c0_42, %c0_43] : memref<9x32x32xbf16, #tpu.memory_space<vmem>>, vector<1x32x32xbf16>
    %30 = vector.shape_cast %29 : vector<1x32x32xbf16> to vector<32x32xbf16>
    %cst_44 = arith.constant dense<0.000000e+00> : vector<128x32xf32>
    %31 = tpu.matmul %28, %30, %cst_44 {dimension_numbers = #tpu.dot_dimension_numbers<[1], [0], [0], [1], [0, 0, 1, 1], [], []>} : vector<128x32xbf16>, vector<32x32xbf16>, vector<128x32xf32> -> vector<128x32xf32>
    %32 = arith.addf %26, %31 : vector<128x32xf32>
    %c4_45 = arith.constant 4 : index
    %c0_46 = arith.constant 0 : index
    %c1_47 = arith.constant 1 : index
    %c0_48 = arith.constant 0 : index
    %33 = vector.load %arg11[%c4_45, %c0_46, %c1_47, %c0_48] : memref<8x9x9x32xbf16, #tpu.memory_space<vmem>>, vector<2x8x8x32xbf16>
    %34 = vector.shape_cast %33 : vector<2x8x8x32xbf16> to vector<128x32xbf16>
    %c1_49 = arith.constant 1 : index
    %c0_50 = arith.constant 0 : index
    %c0_51 = arith.constant 0 : index
    %35 = vector.load %arg4[%c1_49, %c0_50, %c0_51] : memref<9x32x32xbf16, #tpu.memory_space<vmem>>, vector<1x32x32xbf16>
    %36 = vector.shape_cast %35 : vector<1x32x32xbf16> to vector<32x32xbf16>
    %cst_52 = arith.constant dense<0.000000e+00> : vector<128x32xf32>
    %37 = tpu.matmul %34, %36, %cst_52 {dimension_numbers = #tpu.dot_dimension_numbers<[1], [0], [0], [1], [0, 0, 1, 1], [], []>} : vector<128x32xbf16>, vector<32x32xbf16>, vector<128x32xf32> -> vector<128x32xf32>
    %38 = arith.addf %32, %37 : vector<128x32xf32>
    %c6_53 = arith.constant 6 : index
    %c0_54 = arith.constant 0 : index
    %c1_55 = arith.constant 1 : index
    %c0_56 = arith.constant 0 : index
    %39 = vector.load %arg11[%c6_53, %c0_54, %c1_55, %c0_56] : memref<8x9x9x32xbf16, #tpu.memory_space<vmem>>, vector<2x8x8x32xbf16>
    %40 = vector.shape_cast %39 : vector<2x8x8x32xbf16> to vector<128x32xbf16>
    %c2_57 = arith.constant 2 : index
    %c0_58 = arith.constant 0 : index
    %c0_59 = arith.constant 0 : index
    %41 = vector.load %arg4[%c2_57, %c0_58, %c0_59] : memref<9x32x32xbf16, #tpu.memory_space<vmem>>, vector<1x32x32xbf16>
    %42 = vector.shape_cast %41 : vector<1x32x32xbf16> to vector<32x32xbf16>
    %cst_60 = arith.constant dense<0.000000e+00> : vector<128x32xf32>
    %43 = tpu.matmul %40, %42, %cst_60 {dimension_numbers = #tpu.dot_dimension_numbers<[1], [0], [0], [1], [0, 0, 1, 1], [], []>} : vector<128x32xbf16>, vector<32x32xbf16>, vector<128x32xf32> -> vector<128x32xf32>
    %44 = arith.addf %38, %43 : vector<128x32xf32>
    %c2_61 = arith.constant 2 : index
    %c1_62 = arith.constant 1 : index
    %c0_63 = arith.constant 0 : index
    %c0_64 = arith.constant 0 : index
    %45 = vector.load %arg11[%c2_61, %c1_62, %c0_63, %c0_64] : memref<8x9x9x32xbf16, #tpu.memory_space<vmem>>, vector<2x8x8x32xbf16>
    %46 = vector.shape_cast %45 : vector<2x8x8x32xbf16> to vector<128x32xbf16>
    %c3 = arith.constant 3 : index
    %c0_65 = arith.constant 0 : index
    %c0_66 = arith.constant 0 : index
    %47 = vector.load %arg4[%c3, %c0_65, %c0_66] : memref<9x32x32xbf16, #tpu.memory_space<vmem>>, vector<1x32x32xbf16>
    %48 = vector.shape_cast %47 : vector<1x32x32xbf16> to vector<32x32xbf16>
    %cst_67 = arith.constant dense<0.000000e+00> : vector<128x32xf32>
    %49 = tpu.matmul %46, %48, %cst_67 {dimension_numbers = #tpu.dot_dimension_numbers<[1], [0], [0], [1], [0, 0, 1, 1], [], []>} : vector<128x32xbf16>, vector<32x32xbf16>, vector<128x32xf32> -> vector<128x32xf32>
    %50 = arith.addf %44, %49 : vector<128x32xf32>
    %c0_68 = arith.constant 0 : index
    %c1_69 = arith.constant 1 : index
    %c1_70 = arith.constant 1 : index
    %c0_71 = arith.constant 0 : index
    %51 = vector.load %arg11[%c0_68, %c1_69, %c1_70, %c0_71] : memref<8x9x9x32xbf16, #tpu.memory_space<vmem>>, vector<2x8x8x32xbf16>
    %52 = vector.shape_cast %51 : vector<2x8x8x32xbf16> to vector<128x32xbf16>
    %c4_72 = arith.constant 4 : index
    %c0_73 = arith.constant 0 : index
    %c0_74 = arith.constant 0 : index
    %53 = vector.load %arg4[%c4_72, %c0_73, %c0_74] : memref<9x32x32xbf16, #tpu.memory_space<vmem>>, vector<1x32x32xbf16>
    %54 = vector.shape_cast %53 : vector<1x32x32xbf16> to vector<32x32xbf16>
    %cst_75 = arith.constant dense<0.000000e+00> : vector<128x32xf32>
    %55 = tpu.matmul %52, %54, %cst_75 {dimension_numbers = #tpu.dot_dimension_numbers<[1], [0], [0], [1], [0, 0, 1, 1], [], []>} : vector<128x32xbf16>, vector<32x32xbf16>, vector<128x32xf32> -> vector<128x32xf32>
    %56 = arith.addf %50, %55 : vector<128x32xf32>
    %c2_76 = arith.constant 2 : index
    %c1_77 = arith.constant 1 : index
    %c1_78 = arith.constant 1 : index
    %c0_79 = arith.constant 0 : index
    %57 = vector.load %arg11[%c2_76, %c1_77, %c1_78, %c0_79] : memref<8x9x9x32xbf16, #tpu.memory_space<vmem>>, vector<2x8x8x32xbf16>
    %58 = vector.shape_cast %57 : vector<2x8x8x32xbf16> to vector<128x32xbf16>
    %c5 = arith.constant 5 : index
    %c0_80 = arith.constant 0 : index
    %c0_81 = arith.constant 0 : index
    %59 = vector.load %arg4[%c5, %c0_80, %c0_81] : memref<9x32x32xbf16, #tpu.memory_space<vmem>>, vector<1x32x32xbf16>
    %60 = vector.shape_cast %59 : vector<1x32x32xbf16> to vector<32x32xbf16>
    %cst_82 = arith.constant dense<0.000000e+00> : vector<128x32xf32>
    %61 = tpu.matmul %58, %60, %cst_82 {dimension_numbers = #tpu.dot_dimension_numbers<[1], [0], [0], [1], [0, 0, 1, 1], [], []>} : vector<128x32xbf16>, vector<32x32xbf16>, vector<128x32xf32> -> vector<128x32xf32>
    %62 = arith.addf %56, %61 : vector<128x32xf32>
    %c6_83 = arith.constant 6 : index
    %c1_84 = arith.constant 1 : index
    %c0_85 = arith.constant 0 : index
    %c0_86 = arith.constant 0 : index
    %63 = vector.load %arg11[%c6_83, %c1_84, %c0_85, %c0_86] : memref<8x9x9x32xbf16, #tpu.memory_space<vmem>>, vector<2x8x8x32xbf16>
    %64 = vector.shape_cast %63 : vector<2x8x8x32xbf16> to vector<128x32xbf16>
    %c6_87 = arith.constant 6 : index
    %c0_88 = arith.constant 0 : index
    %c0_89 = arith.constant 0 : index
    %65 = vector.load %arg4[%c6_87, %c0_88, %c0_89] : memref<9x32x32xbf16, #tpu.memory_space<vmem>>, vector<1x32x32xbf16>
    %66 = vector.shape_cast %65 : vector<1x32x32xbf16> to vector<32x32xbf16>
    %cst_90 = arith.constant dense<0.000000e+00> : vector<128x32xf32>
    %67 = tpu.matmul %64, %66, %cst_90 {dimension_numbers = #tpu.dot_dimension_numbers<[1], [0], [0], [1], [0, 0, 1, 1], [], []>} : vector<128x32xbf16>, vector<32x32xbf16>, vector<128x32xf32> -> vector<128x32xf32>
    %68 = arith.addf %62, %67 : vector<128x32xf32>
    %c4_91 = arith.constant 4 : index
    %c1_92 = arith.constant 1 : index
    %c1_93 = arith.constant 1 : index
    %c0_94 = arith.constant 0 : index
    %69 = vector.load %arg11[%c4_91, %c1_92, %c1_93, %c0_94] : memref<8x9x9x32xbf16, #tpu.memory_space<vmem>>, vector<2x8x8x32xbf16>
    %70 = vector.shape_cast %69 : vector<2x8x8x32xbf16> to vector<128x32xbf16>
    %c7 = arith.constant 7 : index
    %c0_95 = arith.constant 0 : index
    %c0_96 = arith.constant 0 : index
    %71 = vector.load %arg4[%c7, %c0_95, %c0_96] : memref<9x32x32xbf16, #tpu.memory_space<vmem>>, vector<1x32x32xbf16>
    %72 = vector.shape_cast %71 : vector<1x32x32xbf16> to vector<32x32xbf16>
    %cst_97 = arith.constant dense<0.000000e+00> : vector<128x32xf32>
    %73 = tpu.matmul %70, %72, %cst_97 {dimension_numbers = #tpu.dot_dimension_numbers<[1], [0], [0], [1], [0, 0, 1, 1], [], []>} : vector<128x32xbf16>, vector<32x32xbf16>, vector<128x32xf32> -> vector<128x32xf32>
    %74 = arith.addf %68, %73 : vector<128x32xf32>
    %c6_98 = arith.constant 6 : index
    %c1_99 = arith.constant 1 : index
    %c1_100 = arith.constant 1 : index
    %c0_101 = arith.constant 0 : index
    %75 = vector.load %arg11[%c6_98, %c1_99, %c1_100, %c0_101] : memref<8x9x9x32xbf16, #tpu.memory_space<vmem>>, vector<2x8x8x32xbf16>
    %76 = vector.shape_cast %75 : vector<2x8x8x32xbf16> to vector<128x32xbf16>
    %c8 = arith.constant 8 : index
    %c0_102 = arith.constant 0 : index
    %c0_103 = arith.constant 0 : index
    %77 = vector.load %arg4[%c8, %c0_102, %c0_103] : memref<9x32x32xbf16, #tpu.memory_space<vmem>>, vector<1x32x32xbf16>
    %78 = vector.shape_cast %77 : vector<1x32x32xbf16> to vector<32x32xbf16>
    %cst_104 = arith.constant dense<0.000000e+00> : vector<128x32xf32>
    %79 = tpu.matmul %76, %78, %cst_104 {dimension_numbers = #tpu.dot_dimension_numbers<[1], [0], [0], [1], [0, 0, 1, 1], [], []>} : vector<128x32xbf16>, vector<32x32xbf16>, vector<128x32xf32> -> vector<128x32xf32>
    %80 = arith.addf %74, %79 : vector<128x32xf32>
    %81 = vector.broadcast %6 : vector<1x32xf32> to vector<128x32xf32>
    %82 = arith.addf %80, %81 : vector<128x32xf32>
    %cst_105 = arith.constant 0.000000e+00 : f32
    %83 = vector.broadcast %cst_105 : f32 to vector<128x32xf32>
    %84 = arith.maximumf %82, %83 : vector<128x32xf32>
    %85 = arith.truncf %84 : vector<128x32xf32> to vector<128x32xbf16>
    %cst_106 = arith.constant dense<0.000000e+00> : vector<128x128xf32>
    %86 = tpu.matmul %85, %7, %cst_106 {dimension_numbers = #tpu.dot_dimension_numbers<[1], [0], [0], [1], [0, 0, 1, 1], [], []>} : vector<128x32xbf16>, vector<32x128xbf16>, vector<128x128xf32> -> vector<128x128xf32>
    %87 = vector.broadcast %8 : vector<1x128xf32> to vector<128x128xf32>
    %88 = arith.addf %86, %87 : vector<128x128xf32>
    %89 = vector.shape_cast %9 : vector<8x8x8x32xbf16> to vector<2x32x8x32xbf16>
    %90 = vector.extract_strided_slice %89 {offsets = [0, 0, 0, 0], sizes = [2, 8, 8, 32], strides = [1, 1, 1, 1]} : vector<2x32x8x32xbf16> to vector<2x8x8x32xbf16>
    %91 = vector.shape_cast %90 : vector<2x8x8x32xbf16> to vector<128x32xbf16>
    %c0_107 = arith.constant 0 : index
    %c0_108 = arith.constant 0 : index
    %92 = vector.load %arg8[%c0_107, %c0_108] : memref<32x128xbf16, #tpu.memory_space<vmem>>, vector<32x128xbf16>
    %cst_109 = arith.constant dense<0.000000e+00> : vector<128x128xf32>
    %93 = tpu.matmul %91, %92, %cst_109 {dimension_numbers = #tpu.dot_dimension_numbers<[1], [0], [0], [1], [0, 0, 1, 1], [], []>} : vector<128x32xbf16>, vector<32x128xbf16>, vector<128x128xf32> -> vector<128x128xf32>
    %c0_110 = arith.constant 0 : index
    %c0_111 = arith.constant 0 : index
    %94 = vector.load %arg9[%c0_110, %c0_111] : memref<1x128xf32, #tpu.memory_space<vmem>>, vector<1x128xf32>
    %95 = vector.broadcast %94 : vector<1x128xf32> to vector<128x128xf32>
    %96 = arith.addf %93, %95 : vector<128x128xf32>
    %97 = arith.addf %88, %96 : vector<128x128xf32>
    %cst_112 = arith.constant 0.000000e+00 : f32
    %98 = vector.broadcast %cst_112 : f32 to vector<128x128xf32>
    %99 = arith.maximumf %97, %98 : vector<128x128xf32>
    %100 = vector.shape_cast %99 : vector<128x128xf32> to vector<2x64x128xf32>
    %c0_113 = arith.constant 0 : index
    %c0_114 = arith.constant 0 : index
    %c0_115 = arith.constant 0 : index
    %101 = vector.load %arg10[%c0_113, %c0_114, %c0_115] : memref<2x64x128xf32, #tpu.memory_space<vmem>>, vector<2x64x128xf32>
    tpu.vector_store %arg10[%c0_113, %c0_114, %c0_115], %100 {strides = array<i32>} : memref<2x64x128xf32, #tpu.memory_space<vmem>>, vector<2x64x128xf32>,
    return
  }
  func.func @transform_0(%arg0: i32) -> (i32, i32, i32, i32) {
    %c0_i32 = arith.constant 0 : i32
    %c0_i32_0 = arith.constant 0 : i32
    %c0_i32_1 = arith.constant 0 : i32
    %c0_i32_2 = arith.constant 0 : i32
    return %arg0, %c0_i32, %c0_i32_0, %c0_i32_1 : i32, i32, i32, i32
  }
  func.func @transform_1(%arg0: i32) -> (i32, i32) {
    %c0_i32 = arith.constant 0 : i32
    %c0_i32_0 = arith.constant 0 : i32
    %c0_i32_1 = arith.constant 0 : i32
    return %c0_i32, %c0_i32_0 : i32, i32
  }
  func.func @transform_2(%arg0: i32) -> (i32, i32) {
    %c0_i32 = arith.constant 0 : i32
    %c0_i32_0 = arith.constant 0 : i32
    %c0_i32_1 = arith.constant 0 : i32
    return %c0_i32, %c0_i32_0 : i32, i32
  }
  func.func @transform_3(%arg0: i32) -> (i32, i32, i32) {
    %c0_i32 = arith.constant 0 : i32
    %c0_i32_0 = arith.constant 0 : i32
    %c0_i32_1 = arith.constant 0 : i32
    %c0_i32_2 = arith.constant 0 : i32
    return %c0_i32, %c0_i32_0, %c0_i32_1 : i32, i32, i32
  }
  func.func @transform_4(%arg0: i32) -> (i32, i32) {
    %c0_i32 = arith.constant 0 : i32
    %c0_i32_0 = arith.constant 0 : i32
    %c0_i32_1 = arith.constant 0 : i32
    return %c0_i32, %c0_i32_0 : i32, i32
  }
  func.func @transform_5(%arg0: i32) -> (i32, i32) {
    %c0_i32 = arith.constant 0 : i32
    %c0_i32_0 = arith.constant 0 : i32
    %c0_i32_1 = arith.constant 0 : i32
    return %c0_i32, %c0_i32_0 : i32, i32
  }
  func.func @transform_6(%arg0: i32) -> (i32, i32) {
    %c0_i32 = arith.constant 0 : i32
    %c0_i32_0 = arith.constant 0 : i32
    %c0_i32_1 = arith.constant 0 : i32
    return %c0_i32, %c0_i32_0 : i32, i32
  }
  func.func @transform_7(%arg0: i32) -> (i32, i32) {
    %c0_i32 = arith.constant 0 : i32
    %c0_i32_0 = arith.constant 0 : i32
    %c0_i32_1 = arith.constant 0 : i32
    return %c0_i32, %c0_i32_0 : i32, i32
  }
  func.func @transform_8(%arg0: i32) -> (i32, i32) {
    %c0_i32 = arith.constant 0 : i32
    %c0_i32_0 = arith.constant 0 : i32
    %c0_i32_1 = arith.constant 0 : i32
    return %c0_i32, %c0_i32_0 : i32, i32
  }
  func.func @transform_9(%arg0: i32) -> (i32, i32, i32) {
    %c0_i32 = arith.constant 0 : i32
    %c0_i32_0 = arith.constant 0 : i32
    %c0_i32_1 = arith.constant 0 : i32
    return %arg0, %c0_i32, %c0_i32_0 : i32, i32, i32
  }
}

</mosaic_0001>

<bundles_post_ra>
// kernel: bottleneck_forward.1
= control target key start
LH: loop header
LB: loop body
LE: loop exit
PB: predicated region body
PF: predicated region fallthrough
CT: control target
= control target key end

     0   :  { %14 = vsyncpa [#allocation4], 0  ;;  %s8786_s0 = inlined_call_operand.vmem [shape: bf16[16,8,8,32], index: 0, kind: input, shape index: {}]   ;;  %s8787_s1 = inlined_call_operand.vmem [shape: bf16[32,32], index: 1, kind: input, shape index: {}]   ;;  %s8788_s2 = inlined_call_operand.vmem [shape: f32[1,32], index: 2, kind: input, shape index: {}]   ;;  %s8789_s3 = inlined_call_operand.vmem [shape: bf16[9,32,32], index: 3, kind: input, shape index: {}]   ;;  %s8790_s4 = inlined_call_operand.vmem [shape: f32[1,32], index: 4, kind: input, shape index: {}]   ;;  %s8791_s5 = inlined_call_operand.vmem [shape: bf16[32,128], index: 5, kind: input, shape index: {}]   ;;  %s8792_s6 = inlined_call_operand.vmem [shape: f32[1,128], index: 6, kind: input, shape index: {}]   ;;  %s8793_s7 = inlined_call_operand.vmem [shape: bf16[32,128], index: 7, kind: input, shape index: {}]   ;;  %s8794_s8 = inlined_call_operand.vmem [shape: f32[1,128], index: 8, kind: input, shape index: {}]   ;;  %s8795_s9 = inlined_call_operand.hbm [shape: f32[4,64,128], index: 9, kind: output, shape index: {}]  }
   0x1   :  { %16 = vsyncpa [#allocation4 + $0x1], 0  ;;  %s7444_s30 = smov 0   ;;  %s7446_s10 = smov 0  }
   0x2   :  { %s7448_s11 = smov 0   ;;  %s7450_s12 = smov 0  }
   0x3 LB: > { %s7465_s13 = sadd.s32 4294967295, %s7388_s12   ;;  %s6152_s14 = sadd.s32 4294967294, %s7388_s12   ;;  %s7388_s12 = sphi %s7450_s12, %s8807_s12   ;;  %s7384_s11 = sphi %s7448_s11, %s8806_s11   ;;  %s7380_s10 = sphi %s7446_s10, %s8805_s10   ;;  %s7376_s30 = sphi %s7444_s30, %s8804_s30  }
   0x4   : > { %s7469_s15 = sadd.s32 1, %s7388_s12   ;;  %s223_s16 = sadd.s32 1, %s7384_s11 }
   0x5   : > { %s220_s17 = ssub.s32 %s7388_s12, %s7469_s15  ;;  %p233_p0 = scmp.ne.s32.totalorder %s7384_s11, %s7380_s10 }
   0x6   : > { %p221_p1 = scmp.eq.s32.totalorder %s220_s17, 0  ;;  %p234_p2 = scmp.eq.s32.totalorder %s7465_s13, 1 }
   0x7   : > { %p239_p3 = scmp.ne.s32.totalorder %s7380_s10, %s7376_s30  ;;  %p240_p4 = scmp.eq.s32.totalorder %s6152_s14, 1 }
   0x8   : > { %s7480_s18 = scalar_select %p221_p1, %s7384_s11, %s223_s16  }
   0x9   : > { %p7482_p5 = por %p234_p2, %p233_p0  ;;  %p7486_p6 = por %p240_p4, %p239_p3 }
   0xa   : > { %p6155_p7 = scmp.ge.s32.totalorder %s7388_s12, 1  ;;  %p292_p8 = scmp.lt.s32.totalorder %s7388_s12, 3 }
   0xc   : > { %p293_p9 = pnand %p6155_p7, %p292_p8 }
   0xd   : > { %v343_v0 = vld [vmem:[#allocation2 + $0x4] sm:$0x1] (!%p293_p9)  ;;  %v347_v1 = vld [vmem:[#allocation2 + $0x4c] sm:$0x1] (!%p293_p9)  ;;  %v351_v2 = vld [vmem:[#allocation2 + $0x94] sm:$0x1] (!%p293_p9) }
   0xe   : > { %296 = sbr.rel (%p293_p9) target bundleno = 1183 (0x49f), region = 56  ;;  %v7235_v3 = vld [vmem:[%s8787_s1] sm:$0xff] (!%p293_p9)   ;;  %s6157_s23 = sshll.u32 (!%p293_p9), %s7465_s13, 3  ;;  %v355_v4 = vld [vmem:[#allocation2 + $0xdc] sm:$0x1] (!%p293_p9)  ;;  %v7236_v5 = vld [vmem:[%s8787_s1 + $0x8] sm:$0xff] (!%p293_p9)  }
   0xf   : > { %p330_p10 = scmp.lt.s32.totalorder (!%p293_p9), %s6157_s23, 15  ;;  %6725 = vmatprep.subr.bf16.mxu0 (!%p293_p9), %v7235_v3  ;;  %vm340_vm0 = vcmask (!%p293_p9), 253952   ;;  %vm341_vm1 = vsmask.f32 (!%p293_p9), 256  ;;  %v383_v6 = vld [vmem:[#allocation2 + $0x18] sm:$0x1] (!%p293_p9) }
  0x10   : > { %6726 = vmatpush3.bf16.msra.mxu0 (!%p293_p9), %v7235_v3  ;;  %vm843_vm2 = vcmask (!%p293_p9), 261120   ;;  %vm7499_vm3 = vmand (!%p293_p9), %vm340_vm0, %vm341_vm1  ;;  %v377_v38 = vld [vmem:[#allocation2 + $0x8] sm:$0x1] (!%p293_p9)  ;;  %v386_v40 = vld [vmem:[#allocation2 + $0x20] sm:$0x1] (!%p293_p9)  ;;  %vm338_vm4 = vcmask (!%p293_p9), 257024  }
  0x11   : > { %6727 = vmatprep.subr.bf16.mxu0 (!%p293_p9), %v7236_v5  ;;  %v344_v8 = vsel (!%p293_p9), %vm7499_vm3, 0, %v343_v0  ;;  %v348_v9 = vsel (!%p293_p9), %vm7499_vm3, 0, %v347_v1  ;;  %v352_v10 = vsel (!%p293_p9), %vm7499_vm3, 0, %v351_v2  ;;  %v356_v11 = vsel (!%p293_p9), %vm7499_vm3, 0, %v355_v4  ;;  %v380_v42 = vld [vmem:[#allocation2 + $0x10] sm:$0x1] (!%p293_p9) }
  0x12   : > { %345 = vst [vmem:[#allocation2 + $0x4] sm:$0x1] (!%p293_p9), %v344_v8  ;;  %349 = vst [vmem:[#allocation2 + $0x4c] sm:$0x1] (!%p293_p9), %v348_v9  ;;  %v384_v12 = vsel (!%p293_p9), %vm7499_vm3, 0, %v383_v6  ;;  %v378_v39 = vsel (!%p293_p9), %vm7499_vm3, 0, %v377_v38 }
  0x13   : > { %353 = vst [vmem:[#allocation2 + $0x94] sm:$0x1] (!%p293_p9), %v352_v10  ;;  %357 = vst [vmem:[#allocation2 + $0xdc] sm:$0x1] (!%p293_p9), %v356_v11  ;;  %v387_v41 = vsel (!%p293_p9), %vm7499_vm3, 0, %v386_v40  ;;  %v381_v43 = vsel (!%p293_p9), %vm7499_vm3, 0, %v380_v42 }
  0x14   : > { %385 = vst [vmem:[#allocation2 + $0x18] sm:$0x1] (!%p293_p9), %v384_v12  ;;  %6728 = vmatpush3.bf16.msra.mxu0 (!%p293_p9), %v7236_v5  ;;  %379 = vst [vmem:[#allocation2 + $0x8] sm:$0x1] (!%p293_p9), %v378_v39  ;;  %v395_v46 = vld [vmem:[#allocation2 + $0x38] sm:$0x1] (!%p293_p9) }
  0x15   : > { %s8809_s23 = smov (!%p330_p10, %s6157_s23), 15  ;;  %388 = vst [vmem:[#allocation2 + $0x20] sm:$0x1] %v387_v41  ;;  %382 = vst [vmem:[#allocation2 + $0x10] sm:$0x1] %v381_v43  ;;  %v396_v47 = vsel %vm7499_vm3, 0, %v395_v46 }
  0x16   : > { %s6514_s26 = sshll.u32 %s8809_s23, 5  ;;  %397 = vst [vmem:[#allocation2 + $0x38] sm:$0x1] %v396_v47  ;;  %v389_v48 = vld [vmem:[#allocation2 + $0x28] sm:$0x1]  ;;  %s326_s21 = sand.u32 1, %s7380_s10  }
  0x17   : > { %s7516_s29 = scalar_lea.vmem %s8786_s0, %s6514_s26  ;;  %v390_v49 = vsel %vm7499_vm3, 0, %v389_v48  ;;  %v398_v50 = vld [vmem:[#allocation2 + $0x40] sm:$0x1]  ;;  %v392_v54 = vld [vmem:[#allocation2 + $0x30] sm:$0x1]  ;;  %s6156_s22 = sshll.u32 %s326_s21, 7 }
  0x18   : > { %v7237_v13 = vld [vmem:[%s7516_s29] sm:$0xff]   ;;  %v7238_v14 = vld [vmem:[%s7516_s29 + $0x8] sm:$0xff]   ;;  %v7239_v15 = vld [vmem:[%s7516_s29 + $0x10] sm:$0xff]   ;;  %391 = vst [vmem:[#allocation2 + $0x28] sm:$0x1] %v390_v49  ;;  %v399_v52 = vsel %vm7499_vm3, 0, %v398_v50 }
  0x19   : > { %6729 = vmatprep.mubr.msk.bf16.mxu0 %vm843_vm2, %v7237_v13  ;;  %v7240_v16 = vld [vmem:[%s7516_s29 + $0x18] sm:$0xff]   ;;  %v7241_v17 = vld [vmem:[%s7516_s29 + $0x20] sm:$0xff]   ;;  %v7242_v18 = vld [vmem:[%s7516_s29 + $0x28] sm:$0xff]   ;;  %400 = vst [vmem:[#allocation2 + $0x40] sm:$0x1] %v399_v52  ;;  %v393_v55 = vsel %vm7499_vm3, 0, %v392_v54 }
  0x1a   : > { %6730 = vmatmul.mubr.msk.bf16.vlgmr.msra.gmra.mrb[0].mxu0 %vm843_vm2, %v7238_v14  ;;  %v7243_v19 = vld [vmem:[%s7516_s29 + $0x30] sm:$0xff]   ;;  %v7244_v20 = vld [vmem:[%s7516_s29 + $0x38] sm:$0xff]   ;;  %v7245_v21 = vld [vmem:[%s7516_s29 + $0x40] sm:$0xff]   ;;  %394 = vst [vmem:[#allocation2 + $0x30] sm:$0x1] %v393_v55  ;;  %s6580_s23 = sshll.u32 %s7465_s13, 11 }
  0x1b   : > { %6733 = vmatprep.mubr.msk.bf16.mxu0 %vm843_vm2, %v7239_v15  ;;  %v7246_v22 = vld [vmem:[%s7516_s29 + $0x48] sm:$0xff]   ;;  %v7247_v23 = vld [vmem:[%s7516_s29 + $0x50] sm:$0xff]   ;;  %v7248_v24 = vld [vmem:[%s7516_s29 + $0x58] sm:$0xff]   ;;  %vm2570_vm5 = vsmask.f32 3328  ;;  %s8736_s27 = scalar_lea.hbm %s8795_s9, %s6580_s23  ;;  %s8745_s13 = scalar_lea.sflag [#allocation4], %s326_s21 }
  0x1c   : > { %v7249_v25 = vld [vmem:[%s7516_s29 + $0x60] sm:$0xff]   ;;  %v7250_v26 = vld [vmem:[%s7516_s29 + $0x68] sm:$0xff]   ;;  %v7251_v27 = vld [vmem:[%s7516_s29 + $0x70] sm:$0xff]   ;;  %vm2571_vm6 = vsmask.f32 7440  ;;  %s7391_s14 = smov [#allocation3]  }
  0x1d   : > { %v7252_v28 = vld [vmem:[%s7516_s29 + $0x78] sm:$0xff]   ;;  %v7253_v29 = vld [vmem:[%s7516_s29 + $0x80] sm:$0xff]   ;;  %v7254_v30 = vld [vmem:[%s7516_s29 + $0x88] sm:$0xff]   ;;  %vm1647_vm7 = vsmask.f32 7938  ;;  %s7330_s16 = sshll.u32 %s7391_s14, 4  ;;  %s7331_s16 = int_to_ptr.vmem [resolvable:$false] %s7330_s16 }
  0x1e   : > { %v7255_v31 = vld [vmem:[%s7516_s29 + $0x90] sm:$0xff]   ;;  %v7256_v32 = vld [vmem:[%s7516_s29 + $0x98] sm:$0xff]   ;;  %v7257_v33 = vld [vmem:[%s7516_s29 + $0xa0] sm:$0xff]   ;;  %s7332_s17 = scalar_lea.vmem %s7331_s16, 4096 }
  0x1f   : > { %v7258_v34 = vld [vmem:[%s7516_s29 + $0xa8] sm:$0xff]   ;;  %v7259_v35 = vld [vmem:[%s7516_s29 + $0xb0] sm:$0xff]   ;;  %v7260_v36 = vld [vmem:[%s7516_s29 + $0xb8] sm:$0xff]  }
  0x20   : > { %v7261_v37 = vld [vmem:[%s7516_s29 + $0xc0] sm:$0xff]   ;;  %v7262_v44 = vld [vmem:[%s7516_s29 + $0xc8] sm:$0xff]   ;;  %v7263_v45 = vld [vmem:[%s7516_s29 + $0xd0] sm:$0xff]  }
  0x21   : > { %v7264_v51 = vld [vmem:[%s7516_s29 + $0xd8] sm:$0xff]   ;;  %v7265_v53 = vld [vmem:[%s7516_s29 + $0xe0] sm:$0xff]   ;;  %v437_v56 = vld [vmem:[#allocation2 + $0xa8] sm:$0x1] }
  0x22   : > { %6734 = vmatmul.mubr.msk.bf16.gmra.mrb[4].mxu0 %vm843_vm2, %v7240_v16  ;;  %v7266_v57 = vld [vmem:[%s7516_s29 + $0xe8] sm:$0xff]   ;;  %v438_v58 = vsel %vm7499_vm3, 0, %v437_v56  ;;  %v431_v59 = vld [vmem:[#allocation2 + $0x98] sm:$0x1]  ;;  %v7267_v60 = vld [vmem:[%s7516_s29 + $0xf0] sm:$0xff]  }
  0x23   : > { %6737 = vmatprep.mubr.msk.bf16.mxu0 %vm843_vm2, %v7241_v17  ;;  %439 = vst [vmem:[#allocation2 + $0xa8] sm:$0x1] %v438_v58  ;;  %v432_v61 = vsel %vm7499_vm3, 0, %v431_v59  ;;  %v440_v62 = vld [vmem:[#allocation2 + $0xb0] sm:$0x1]  ;;  %v7268_v2 = vld [vmem:[%s7516_s29 + $0xf8] sm:$0xff]   ;;  %vm7705_vm8 = vmor %vm2570_vm5, %vm2571_vm6 }
  0x24   : > { %433 = vst [vmem:[#allocation2 + $0x98] sm:$0x1] %v432_v61  ;;  %v441_v63 = vsel %vm7499_vm3, 0, %v440_v62  ;;  %v434_v0 = vld [vmem:[#allocation2 + $0xa0] sm:$0x1]  ;;  %v7270_v49 = vld [vmem:[%s8789_s3 + $0x18] sm:$0xff]   ;;  %vm7720_vm9 = vmand %vm338_vm4, %vm1647_vm7 }
  0x25   : > { %442 = vst [vmem:[#allocation2 + $0xb0] sm:$0x1] %v441_v63  ;;  %v435_v1 = vsel %vm7499_vm3, 0, %v434_v0  ;;  %v449_v3 = vld [vmem:[#allocation2 + $0xc8] sm:$0x1] }
  0x26   : > { %436 = vst [vmem:[#allocation2 + $0xa0] sm:$0x1] %v435_v1  ;;  %v450_v4 = vsel %vm7499_vm3, 0, %v449_v3  ;;  %v443_v5 = vld [vmem:[#allocation2 + $0xb8] sm:$0x1] }
  0x27   : > { %451 = vst [vmem:[#allocation2 + $0xc8] sm:$0x1] %v450_v4  ;;  %v444_v6 = vsel %vm7499_vm3, 0, %v443_v5  ;;  %v452_v8 = vld [vmem:[#allocation2 + $0xd0] sm:$0x1] }
  0x28   : > { %445 = vst [vmem:[#allocation2 + $0xb8] sm:$0x1] %v444_v6  ;;  %v453_v9 = vsel %vm7499_vm3, 0, %v452_v8  ;;  %v446_v10 = vld [vmem:[#allocation2 + $0xc0] sm:$0x1] }
  0x29   : > { %454 = vst [vmem:[#allocation2 + $0xd0] sm:$0x1] %v453_v9  ;;  %v447_v11 = vsel %vm7499_vm3, 0, %v446_v10  ;;  %v491_v12 = vld [vmem:[#allocation2 + $0x138] sm:$0x1] }
  0x2a   : > { %6738 = vmatmul.mubr.msk.bf16.gmra.mrb[8].mxu0 %vm843_vm2, %v7242_v18  ;;  %448 = vst [vmem:[#allocation2 + $0xc0] sm:$0x1] %v447_v11  ;;  %v492_v13 = vsel %vm7499_vm3, 0, %v491_v12  ;;  %v485_v14 = vld [vmem:[#allocation2 + $0x128] sm:$0x1] }
  0x2b   : > { %6741 = vmatprep.mubr.msk.bf16.mxu0 %vm843_vm2, %v7243_v19  ;;  %493 = vst [vmem:[#allocation2 + $0x138] sm:$0x1] %v492_v13  ;;  %v486_v15 = vsel %vm7499_vm3, 0, %v485_v14  ;;  %v494_v16 = vld [vmem:[#allocation2 + $0x140] sm:$0x1] }
  0x2c   : > { %487 = vst [vmem:[#allocation2 + $0x128] sm:$0x1] %v486_v15  ;;  %v495_v17 = vsel %vm7499_vm3, 0, %v494_v16  ;;  %v488_v18 = vld [vmem:[#allocation2 + $0x130] sm:$0x1] }
  0x2d   : > { %496 = vst [vmem:[#allocation2 + $0x140] sm:$0x1] %v495_v17  ;;  %v489_v19 = vsel %vm7499_vm3, 0, %v488_v18  ;;  %v359_v39 = vld [vmem:[#allocation2 + $0x124] sm:$0x1] }
  0x2e   : > { %490 = vst [vmem:[#allocation2 + $0x130] sm:$0x1] %v489_v19  ;;  %v360_v40 = vsel %vm7499_vm3, 0, %v359_v39  ;;  %v557_v41 = vld [vmem:[#allocation2 + $0x1e8] sm:$0x1] }
  0x2f   : > { %361 = vst [vmem:[#allocation2 + $0x124] sm:$0x1] %v360_v40  ;;  %v558_v42 = vsel %vm7499_vm3, 0, %v557_v41  ;;  %v551_v43 = vld [vmem:[#allocation2 + $0x1d8] sm:$0x1] }
  0x30   : > { %559 = vst [vmem:[#allocation2 + $0x1e8] sm:$0x1] %v558_v42  ;;  %v560_v46 = vld [vmem:[#allocation2 + $0x1f0] sm:$0x1]  ;;  %v554_v48 = vld [vmem:[#allocation2 + $0x1e0] sm:$0x1] }
  0x31   : > { %v561_v47 = vsel %vm7499_vm3, 0, %v560_v46  ;;  %v555_v50 = vsel %vm7499_vm3, 0, %v554_v48  ;;  %v413_v55 = vld [vmem:[#allocation2 + $0x68] sm:$0x1]  ;;  %v407_v1 = vld [vmem:[#allocation2 + $0x58] sm:$0x1] }
  0x32   : > { %6742 = vmatmul.mubr.msk.bf16.gmra.mrb[12].mxu0 %vm843_vm2, %v7244_v20  ;;  %v503_v20 = vld [vmem:[#allocation2 + $0x158] sm:$0x1]  ;;  %562 = vst [vmem:[#allocation2 + $0x1f0] sm:$0x1] %v561_v47  ;;  %556 = vst [vmem:[#allocation2 + $0x1e0] sm:$0x1] %v555_v50 }
  0x33   : > { %6745 = vmatprep.mubr.msk.bf16.mxu0 %vm843_vm2, %v7245_v21  ;;  %v504_v21 = vsel %vm7499_vm3, 0, %v503_v20  ;;  %v414_v56 = vsel %vm7499_vm3, 0, %v413_v55  ;;  %v422_v3 = vld [vmem:[#allocation2 + $0x80] sm:$0x1]  ;;  %v416_v5 = vld [vmem:[#allocation2 + $0x70] sm:$0x1] }
  0x34   : > { %505 = vst [vmem:[#allocation2 + $0x158] sm:$0x1] %v504_v21  ;;  %415 = vst [vmem:[#allocation2 + $0x68] sm:$0x1] %v414_v56  ;;  %v423_v4 = vsel %vm7499_vm3, 0, %v422_v3  ;;  %v417_v6 = vsel %vm7499_vm3, 0, %v416_v5 }
  0x35   : > { %424 = vst [vmem:[#allocation2 + $0x80] sm:$0x1] %v423_v4  ;;  %v425_v8 = vld [vmem:[#allocation2 + $0x88] sm:$0x1]  ;;  %418 = vst [vmem:[#allocation2 + $0x70] sm:$0x1] %v417_v6 }
  0x36   : > { %v426_v9 = vsel %vm7499_vm3, 0, %v425_v8  ;;  %v419_v13 = vld [vmem:[#allocation2 + $0x78] sm:$0x1]  ;;  %v2539_v17 = vld [vmem:[#allocation2 + $0x124] sm:$0x1] }
  0x37   : > { %427 = vst [vmem:[#allocation2 + $0x88] sm:$0x1] %v426_v9  ;;  %v420_v16 = vsel %vm7499_vm3, 0, %v419_v13  ;;  %v7689_v18 = vld [vmem:[%s8788_s2] ss:$0 sm:$0xff]  ;;  %v2583_v21 = vshll.u32 %v2539_v17, 16 }
  0x38   : > { %421 = vst [vmem:[#allocation2 + $0x78] sm:$0x1] %v420_v16  ;;  %v464_v19 = vld [vmem:[#allocation2 + $0xf0] sm:$0x1]  ;;  %v467_v39 = vld [vmem:[#allocation2 + $0xf8] sm:$0x1] }
  0x39   : > { %v1661_v50 = vld [vmem:[#allocation2 + $0x18] sm:$0xf]  ;;  %v1667_v9 = vld [vmem:[#allocation2 + $0x20] sm:$0xf] }
  0x3a   : > { %6746 = vmatmul.mubr.msk.bf16.gmra.mrb[16].mxu0 %vm843_vm2, %v7246_v22  ;;  %v7390_v22 = vmov 0   ;;  %v8638_v42 = vld [vmem:[%s8790_s4] ss:$0 sm:$0xff] }
  0x3b   : > { %6749 = vmatprep.mubr.msk.bf16.mxu0 %vm843_vm2, %v7247_v23  ;;  %339 = vst.msk [vmem:[#allocation2] sm:$0xf] %vm338_vm4, %v7390_v22  ;;  %346 = vst.msk [vmem:[#allocation2 + $0x48] sm:$0xf] %vm338_vm4, %v7390_v22  ;;  %v497_v23 = vld [vmem:[#allocation2 + $0x148] sm:$0x1] }
  0x3c   : > { %350 = vst.msk [vmem:[#allocation2 + $0x90] sm:$0xf] %vm338_vm4, %v7390_v22  ;;  %354 = vst.msk [vmem:[#allocation2 + $0xd8] sm:$0xf] %vm338_vm4, %v7390_v22 }
  0x3d   : > { %358 = vst.msk [vmem:[#allocation2 + $0x120] sm:$0xf] %vm338_vm4, %v7390_v22  ;;  %362 = vst.msk [vmem:[#allocation2 + $0x168] sm:$0xf] %vm338_vm4, %v7390_v22 }
  0x3e   : > { %366 = vst.msk [vmem:[#allocation2 + $0x1b0] sm:$0xf] %vm338_vm4, %v7390_v22  ;;  %370 = vst.msk [vmem:[#allocation2 + $0x1f8] sm:$0xf] %vm338_vm4, %v7390_v22  ;;  %v465_v22 = vsel %vm7499_vm3, 0, %v464_v19 }
  0x3f   : > { %466 = vst [vmem:[#allocation2 + $0xf0] sm:$0x1] %v465_v22  ;;  %v1655_v22 = vld [vmem:[#allocation2 + $0x10] sm:$0xf] }
  0x42   : > { %6750 = vmatmul.mubr.msk.bf16.gmra.mrb[20].mxu0 %vm843_vm2, %v7248_v24  ;;  %v506_v24 = vld [vmem:[#allocation2 + $0x160] sm:$0x1]  ;;  %v401_v58 = vld [vmem:[#allocation2 + $0x48] sm:$0x1] }
  0x43   : > { %6753 = vmatprep.mubr.msk.bf16.mxu0 %vm843_vm2, %v7249_v25  ;;  %v498_v25 = vsel %vm7499_vm3, 0, %v497_v23  ;;  %v428_v59 = vld [vmem:[#allocation2 + $0x90] sm:$0x1]  ;;  %v402_v61 = vsel %vm7499_vm3, 0, %v401_v58  ;;  %v455_v63 = vld [vmem:[#allocation2 + $0xd8] sm:$0x1] }
  0x44   : > { %499 = vst [vmem:[#allocation2 + $0x148] sm:$0x1] %v498_v25  ;;  %v429_v62 = vsel %vm7499_vm3, 0, %v428_v59  ;;  %403 = vst [vmem:[#allocation2 + $0x48] sm:$0x1] %v402_v61  ;;  %v456_v0 = vsel %vm7499_vm3, 0, %v455_v63 }
  0x45   : > { %430 = vst [vmem:[#allocation2 + $0x90] sm:$0x1] %v429_v62  ;;  %457 = vst [vmem:[#allocation2 + $0xd8] sm:$0x1] %v456_v0  ;;  %v1652_v0 = vld [vmem:[#allocation2 + $0xc] sm:$0x1] }
  0x4a   : > { %6754 = vmatmul.mubr.msk.bf16.gmra.mrb[24].mxu0 %vm843_vm2, %v7250_v26  ;;  %v507_v26 = vsel %vm7499_vm3, 0, %v506_v24 }
  0x4b   : > { %6757 = vmatprep.mubr.msk.bf16.mxu0 %vm843_vm2, %v7251_v27  ;;  %v500_v27 = vld [vmem:[#allocation2 + $0x150] sm:$0x1]  ;;  %508 = vst [vmem:[#allocation2 + $0x160] sm:$0x1] %v507_v26 }
  0x52   : > { %6758 = vmatmul.mubr.msk.bf16.gmra.mrb[28].mxu0 %vm843_vm2, %v7252_v28  ;;  %v501_v28 = vsel %vm7499_vm3, 0, %v500_v27 }
  0x53   : > { %6761 = vmatprep.mubr.msk.bf16.mxu0 %vm843_vm2, %v7253_v29  ;;  %502 = vst [vmem:[#allocation2 + $0x150] sm:$0x1] %v501_v28  ;;  %v482_v29 = vld [vmem:[#allocation2 + $0x120] sm:$0x1] }
  0x5a   : > { %6762 = vmatmul.mubr.msk.bf16.gmra.mrb[32].mxu0 %vm843_vm2, %v7254_v30  ;;  %v483_v30 = vsel %vm7499_vm3, 0, %v482_v29 }
  0x5b   : > { %6765 = vmatprep.mubr.msk.bf16.mxu0 %vm843_vm2, %v7255_v31  ;;  %v545_v31 = vld [vmem:[#allocation2 + $0x1c8] sm:$0x1]  ;;  %484 = vst [vmem:[#allocation2 + $0x120] sm:$0x1] %v483_v30 }
  0x62   : > { %6766 = vmatmul.mubr.msk.bf16.gmra.mrb[36].mxu0 %vm843_vm2, %v7256_v32  ;;  %v546_v32 = vsel %vm7499_vm3, 0, %v545_v31  ;;  %v2538_v10 = vld [vmem:[#allocation2 + $0x120] sm:$0xf] }
  0x63   : > { %6769 = vmatprep.mubr.msk.bf16.mxu0 %vm843_vm2, %v7257_v33  ;;  %v539_v33 = vld [vmem:[#allocation2 + $0x1b8] sm:$0x1]  ;;  %547 = vst [vmem:[#allocation2 + $0x1c8] sm:$0x1] %v546_v32  ;;  %v2574_v11 = vshrl.u32 %v2538_v10, 16  ;;  %v2577_v12 = vshll.u32 %v2538_v10, 16 }
  0x64   : > { %v7698_v32 = vrot.slane %v2583_v21, 5 }
  0x65   : > { %v2576_v14 = vrot.slane %v2574_v11, 4  ;;  %v2579_v15 = vrot.slane %v2577_v12, 5 }
  0x67   : > { %v2580_v20 = vor.u32 %v2579_v15, %v2576_v14  ;;  %v1670_v14 = vld [vmem:[#allocation2 + $0x24] sm:$0x1] }
  0x69   : > { %v7696_v31 = vrot.slane %v2580_v20, 4 }
  0x6a   : > { %6770 = vmatmul.mubr.msk.bf16.gmra.mrb[40].mxu0 %vm843_vm2, %v7258_v34  ;;  %v548_v34 = vld [vmem:[#allocation2 + $0x1d0] sm:$0x1] }
  0x6b   : > { %6773 = vmatprep.mubr.msk.bf16.mxu0 %vm843_vm2, %v7259_v35  ;;  %v540_v35 = vsel %vm7499_vm3, 0, %v539_v33  ;;  %v2586_v47 = vsel %vm7705_vm8, %v7696_v31, %v7698_v32  ;;  %v1706_v32 = vld [vmem:[#allocation2 + $0x5c] sm:$0x1] }
  0x6c   : > { %541 = vst [vmem:[#allocation2 + $0x1b8] sm:$0x1] %v540_v35  ;;  %v458_v35 = vld [vmem:[#allocation2 + $0xe0] sm:$0x1] }
  0x72   : > { %6774 = vmatmul.mubr.msk.bf16.gmra.mrb[44].mxu0 %vm843_vm2, %v7260_v36  ;;  %v549_v36 = vsel %vm7499_vm3, 0, %v548_v34 }
  0x73   : > { %6777 = vmatprep.mubr.msk.bf16.mxu0 %vm843_vm2, %v7261_v37  ;;  %v542_v37 = vld [vmem:[#allocation2 + $0x1c0] sm:$0x1]  ;;  %550 = vst [vmem:[#allocation2 + $0x1d0] sm:$0x1] %v549_v36 }
  0x74   : > { %v543_v38 = vsel %vm7499_vm3, 0, %v542_v37 }
  0x75   : > { %544 = vst [vmem:[#allocation2 + $0x1c0] sm:$0x1] %v543_v38  ;;  %v459_v38 = vsel %vm7499_vm3, 0, %v458_v35 }
  0x76   : > { %460 = vst [vmem:[#allocation2 + $0xe0] sm:$0x1] %v459_v38 }
  0x7a   : > { %6778 = vmatmul.mubr.msk.bf16.gmra.mrb[48].mxu0 %vm843_vm2, %v7262_v44  ;;  %v552_v44 = vsel %vm7499_vm3, 0, %v551_v43  ;;  %v468_v43 = vsel %vm7499_vm3, 0, %v467_v39  ;;  %v476_v39 = vld [vmem:[#allocation2 + $0x110] sm:$0x1] }
  0x7b   : > { %6781 = vmatprep.mubr.msk.bf16.mxu0 %vm843_vm2, %v7263_v45  ;;  %v7269_v45 = vld [vmem:[%s8789_s3 + $0x10] sm:$0xff]   ;;  %553 = vst [vmem:[#allocation2 + $0x1d8] sm:$0x1] %v552_v44  ;;  %v461_v44 = vld [vmem:[#allocation2 + $0xe8] sm:$0x1] }
  0x7c   : > { %6793 = vmatprep.subr.bf16.mxu0 %v7269_v45  ;;  %469 = vst [vmem:[#allocation2 + $0xf8] sm:$0x1] %v468_v43  ;;  %v462_v48 = vsel %vm7499_vm3, 0, %v461_v44 }
  0x7d   : > { %6794 = vmatpush3.bf16.msra.mxu0 %v7269_v45  ;;  %463 = vst [vmem:[#allocation2 + $0xe8] sm:$0x1] %v462_v48 }
  0x7e   : > { %6795 = vmatprep.subr.bf16.mxu0 %v7270_v49 }
  0x81   : > { %6796 = vmatpush3.bf16.msra.mxu0 %v7270_v49 }
  0x82   : > { %6782 = vmatmul.mubr.msk.bf16.gmra.mrb[52].mxu0 %vm843_vm2, %v7264_v51  ;;  %v410_v51 = vld [vmem:[#allocation2 + $0x60] sm:$0x1] }
  0x83   : > { %6785 = vmatprep.mubr.msk.bf16.mxu0 %vm843_vm2, %v7265_v53  ;;  %v411_v52 = vsel %vm7499_vm3, 0, %v410_v51  ;;  %v404_v53 = vld [vmem:[#allocation2 + $0x50] sm:$0x1]  ;;  %v1664_v51 = vld [vmem:[#allocation2 + $0x1c] sm:$0x1] }
  0x84   : > { %412 = vst [vmem:[#allocation2 + $0x60] sm:$0x1] %v411_v52  ;;  %v405_v54 = vsel %vm7499_vm3, 0, %v404_v53 }
  0x85   : > { %406 = vst [vmem:[#allocation2 + $0x50] sm:$0x1] %v405_v54 }
  0x8a   : > { %6786 = vmatmul.mubr.msk.bf16.gmra.mrb[56].mxu0 %vm843_vm2, %v7266_v57  ;;  %v374_v57 = vld [vmem:[#allocation2] sm:$0x1] }
  0x8b   : > { %6789 = vmatprep.mubr.msk.bf16.mxu0 %vm843_vm2, %v7267_v60  ;;  %v375_v60 = vsel %vm7499_vm3, 0, %v374_v57  ;;  %v1649_v57 = vld [vmem:[#allocation2 + $0x8] sm:$0xf] }
  0x8c   : > { %376 = vst [vmem:[#allocation2] sm:$0x1] %v375_v60 }
  0x92   : > { %6790 = vmatmul.mubr.msk.bf16.gmra.mrb[60].mxu0 %vm843_vm2, %v7268_v2  ;;  %v408_v2 = vsel %vm7499_vm3, 0, %v407_v1 }
  0x93   : > { %409 = vst [vmem:[#allocation2 + $0x58] sm:$0x1] %v408_v2 }
  0x9a   : > { %v1703_v31 = vld [vmem:[#allocation2 + $0x58] sm:$0xf] }
  0xed   : > { %v6731_v23 = vpop.f32.mrb[0].mxu0 }
  0xee   : > { %v983_v24 = vadd.f32 %v6731_v23, %v7689_v18  ;;  %v974_v25 = vpop.f32.mrb[1].mxu0  ;;  %v1658_v23 = vld [vmem:[#allocation2 + $0x14] sm:$0x1] }
  0xef   : > { %v975_v26 = vadd.f32 %v7689_v18, %v974_v25  ;;  %v6732_v27 = vpop.f32.mrb[2].mxu0 }
  0xf0   : > { %v1231_v28 = vmax.f32 %v983_v24, 0.0  ;;  %v986_v29 = vadd.f32 %v6732_v27, %v7689_v18  ;;  %v977_v30 = vpop.f32.mrb[3].mxu0 }
  0xf1   : > { %v1229_v33 = vmax.f32 %v975_v26, 0.0  ;;  %v978_v34 = vadd.f32 %v7689_v18, %v977_v30 }
  0xf2   : > { %v6517_v36 = vpack.c.bf16 %v1231_v28, %v1231_v28  ;;  %v1232_v37 = vmax.f32 %v986_v29, 0.0 }
  0xf3   : > { %v6515_v40 = vpack.c.bf16 %v1229_v33, %v1229_v33  ;;  %v1230_v41 = vmax.f32 %v978_v34, 0.0 }
  0xf4   : > { %v1502_v45 = vshrl.u32 %v6517_v36, 16  ;;  %v6518_v46 = vpack.c.bf16 %v1232_v37, %v1232_v37  ;;  %v1505_v49 = vshll.u32 %v6517_v36, 16 }
  0xf5   : > { %v1486_v52 = vshrl.u32 %v6515_v40, 16  ;;  %v1489_v53 = vshll.u32 %v6515_v40, 16  ;;  %v6516_v54 = vpack.c.bf16 %v1230_v41, %v1230_v41  ;;  %v6735_v55 = vpop.f32.mrb[4].mxu0 }
  0xf6   : > { %v1504_v56 = vrot.slane %v1502_v45, 7  ;;  %v1510_v58 = vshrl.u32 %v6518_v46, 16  ;;  %v1513_v59 = vshll.u32 %v6518_v46, 16  ;;  %v999_v60 = vadd.f32 %v6735_v55, %v7689_v18  ;;  %v990_v61 = vpop.f32.mrb[5].mxu0  ;;  %v1685_v46 = vld [vmem:[#allocation2 + $0x38] sm:$0xf] }
  0xf7   : > { %v1488_v63 = vrot.slane %v1486_v52, 7  ;;  %v1494_v1 = vshrl.u32 %v6516_v54, 16  ;;  %v1497_v2 = vshll.u32 %v6516_v54, 16  ;;  %v991_v3 = vadd.f32 %v7689_v18, %v990_v61  ;;  %v6736_v4 = vpop.f32.mrb[6].mxu0  ;;  %v1688_v54 = vld [vmem:[#allocation2 + $0x3c] sm:$0x1] }
  0xf8   : > { %v1507_v5 = vor.u32 %v1505_v49, %v1504_v56  ;;  %v1508_v6 = vrot.slane %v1504_v56, 4  ;;  %v1512_v8 = vrot.slane %v1510_v58, 7  ;;  %v1235_v10 = vmax.f32 %v999_v60, 0.0  ;;  %v993_v11 = vpop.f32.mrb[7].mxu0  ;;  %v1676_v60 = vld [vmem:[#allocation2 + $0x2c] sm:$0x1] }
  0xf9   : > { %v1491_v12 = vor.u32 %v1489_v53, %v1488_v63  ;;  %v1492_v13 = vrot.slane %v1488_v63, 4  ;;  %v1496_v15 = vrot.slane %v1494_v1, 7  ;;  %v1233_v16 = vmax.f32 %v991_v3, 0.0 }
  0xfa   : > { %v1662_v17 = vsel %vm7720_vm9, %v1507_v5, %v1661_v50  ;;  %v1665_v19 = vsel %vm7499_vm3, %v1508_v6, %v1664_v51  ;;  %v1515_v20 = vor.u32 %v1513_v59, %v1512_v8  ;;  %v1516_v21 = vrot.slane %v1512_v8, 4  ;;  %v1673_v59 = vld [vmem:[#allocation2 + $0x28] sm:$0xf] }
  0xfb   : > { %1663 = vst [vmem:[#allocation2 + $0x18] sm:$0xf] %v1662_v17  ;;  %1666 = vst [vmem:[#allocation2 + $0x1c] sm:$0x1] %v1665_v19  ;;  %v1650_v24 = vsel %vm7720_vm9, %v1491_v12, %v1649_v57  ;;  %v1653_v25 = vsel %vm7499_vm3, %v1492_v13, %v1652_v0  ;;  %v1499_v26 = vor.u32 %v1497_v2, %v1496_v15  ;;  %v1500_v27 = vrot.slane %v1496_v15, 4 }
  0xfc   : > { %1651 = vst [vmem:[#allocation2 + $0x8] sm:$0xf] %v1650_v24  ;;  %1654 = vst [vmem:[#allocation2 + $0xc] sm:$0x1] %v1653_v25  ;;  %v1668_v28 = vsel %vm7720_vm9, %v1515_v20, %v1667_v9  ;;  %v1671_v29 = vsel %vm7499_vm3, %v1516_v21, %v1670_v14  ;;  %v6521_v30 = vpack.c.bf16 %v1235_v10, %v1235_v10  ;;  %v477_v58 = vsel %vm7499_vm3, 0, %v476_v39 }
  0xfd   : > { %v6519_v33 = vpack.c.bf16 %v1233_v16, %v1233_v16  ;;  %1669 = vst [vmem:[#allocation2 + $0x20] sm:$0xf] %v1668_v28  ;;  %1672 = vst [vmem:[#allocation2 + $0x24] sm:$0x1] %v1671_v29  ;;  %v1656_v34 = vsel %vm7720_vm9, %v1499_v26, %v1655_v22  ;;  %v1659_v35 = vsel %vm7499_vm3, %v1500_v27, %v1658_v23  ;;  %v6739_v38 = vpop.f32.mrb[8].mxu0 }
  0xfe   : > { %v1002_v36 = vadd.f32 %v6736_v4, %v7689_v18  ;;  %v994_v37 = vadd.f32 %v7689_v18, %v993_v11  ;;  %1657 = vst [vmem:[#allocation2 + $0x10] sm:$0xf] %v1656_v34  ;;  %1660 = vst [vmem:[#allocation2 + $0x14] sm:$0x1] %v1659_v35  ;;  %v1534_v40 = vshrl.u32 %v6521_v30, 16  ;;  %v1537_v41 = vshll.u32 %v6521_v30, 16 }
  0xff   : > { %v1518_v43 = vshrl.u32 %v6519_v33, 16  ;;  %v1521_v44 = vshll.u32 %v6519_v33, 16  ;;  %v1006_v45 = vpop.f32.mrb[9].mxu0  ;;  %v1015_v50 = vadd.f32 %v6739_v38, %v7689_v18  ;;  %478 = vst [vmem:[#allocation2 + $0x110] sm:$0x1] %v477_v58 }
 0x100   : > { %v1236_v48 = vmax.f32 %v1002_v36, 0.0  ;;  %v1234_v49 = vmax.f32 %v994_v37, 0.0  ;;  %v1007_v51 = vadd.f32 %v7689_v18, %v1006_v45  ;;  %v6740_v52 = vpop.f32.mrb[10].mxu0  ;;  %v1536_v53 = vrot.slane %v1534_v40, 7  ;;  %v470_v11 = vld [vmem:[#allocation2 + $0x100] sm:$0x1] }
 0x101   : > { %v1520_v55 = vrot.slane %v1518_v43, 7  ;;  %v7746_v56 = vadd.f32 %v6740_v52, %v7689_v18  ;;  %v1009_v57 = vpop.f32.mrb[11].mxu0  ;;  %v1239_v0 = vmax.f32 %v1015_v50, 0.0  ;;  %v1691_v16 = vld [vmem:[#allocation2 + $0x40] sm:$0xf]  ;;  %v471_v30 = vsel %vm7499_vm3, 0, %v470_v11 }
 0x102   : > { %v6522_v61 = vpack.c.bf16 %v1236_v48, %v1236_v48  ;;  %v6520_v63 = vpack.c.bf16 %v1234_v49, %v1234_v49  ;;  %v1237_v1 = vmax.f32 %v1007_v51, 0.0  ;;  %v1539_v2 = vor.u32 %v1537_v41, %v1536_v53  ;;  %v1694_v17 = vld [vmem:[#allocation2 + $0x44] sm:$0x1]  ;;  %v1679_v21 = vld [vmem:[#allocation2 + $0x30] sm:$0xf] }
 0x103   : > { %v1540_v3 = vrot.slane %v1536_v53, 4  ;;  %v1523_v4 = vor.u32 %v1521_v44, %v1520_v55  ;;  %v1524_v5 = vrot.slane %v1520_v55, 4  ;;  %v6525_v22 = vpack.c.bf16 %v1239_v0, %v1239_v0  ;;  %v1682_v25 = vld [vmem:[#allocation2 + $0x34] sm:$0x1]  ;;  %472 = vst [vmem:[#allocation2 + $0x100] sm:$0x1] %v471_v30 }
 0x104   : > { %v1542_v6 = vshrl.u32 %v6522_v61, 16  ;;  %v1545_v8 = vshll.u32 %v6522_v61, 16  ;;  %v1526_v9 = vshrl.u32 %v6520_v63, 16  ;;  %v1529_v10 = vshll.u32 %v6520_v63, 16  ;;  %v1918_v49 = vld [vmem:[#allocation2 + $0xa8] sm:$0xf] }
 0x105   : > { %v1686_v12 = vsel %vm7720_vm9, %v1539_v2, %v1685_v46  ;;  %v1689_v13 = vsel %vm7499_vm3, %v1540_v3, %v1688_v54  ;;  %v1674_v14 = vsel %vm7720_vm9, %v1523_v4, %v1673_v59  ;;  %v1677_v15 = vsel %vm7499_vm3, %v1524_v5, %v1676_v60  ;;  %v6743_v24 = vpop.f32.mrb[12].mxu0  ;;  %v1921_v51 = vld [vmem:[#allocation2 + $0xac] sm:$0x1]  ;;  %v1906_v55 = vld [vmem:[#allocation2 + $0x98] sm:$0xf] }
 0x106   : > { %1687 = vst [vmem:[#allocation2 + $0x38] sm:$0xf] %v1686_v12  ;;  %1690 = vst [vmem:[#allocation2 + $0x3c] sm:$0x1] %v1689_v13  ;;  %v1544_v19 = vrot.slane %v1542_v6, 7  ;;  %v1528_v20 = vrot.slane %v1526_v9, 7  ;;  %v6523_v23 = vpack.c.bf16 %v1237_v1, %v1237_v1  ;;  %v1010_v27 = vadd.f32 %v7689_v18, %v1009_v57 }
 0x107   : > { %1675 = vst [vmem:[#allocation2 + $0x28] sm:$0xf] %v1674_v14  ;;  %1678 = vst [vmem:[#allocation2 + $0x2c] sm:$0x1] %v1677_v15  ;;  %v1240_v26 = vmax.f32 %v7746_v56, 0.0  ;;  %v1031_v28 = vadd.f32 %v6743_v24, %v7689_v18  ;;  %v1022_v29 = vpop.f32.mrb[13].mxu0 }
 0x108   : > { %v1547_v33 = vor.u32 %v1545_v8, %v1544_v19  ;;  %v1548_v34 = vrot.slane %v1544_v19, 4  ;;  %v1531_v35 = vor.u32 %v1529_v10, %v1528_v20  ;;  %v1532_v36 = vrot.slane %v1528_v20, 4  ;;  %v6744_v37 = vpop.f32.mrb[14].mxu0  ;;  %v1909_v56 = vld [vmem:[#allocation2 + $0x9c] sm:$0x1] }
 0x109   : > { %v1762_v38 = vshrl.u32 %v6525_v22, 16  ;;  %v1765_v39 = vshll.u32 %v6525_v22, 16  ;;  %v1746_v40 = vshrl.u32 %v6523_v23, 16  ;;  %v1749_v41 = vshll.u32 %v6523_v23, 16  ;;  %v1025_v43 = vpop.f32.mrb[15].mxu0 }
 0x10a   : > { %v1692_v44 = vsel %vm7720_vm9, %v1547_v33, %v1691_v16  ;;  %v1695_v45 = vsel %vm7499_vm3, %v1548_v34, %v1694_v17  ;;  %v1680_v46 = vsel %vm7720_vm9, %v1531_v35, %v1679_v21  ;;  %v1683_v48 = vsel %vm7499_vm3, %v1532_v36, %v1682_v25  ;;  %v1924_v12 = vld [vmem:[#allocation2 + $0xb0] sm:$0xf]  ;;  %v1927_v13 = vld [vmem:[#allocation2 + $0xb4] sm:$0x1]  ;;  %v1912_v30 = vld [vmem:[#allocation2 + $0xa0] sm:$0xf] }
 0x10b   : > { %1693 = vst [vmem:[#allocation2 + $0x40] sm:$0xf] %v1692_v44  ;;  %1696 = vst [vmem:[#allocation2 + $0x44] sm:$0x1] %v1695_v45  ;;  %v1764_v50 = vrot.slane %v1762_v38, 7  ;;  %v1748_v52 = vrot.slane %v1746_v40, 7  ;;  %v6526_v53 = vpack.c.bf16 %v1240_v26, %v1240_v26  ;;  %v1023_v58 = vadd.f32 %v7689_v18, %v1022_v29 }
 0x10c   : > { %1681 = vst [vmem:[#allocation2 + $0x30] sm:$0xf] %v1680_v46  ;;  %1684 = vst [vmem:[#allocation2 + $0x34] sm:$0x1] %v1683_v48  ;;  %v1238_v54 = vmax.f32 %v1010_v27, 0.0  ;;  %v1243_v57 = vmax.f32 %v1031_v28, 0.0  ;;  %v1034_v59 = vadd.f32 %v6744_v37, %v7689_v18  ;;  %v1026_v60 = vadd.f32 %v7689_v18, %v1025_v43 }
 0x10d   : > { %v1767_v61 = vor.u32 %v1765_v39, %v1764_v50  ;;  %v1768_v63 = vrot.slane %v1764_v50, 4  ;;  %v1751_v0 = vor.u32 %v1749_v41, %v1748_v52  ;;  %v1752_v1 = vrot.slane %v1748_v52, 4  ;;  %v6747_v6 = vpop.f32.mrb[16].mxu0  ;;  %v1915_v33 = vld [vmem:[#allocation2 + $0xa4] sm:$0x1] }
 0x10e   : > { %v1770_v2 = vshrl.u32 %v6526_v53, 16  ;;  %v1773_v3 = vshll.u32 %v6526_v53, 16  ;;  %v6524_v4 = vpack.c.bf16 %v1238_v54, %v1238_v54  ;;  %v6529_v5 = vpack.c.bf16 %v1243_v57, %v1243_v57  ;;  %v1038_v14 = vpop.f32.mrb[17].mxu0  ;;  %v1942_v43 = vld [vmem:[#allocation2 + $0xc8] sm:$0xf] }
 0x10f   : > { %v1919_v8 = vsel %vm7720_vm9, %v1767_v61, %v1918_v49  ;;  %v1922_v9 = vsel %vm7499_vm3, %v1768_v63, %v1921_v51  ;;  %v1907_v10 = vsel %vm7720_vm9, %v1751_v0, %v1906_v55  ;;  %v1910_v11 = vsel %vm7499_vm3, %v1752_v1, %v1909_v56  ;;  %v6748_v20 = vpop.f32.mrb[18].mxu0  ;;  %v1945_v44 = vld [vmem:[#allocation2 + $0xcc] sm:$0x1]  ;;  %v1930_v52 = vld [vmem:[#allocation2 + $0xb8] sm:$0xf] }
 0x110   : > { %1920 = vst [vmem:[#allocation2 + $0xa8] sm:$0xf] %v1919_v8  ;;  %1923 = vst [vmem:[#allocation2 + $0xac] sm:$0x1] %v1922_v9  ;;  %v1772_v15 = vrot.slane %v1770_v2, 7  ;;  %v1754_v16 = vshrl.u32 %v6524_v4, 16  ;;  %v1047_v37 = vadd.f32 %v6747_v6, %v7689_v18 }
 0x111   : > { %1908 = vst [vmem:[#allocation2 + $0x98] sm:$0xf] %v1907_v10  ;;  %1911 = vst [vmem:[#allocation2 + $0x9c] sm:$0x1] %v1910_v11  ;;  %v1757_v17 = vshll.u32 %v6524_v4, 16  ;;  %v1794_v19 = vshrl.u32 %v6529_v5, 16  ;;  %v1050_v10 = vadd.f32 %v6748_v20, %v7689_v18 }
 0x112   : > { %v1797_v21 = vshll.u32 %v6529_v5, 16  ;;  %v1241_v22 = vmax.f32 %v1023_v58, 0.0  ;;  %v1244_v23 = vmax.f32 %v1034_v59, 0.0  ;;  %v1242_v24 = vmax.f32 %v1026_v60, 0.0  ;;  %v7782_v25 = vpop.f32.mrb[19].mxu0 }
 0x113   : > { %v1775_v26 = vor.u32 %v1773_v3, %v1772_v15  ;;  %v1776_v27 = vrot.slane %v1772_v15, 4  ;;  %v1756_v28 = vrot.slane %v1754_v16, 7  ;;  %v1796_v29 = vrot.slane %v1794_v19, 7  ;;  %v1933_v53 = vld [vmem:[#allocation2 + $0xbc] sm:$0x1] }
 0x114   : > { %v6527_v34 = vpack.c.bf16 %v1241_v22, %v1241_v22  ;;  %v6530_v35 = vpack.c.bf16 %v1244_v23, %v1244_v23  ;;  %v6528_v36 = vpack.c.bf16 %v1242_v24, %v1242_v24  ;;  %v1948_v60 = vld [vmem:[#allocation2 + $0xd0] sm:$0xf]  ;;  %v1247_v2 = vmax.f32 %v1047_v37, 0.0  ;;  %v1951_v8 = vld [vmem:[#allocation2 + $0xd4] sm:$0x1] }
 0x115   : > { %v1925_v38 = vsel %vm7720_vm9, %v1775_v26, %v1924_v12  ;;  %v1928_v39 = vsel %vm7499_vm3, %v1776_v27, %v1927_v13  ;;  %v1759_v40 = vor.u32 %v1757_v17, %v1756_v28  ;;  %v1760_v41 = vrot.slane %v1756_v28, 4  ;;  %v6751_v56 = vpop.f32.mrb[20].mxu0  ;;  %v1936_v15 = vld [vmem:[#allocation2 + $0xc0] sm:$0xf]  ;;  %v1939_v16 = vld [vmem:[#allocation2 + $0xc4] sm:$0x1] }
 0x116   : > { %1926 = vst [vmem:[#allocation2 + $0xb0] sm:$0xf] %v1925_v38  ;;  %1929 = vst [vmem:[#allocation2 + $0xb4] sm:$0x1] %v1928_v39  ;;  %v1799_v45 = vor.u32 %v1797_v21, %v1796_v29  ;;  %v1800_v46 = vrot.slane %v1796_v29, 4  ;;  %v1778_v48 = vshrl.u32 %v6527_v34, 16  ;;  %v1039_v3 = vadd.f32 %v7689_v18, %v1038_v14 }
 0x117   : > { %v1781_v49 = vshll.u32 %v6527_v34, 16  ;;  %v1913_v50 = vsel %vm7720_vm9, %v1759_v40, %v1912_v30  ;;  %v1916_v51 = vsel %vm7499_vm3, %v1760_v41, %v1915_v33  ;;  %v1802_v54 = vshrl.u32 %v6530_v35, 16  ;;  %v1054_v63 = vpop.f32.mrb[21].mxu0  ;;  %v2175_v30 = vld [vmem:[#allocation2 + $0x138] sm:$0xf] }
 0x118   : > { %v1805_v55 = vshll.u32 %v6530_v35, 16  ;;  %1914 = vst [vmem:[#allocation2 + $0xa0] sm:$0xf] %v1913_v50  ;;  %1917 = vst [vmem:[#allocation2 + $0xa4] sm:$0x1] %v1916_v51  ;;  %v1943_v57 = vsel %vm7720_vm9, %v1799_v45, %v1942_v43  ;;  %v1946_v58 = vsel %vm7499_vm3, %v1800_v46, %v1945_v44  ;;  %v1780_v59 = vrot.slane %v1778_v48, 7 }
 0x119   : > { %v1786_v61 = vshrl.u32 %v6528_v36, 16  ;;  %1944 = vst [vmem:[#allocation2 + $0xc8] sm:$0xf] %v1943_v57  ;;  %1947 = vst [vmem:[#allocation2 + $0xcc] sm:$0x1] %v1946_v58  ;;  %v1804_v0 = vrot.slane %v1802_v54, 7  ;;  %v6533_v17 = vpack.c.bf16 %v1247_v2, %v1247_v2  ;;  %v1042_v37 = vadd.f32 %v7689_v18, %v7782_v25 }
 0x11a   : > { %v1789_v1 = vshll.u32 %v6528_v36, 16  ;;  %v6752_v4 = vpop.f32.mrb[22].mxu0  ;;  %v1783_v5 = vor.u32 %v1781_v49, %v1780_v59  ;;  %v1784_v6 = vrot.slane %v1780_v59, 4  ;;  %v1245_v19 = vmax.f32 %v1039_v3, 0.0  ;;  %v2178_v36 = vld [vmem:[#allocation2 + $0x13c] sm:$0x1] }
 0x11b   : > { %v1788_v9 = vrot.slane %v1786_v61, 7  ;;  %v7799_v11 = vpop.f32.mrb[23].mxu0  ;;  %v1807_v12 = vor.u32 %v1805_v55, %v1804_v0  ;;  %v1808_v13 = vrot.slane %v1804_v0, 4  ;;  %v2019_v26 = vshrl.u32 %v6533_v17, 16  ;;  %v2163_v59 = vld [vmem:[#allocation2 + $0x128] sm:$0xf] }
 0x11c   : > { %v1931_v21 = vsel %vm7720_vm9, %v1783_v5, %v1930_v52  ;;  %v1934_v14 = vsel %vm7499_vm3, %v1784_v6, %v1933_v53  ;;  %v2022_v27 = vshll.u32 %v6533_v17, 16  ;;  %v6531_v33 = vpack.c.bf16 %v1245_v19, %v1245_v19  ;;  %v2181_v3 = vld [vmem:[#allocation2 + $0x140] sm:$0xf]  ;;  %v2184_v5 = vld [vmem:[#allocation2 + $0x144] sm:$0x1] }
 0x11d   : > { %v1791_v22 = vor.u32 %v1789_v1, %v1788_v9  ;;  %v1792_v23 = vrot.slane %v1788_v9, 4  ;;  %1932 = vst [vmem:[#allocation2 + $0xb8] sm:$0xf] %v1931_v21  ;;  %1935 = vst [vmem:[#allocation2 + $0xbc] sm:$0x1] %v1934_v14  ;;  %v1949_v20 = vsel %vm7720_vm9, %v1807_v12, %v1948_v60  ;;  %v1952_v24 = vsel %vm7499_vm3, %v1808_v13, %v1951_v8  ;;  %v7817_v40 = vpop.f32.mrb[24].mxu0 }
 0x11e   : > { %1950 = vst [vmem:[#allocation2 + $0xd0] sm:$0xf] %v1949_v20  ;;  %1953 = vst [vmem:[#allocation2 + $0xd4] sm:$0x1] %v1952_v24  ;;  %v1248_v34 = vmax.f32 %v1050_v10, 0.0  ;;  %v2021_v35 = vrot.slane %v2019_v26, 7  ;;  %v1063_v38 = vadd.f32 %v6751_v56, %v7689_v18  ;;  %v1055_v39 = vadd.f32 %v7689_v18, %v1054_v63 }
 0x11f   : > { %v1937_v28 = vsel %vm7720_vm9, %v1791_v22, %v1936_v15  ;;  %v1940_v29 = vsel %vm7499_vm3, %v1792_v23, %v1939_v16  ;;  %v2003_v41 = vshrl.u32 %v6531_v33, 16  ;;  %v2006_v43 = vshll.u32 %v6531_v33, 16  ;;  %v7820_v46 = vpop.f32.mrb[25].mxu0  ;;  %v2166_v60 = vld [vmem:[#allocation2 + $0x12c] sm:$0x1] }
 0x120   : > { %1938 = vst [vmem:[#allocation2 + $0xc0] sm:$0xf] %v1937_v28  ;;  %1941 = vst [vmem:[#allocation2 + $0xc4] sm:$0x1] %v1940_v29  ;;  %v6534_v44 = vpack.c.bf16 %v1248_v34, %v1248_v34  ;;  %v1066_v45 = vadd.f32 %v6752_v4, %v7689_v18  ;;  %v2024_v48 = vor.u32 %v2022_v27, %v2021_v35  ;;  %v2025_v49 = vrot.slane %v2021_v35, 4  ;;  %v7822_v52 = vpop.f32.mrb[26].mxu0 }
 0x121   : > { %v1246_v50 = vmax.f32 %v1042_v37, 0.0  ;;  %v1251_v51 = vmax.f32 %v1063_v38, 0.0  ;;  %v2005_v25 = vrot.slane %v2003_v41, 7  ;;  %v1249_v55 = vmax.f32 %v1055_v39, 0.0  ;;  %v7824_v56 = vpop.f32.mrb[27].mxu0 }
 0x122   : > { %v2027_v53 = vshrl.u32 %v6534_v44, 16  ;;  %v2030_v54 = vshll.u32 %v6534_v44, 16  ;;  %v2176_v57 = vsel %vm7720_vm9, %v2024_v48, %v2175_v30  ;;  %v2179_v58 = vsel %vm7499_vm3, %v2025_v49, %v2178_v36  ;;  %v2169_v17 = vld [vmem:[#allocation2 + $0x130] sm:$0xf]  ;;  %v2172_v19 = vld [vmem:[#allocation2 + $0x134] sm:$0x1] }
 0x123   : > { %v6532_v61 = vpack.c.bf16 %v1246_v50, %v1246_v50  ;;  %v6537_v63 = vpack.c.bf16 %v1251_v51, %v1251_v51  ;;  %2177 = vst [vmem:[#allocation2 + $0x138] sm:$0xf] %v2176_v57  ;;  %2180 = vst [vmem:[#allocation2 + $0x13c] sm:$0x1] %v2179_v58  ;;  %v2008_v0 = vor.u32 %v2006_v43, %v2005_v25  ;;  %v2009_v1 = vrot.slane %v2005_v25, 4 }
 0x124   : > { %v2029_v2 = vrot.slane %v2027_v53, 7  ;;  %v6535_v4 = vpack.c.bf16 %v1249_v55, %v1249_v55  ;;  %v2199_v27 = vld [vmem:[#allocation2 + $0x158] sm:$0xf]  ;;  %v2202_v28 = vld [vmem:[#allocation2 + $0x15c] sm:$0x1]  ;;  %v1252_v29 = vmax.f32 %v1066_v45, 0.0  ;;  %v1058_v30 = vadd.f32 %v7689_v18, %v7799_v11 }
 0x125   : > { %v2011_v6 = vshrl.u32 %v6532_v61, 16  ;;  %v2014_v8 = vshll.u32 %v6532_v61, 16  ;;  %v2051_v9 = vshrl.u32 %v6537_v63, 16  ;;  %v2054_v10 = vshll.u32 %v6537_v63, 16  ;;  %v7834_v20 = vpop.f32.mrb[28].mxu0 }
 0x126   : > { %v2164_v12 = vsel %vm7720_vm9, %v2008_v0, %v2163_v59  ;;  %v2167_v13 = vsel %vm7499_vm3, %v2009_v1, %v2166_v60  ;;  %v2032_v15 = vor.u32 %v2030_v54, %v2029_v2  ;;  %v2033_v16 = vrot.slane %v2029_v2, 4  ;;  %v7842_v33 = vpop.f32.mrb[29].mxu0  ;;  %v2187_v51 = vld [vmem:[#allocation2 + $0x148] sm:$0xf]  ;;  %v2190_v25 = vld [vmem:[#allocation2 + $0x14c] sm:$0x1] }
 0x127   : > { %2165 = vst [vmem:[#allocation2 + $0x128] sm:$0xf] %v2164_v12  ;;  %2168 = vst [vmem:[#allocation2 + $0x12c] sm:$0x1] %v2167_v13  ;;  %v2013_v21 = vrot.slane %v2011_v6, 7  ;;  %v2053_v14 = vrot.slane %v2051_v9, 7  ;;  %v6538_v41 = vpack.c.bf16 %v1252_v29, %v1252_v29  ;;  %v1079_v44 = vadd.f32 %v7817_v40, %v7689_v18 }
 0x128   : > { %v2035_v22 = vshrl.u32 %v6535_v4, 16  ;;  %v2038_v23 = vshll.u32 %v6535_v4, 16  ;;  %v2182_v24 = vsel %vm7720_vm9, %v2032_v15, %v2181_v3  ;;  %v2185_v26 = vsel %vm7499_vm3, %v2033_v16, %v2184_v5  ;;  %v7844_v38 = vpop.f32.mrb[30].mxu0  ;;  %v2205_v1 = vld [vmem:[#allocation2 + $0x160] sm:$0xf] }
 0x129   : > { %2183 = vst [vmem:[#allocation2 + $0x140] sm:$0xf] %v2182_v24  ;;  %2186 = vst [vmem:[#allocation2 + $0x144] sm:$0x1] %v2185_v26  ;;  %v2016_v34 = vor.u32 %v2014_v8, %v2013_v21  ;;  %v2017_v35 = vrot.slane %v2013_v21, 4  ;;  %v2056_v36 = vor.u32 %v2054_v10, %v2053_v14  ;;  %v2057_v37 = vrot.slane %v2053_v14, 4 }
 0x12a   : > { %v2037_v39 = vrot.slane %v2035_v22, 7  ;;  %v1250_v43 = vmax.f32 %v1058_v30, 0.0  ;;  %v7848_v45 = vpop.f32.mrb[31].mxu0  ;;  %v2059_v54 = vshrl.u32 %v6538_v41, 16  ;;  %v2062_v55 = vshll.u32 %v6538_v41, 16 }
 0x12b   : > { %v2170_v11 = vsel %vm7720_vm9, %v2016_v34, %v2169_v17  ;;  %v2173_v48 = vsel %vm7499_vm3, %v2017_v35, %v2172_v19  ;;  %v2200_v49 = vsel %vm7720_vm9, %v2056_v36, %v2199_v27  ;;  %v2203_v50 = vsel %vm7499_vm3, %v2057_v37, %v2202_v28  ;;  %v2208_v3 = vld [vmem:[#allocation2 + $0x164] sm:$0x1]  ;;  %v2193_v22 = vld [vmem:[#allocation2 + $0x150] sm:$0xf]  ;;  %v2435_v34 = vld [vmem:[#allocation2 + $0x1cc] sm:$0x1] }
 0x12c   : > { %2171 = vst [vmem:[#allocation2 + $0x130] sm:$0xf] %v2170_v11  ;;  %2174 = vst [vmem:[#allocation2 + $0x134] sm:$0x1] %v2173_v48  ;;  %v2040_v40 = vor.u32 %v2038_v23, %v2037_v39  ;;  %v2041_v53 = vrot.slane %v2037_v39, 4  ;;  %v6536_v57 = vpack.c.bf16 %v1250_v43, %v1250_v43  ;;  %v1255_v58 = vmax.f32 %v1079_v44, 0.0 }
 0x12d   : > { %2201 = vst [vmem:[#allocation2 + $0x158] sm:$0xf] %v2200_v49  ;;  %2204 = vst [vmem:[#allocation2 + $0x15c] sm:$0x1] %v2203_v50  ;;  %v1071_v59 = vadd.f32 %v7689_v18, %v7820_v46  ;;  %v1082_v60 = vadd.f32 %v7822_v52, %v7689_v18  ;;  %v2061_v0 = vrot.slane %v2059_v54, 7  ;;  %v1074_v2 = vadd.f32 %v7689_v18, %v7824_v56  ;;  %v7868_v8 = vpop.f32.mrb[32].mxu0 }
 0x12e   : > { %v2188_v61 = vsel %vm7720_vm9, %v2040_v40, %v2187_v51  ;;  %v2191_v63 = vsel %vm7499_vm3, %v2041_v53, %v2190_v25  ;;  %v2043_v4 = vshrl.u32 %v6536_v57, 16  ;;  %v2046_v5 = vshll.u32 %v6536_v57, 16  ;;  %v7870_v13 = vpop.f32.mrb[33].mxu0  ;;  %v2196_v23 = vld [vmem:[#allocation2 + $0x154] sm:$0x1]  ;;  %v7887_v25 = vld [vmem:[%s8789_s3] sm:$0xff]  }
 0x12f   : > { %2189 = vst [vmem:[#allocation2 + $0x148] sm:$0xf] %v2188_v61  ;;  %2192 = vst [vmem:[#allocation2 + $0x14c] sm:$0x1] %v2191_v63  ;;  %v6541_v46 = vpack.c.bf16 %v1255_v58, %v1255_v58  ;;  %v1253_v6 = vmax.f32 %v1071_v59, 0.0  ;;  %v2064_v52 = vor.u32 %v2062_v55, %v2061_v0  ;;  %v2065_v9 = vrot.slane %v2061_v0, 4  ;;  %7013 = vmatprep.subr.bf16.mxu1 %v7887_v25 }
 0x130   : > { %v1256_v10 = vmax.f32 %v1082_v60, 0.0  ;;  %v1254_v12 = vmax.f32 %v1074_v2, 0.0  ;;  %v2045_v15 = vrot.slane %v2043_v4, 7  ;;  %v7872_v56 = vpop.f32.mrb[34].mxu0  ;;  %v2432_v36 = vld [vmem:[#allocation2 + $0x1c8] sm:$0xf]  ;;  %v1095_v63 = vadd.f32 %v7834_v20, %v7689_v18  ;;  %7015 = vmatpush3.bf16.msra.mxu1 %v7887_v25  ;;  %6813 = vmatprep.subr.bf16.mxu0 %v7887_v25 }
 0x131   : > { %v2276_v16 = vshrl.u32 %v6541_v46, 16  ;;  %v2279_v17 = vshll.u32 %v6541_v46, 16  ;;  %v6539_v19 = vpack.c.bf16 %v1253_v6, %v1253_v6  ;;  %v2206_v21 = vsel %vm7720_vm9, %v2064_v52, %v2205_v1  ;;  %v7878_v27 = vpop.f32.mrb[35].mxu0  ;;  %v2420_v50 = vld [vmem:[#allocation2 + $0x1b8] sm:$0xf] }
 0x132   : > { %v2209_v14 = vsel %vm7499_vm3, %v2065_v9, %v2208_v3  ;;  %v6542_v24 = vpack.c.bf16 %v1256_v10, %v1256_v10  ;;  %v6540_v26 = vpack.c.bf16 %v1254_v12, %v1254_v12  ;;  %2207 = vst [vmem:[#allocation2 + $0x160] sm:$0xf] %v2206_v21  ;;  %v2048_v28 = vor.u32 %v2046_v5, %v2045_v15  ;;  %v2423_v51 = vld [vmem:[#allocation2 + $0x1bc] sm:$0x1]  ;;  %v2438_v54 = vld [vmem:[#allocation2 + $0x1d0] sm:$0xf] }
 0x133   : > { %2210 = vst [vmem:[#allocation2 + $0x164] sm:$0x1] %v2209_v14  ;;  %v2049_v29 = vrot.slane %v2045_v15, 4  ;;  %v2278_v30 = vrot.slane %v2276_v16, 7  ;;  %v2260_v35 = vshrl.u32 %v6539_v19, 16  ;;  %v2263_v37 = vshll.u32 %v6539_v19, 16 }
 0x134   : > { %v2284_v39 = vshrl.u32 %v6542_v24, 16  ;;  %v2287_v41 = vshll.u32 %v6542_v24, 16  ;;  %v2268_v43 = vshrl.u32 %v6540_v26, 16  ;;  %v2194_v44 = vsel %vm7720_vm9, %v2048_v28, %v2193_v22  ;;  %v2441_v60 = vld [vmem:[#allocation2 + $0x1d4] sm:$0x1]  ;;  %v7919_v21 = vld [vmem:[%s8789_s3 + $0x8] sm:$0xff]  }
 0x135   : > { %v2197_v11 = vsel %vm7499_vm3, %v2049_v29, %v2196_v23  ;;  %v2281_v48 = vor.u32 %v2279_v17, %v2278_v30  ;;  %v2282_v49 = vrot.slane %v2278_v30, 4  ;;  %2195 = vst [vmem:[#allocation2 + $0x150] sm:$0xf] %v2194_v44  ;;  %v2262_v40 = vrot.slane %v2260_v35, 7  ;;  %v2426_v61 = vld [vmem:[#allocation2 + $0x1c0] sm:$0xf]  ;;  %7014 = vmatprep.subr.bf16.mxu1 %v7919_v21 }
 0x136   : > { %2198 = vst [vmem:[#allocation2 + $0x154] sm:$0x1] %v2197_v11  ;;  %v2286_v53 = vrot.slane %v2284_v39, 7  ;;  %v2270_v55 = vrot.slane %v2268_v43, 7  ;;  %v2271_v57 = vshll.u32 %v6540_v26, 16  ;;  %v1087_v0 = vadd.f32 %v7689_v18, %v7842_v33  ;;  %v7897_v1 = vpop.f32.mrb[36].mxu0  ;;  %7016 = vmatpush3.bf16.msra.mxu1 %v7919_v21 }
 0x137   : > { %v2433_v58 = vsel %vm7720_vm9, %v2281_v48, %v2432_v36  ;;  %v2436_v59 = vsel %vm7499_vm3, %v2282_v49, %v2435_v34  ;;  %v2265_v2 = vor.u32 %v2263_v37, %v2262_v40  ;;  %v2266_v3 = vrot.slane %v2262_v40, 4  ;;  %v2429_v46 = vld [vmem:[#allocation2 + $0x1c4] sm:$0x1]  ;;  %v7900_v6 = vpop.f32.mrb[37].mxu0  ;;  %v7933_v34 = vld [vmem:[#allocation2 + $0x128] sm:$0xf] }
 0x138   : > { %2434 = vst [vmem:[#allocation2 + $0x1c8] sm:$0xf] %v2433_v58  ;;  %2437 = vst [vmem:[#allocation2 + $0x1cc] sm:$0x1] %v2436_v59  ;;  %v2289_v4 = vor.u32 %v2287_v41, %v2286_v53  ;;  %v2290_v5 = vrot.slane %v2286_v53, 4  ;;  %v2273_v20 = vor.u32 %v2271_v57, %v2270_v55  ;;  %v2274_v52 = vrot.slane %v2270_v55, 4 }
 0x139   : > { %v1259_v33 = vmax.f32 %v1095_v63, 0.0  ;;  %v1257_v9 = vmax.f32 %v1087_v0, 0.0  ;;  %v7904_v10 = vpop.f32.mrb[38].mxu0  ;;  %v2421_v12 = vsel %vm7720_vm9, %v2265_v2, %v2420_v50  ;;  %v2424_v15 = vsel %vm7499_vm3, %v2266_v3, %v2423_v51  ;;  %v2459_v41 = vld [vmem:[#allocation2 + $0x1ec] sm:$0x1]  ;;  %v7274_v40 = vld [vmem:[%s8789_s3 + $0x20] sm:$0xff]  }
 0x13a   : > { %v2439_v16 = vsel %vm7720_vm9, %v2289_v4, %v2438_v54  ;;  %v2442_v17 = vsel %vm7499_vm3, %v2290_v5, %v2441_v60  ;;  %v7914_v19 = vpop.f32.mrb[39].mxu0  ;;  %2422 = vst [vmem:[#allocation2 + $0x1b8] sm:$0xf] %v2421_v12  ;;  %2425 = vst [vmem:[#allocation2 + $0x1bc] sm:$0x1] %v2424_v15  ;;  %v2427_v14 = vsel %vm7720_vm9, %v2273_v20, %v2426_v61  ;;  %v2588_v50 = vshrl.u32 %v7933_v34, 16 }
 0x13b   : > { %2440 = vst [vmem:[#allocation2 + $0x1d0] sm:$0xf] %v2439_v16  ;;  %2443 = vst [vmem:[#allocation2 + $0x1d4] sm:$0x1] %v2442_v17  ;;  %v2430_v22 = vsel %vm7499_vm3, %v2274_v52, %v2429_v46  ;;  %v6545_v23 = vpack.c.bf16 %v1259_v33, %v1259_v33  ;;  %v6543_v24 = vpack.c.bf16 %v1257_v9, %v1257_v9  ;;  %v2447_v43 = vld [vmem:[#allocation2 + $0x1dc] sm:$0x1]  ;;  %6833 = vmatprep.subr.bf16.mxu1 %v7274_v40 }
 0x13c   : > { %2428 = vst [vmem:[#allocation2 + $0x1c0] sm:$0xf] %v2427_v14  ;;  %2431 = vst [vmem:[#allocation2 + $0x1c4] sm:$0x1] %v2430_v22  ;;  %v1098_v26 = vadd.f32 %v7844_v38, %v7689_v18  ;;  %v1090_v28 = vadd.f32 %v7689_v18, %v7848_v45  ;;  %v1111_v29 = vadd.f32 %v7868_v8, %v7689_v18  ;;  %v2456_v38 = vld [vmem:[#allocation2 + $0x1e8] sm:$0xf] }
 0x13d   : > { %v1103_v30 = vadd.f32 %v7689_v18, %v7870_v13  ;;  %v2308_v35 = vshrl.u32 %v6545_v23, 16  ;;  %v2311_v36 = vshll.u32 %v6545_v23, 16  ;;  %v2292_v37 = vshrl.u32 %v6543_v24, 16  ;;  %v7940_v51 = vpop.f32.mrb[40].mxu0  ;;  %v2444_v53 = vld [vmem:[#allocation2 + $0x1d8] sm:$0xf] }
 0x13e   : > { %v2295_v39 = vshll.u32 %v6543_v24, 16  ;;  %v1260_v45 = vmax.f32 %v1098_v26, 0.0  ;;  %v1258_v44 = vmax.f32 %v1090_v28, 0.0  ;;  %v1263_v11 = vmax.f32 %v1111_v29, 0.0  ;;  %v7945_v59 = vpop.f32.mrb[41].mxu0 }
 0x13f   : > { %v1261_v8 = vmax.f32 %v1103_v30, 0.0  ;;  %v2310_v48 = vrot.slane %v2308_v35, 7  ;;  %v2294_v49 = vrot.slane %v2292_v37, 7  ;;  %v1114_v13 = vadd.f32 %v7872_v56, %v7689_v18  ;;  %v7947_v18 = vpop.f32.mrb[42].mxu0  ;;  %v2462_v9 = vld [vmem:[#allocation2 + $0x1f0] sm:$0xf] }
 0x140   : > { %v6546_v54 = vpack.c.bf16 %v1260_v45, %v1260_v45  ;;  %v6544_v55 = vpack.c.bf16 %v1258_v44, %v1258_v44  ;;  %v6549_v57 = vpack.c.bf16 %v1263_v11, %v1263_v11  ;;  %v7949_v5 = vpop.f32.mrb[43].mxu0  ;;  %v2465_v12 = vld [vmem:[#allocation2 + $0x1f4] sm:$0x1]  ;;  %v2450_v17 = vld [vmem:[#allocation2 + $0x1e0] sm:$0xf]  ;;  %v2590_v29 = vrot.slane %v2588_v50, 4 }
 0x141   : > { %v6547_v58 = vpack.c.bf16 %v1261_v8, %v1261_v8  ;;  %v2313_v60 = vor.u32 %v2311_v36, %v2310_v48  ;;  %v2314_v61 = vrot.slane %v2310_v48, 4  ;;  %v2297_v63 = vor.u32 %v2295_v39, %v2294_v49  ;;  %v2453_v23 = vld [vmem:[#allocation2 + $0x1e4] sm:$0x1]  ;;  %v1709_v39 = vld [vmem:[#allocation2 + $0x60] sm:$0xf] }
 0x142   : > { %v2298_v0 = vrot.slane %v2294_v49, 4  ;;  %v2316_v56 = vshrl.u32 %v6546_v54, 16  ;;  %v2319_v2 = vshll.u32 %v6546_v54, 16  ;;  %v2300_v3 = vshrl.u32 %v6544_v55, 16  ;;  %v2541_v8 = vld [vmem:[#allocation2 + $0x12c] sm:$0x1] }
 0x143   : > { %v2303_v4 = vshll.u32 %v6544_v55, 16  ;;  %v2457_v46 = vsel %vm7720_vm9, %v2313_v60, %v2456_v38  ;;  %v2460_v20 = vsel %vm7499_vm3, %v2314_v61, %v2459_v41  ;;  %v2445_v52 = vsel %vm7720_vm9, %v2297_v63, %v2444_v53  ;;  %v1712_v38 = vld [vmem:[#allocation2 + $0x64] sm:$0x1]  ;;  %v1697_v41 = vld [vmem:[#allocation2 + $0x50] sm:$0xf] }
 0x144   : > { %v2448_v33 = vsel %vm7499_vm3, %v2298_v0, %v2447_v43  ;;  %2458 = vst [vmem:[#allocation2 + $0x1e8] sm:$0xf] %v2457_v46  ;;  %2461 = vst [vmem:[#allocation2 + $0x1ec] sm:$0x1] %v2460_v20  ;;  %v2318_v15 = vrot.slane %v2316_v56, 7  ;;  %v2302_v16 = vrot.slane %v2300_v3, 7 }
 0x145   : > { %2446 = vst [vmem:[#allocation2 + $0x1d8] sm:$0xf] %v2445_v52  ;;  %2449 = vst [vmem:[#allocation2 + $0x1dc] sm:$0x1] %v2448_v33  ;;  %v1566_v14 = vshrl.u32 %v6549_v57, 16  ;;  %v1569_v22 = vshll.u32 %v6549_v57, 16 }
 0x146   : > { %v1550_v24 = vshrl.u32 %v6547_v58, 16  ;;  %v1553_v26 = vshll.u32 %v6547_v58, 16  ;;  %v1264_v28 = vmax.f32 %v1114_v13, 0.0  ;;  %v2321_v30 = vor.u32 %v2319_v2, %v2318_v15  ;;  %v1700_v43 = vld [vmem:[#allocation2 + $0x54] sm:$0x1]  ;;  %v7960_v49 = vpop.f32.mrb[44].mxu0 }
 0x147   : > { %v2322_v35 = vrot.slane %v2318_v15, 4  ;;  %v2305_v36 = vor.u32 %v2303_v4, %v2302_v16  ;;  %v2306_v37 = vrot.slane %v2302_v16, 4  ;;  %v1568_v45 = vrot.slane %v1566_v14, 7  ;;  %v2542_v54 = vld [vmem:[#allocation2 + $0x130] sm:$0xf]  ;;  %v7972_v57 = vpop.f32.mrb[45].mxu0 }
 0x148   : > { %v1552_v44 = vrot.slane %v1550_v24, 7  ;;  %v6550_v11 = vpack.c.bf16 %v1264_v28, %v1264_v28  ;;  %v2591_v48 = vshll.u32 %v7933_v34, 16  ;;  %v2463_v13 = vsel %vm7720_vm9, %v2321_v30, %v2462_v9  ;;  %v7970_v55 = vld [vmem:[#allocation2 + $0x138] sm:$0xf]  ;;  %v2543_v63 = vld [vmem:[#allocation2 + $0x134] sm:$0x1] }
 0x149   : > { %v2466_v50 = vsel %vm7499_vm3, %v2322_v35, %v2465_v12  ;;  %v2451_v40 = vsel %vm7720_vm9, %v2305_v36, %v2450_v17  ;;  %v2454_v53 = vsel %vm7499_vm3, %v2306_v37, %v2453_v23  ;;  %2464 = vst [vmem:[#allocation2 + $0x1f0] sm:$0xf] %v2463_v13  ;;  %v1571_v34 = vor.u32 %v1569_v22, %v1568_v45  ;;  %v7974_v0 = vpop.f32.mrb[46].mxu0  ;;  %v1715_v15 = vld [vmem:[#allocation2 + $0x68] sm:$0xf] }
 0x14a   : > { %2467 = vst [vmem:[#allocation2 + $0x1f4] sm:$0x1] %v2466_v50  ;;  %2452 = vst [vmem:[#allocation2 + $0x1e0] sm:$0xf] %v2451_v40  ;;  %v1572_v58 = vrot.slane %v1568_v45, 4  ;;  %v1555_v60 = vor.u32 %v1553_v26, %v1552_v44  ;;  %v1556_v61 = vrot.slane %v1552_v44, 4 }
 0x14b   : > { %2455 = vst [vmem:[#allocation2 + $0x1e4] sm:$0x1] %v2454_v53  ;;  %v1574_v56 = vshrl.u32 %v6550_v11, 16  ;;  %v1577_v2 = vshll.u32 %v6550_v11, 16  ;;  %v2593_v3 = vrot.slane %v2591_v48, 5  ;;  %v2597_v4 = vshll.u32 %v2541_v8, 16 }
 0x14c   : > { %v7976_v46 = vpop.f32.mrb[47].mxu0  ;;  %v1710_v20 = vsel %vm7720_vm9, %v1571_v34, %v1709_v39  ;;  %v1713_v52 = vsel %vm7499_vm3, %v1572_v58, %v1712_v38  ;;  %v1698_v33 = vsel %vm7720_vm9, %v1555_v60, %v1697_v41  ;;  %v1701_v9 = vsel %vm7499_vm3, %v1556_v61, %v1700_v43  ;;  %v7989_v14 = vld [vmem:[%s8788_s2] ss:$0 sm:$0xff]  ;;  %v1718_v23 = vld [vmem:[#allocation2 + $0x6c] sm:$0x1] }
 0x14d   : > { %1711 = vst [vmem:[#allocation2 + $0x60] sm:$0xf] %v1710_v20  ;;  %1714 = vst [vmem:[#allocation2 + $0x64] sm:$0x1] %v1713_v52  ;;  %v1576_v12 = vrot.slane %v1574_v56, 7  ;;  %v2594_v16 = vor.u32 %v2593_v3, %v2590_v29  ;;  %v2599_v17 = vrot.slane %v2597_v4, 5  ;;  %v1106_v22 = vadd.f32 %v7989_v14, %v7878_v27 }
 0x14e   : > { %1699 = vst [vmem:[#allocation2 + $0x50] sm:$0xf] %v1698_v33  ;;  %1702 = vst [vmem:[#allocation2 + $0x54] sm:$0x1] %v1701_v9  ;;  %v2602_v24 = vshrl.u32 %v2542_v54, 16  ;;  %v2605_v26 = vshll.u32 %v2542_v54, 16  ;;  %v1119_v56 = vadd.f32 %v7989_v14, %v7900_v6  ;;  %v1130_v4 = vadd.f32 %v7989_v14, %v7904_v10 }
 0x14f   : > { %v2611_v28 = vshll.u32 %v2543_v63, 16  ;;  %v2616_v30 = vshrl.u32 %v7970_v55, 16  ;;  %v1579_v35 = vor.u32 %v1577_v2, %v1576_v12  ;;  %v1580_v36 = vrot.slane %v1576_v12, 4  ;;  %v2545_v29 = vld [vmem:[#allocation2 + $0x13c] sm:$0x1]  ;;  %v7994_v44 = vpop.f32.mrb[48].mxu0 }
 0x150   : > { %v2595_v37 = vrot.slane %v2594_v16, 4  ;;  %v1262_v39 = vmax.f32 %v1106_v22, 0.0  ;;  %v2604_v38 = vrot.slane %v2602_v24, 4  ;;  %v2607_v41 = vrot.slane %v2605_v26, 5  ;;  %v8002_v13 = vpop.f32.mrb[49].mxu0 }
 0x151   : > { %v2613_v43 = vrot.slane %v2611_v28, 5  ;;  %v2618_v45 = vrot.slane %v2616_v30, 4  ;;  %v1716_v27 = vsel %vm7720_vm9, %v1579_v35, %v1715_v15  ;;  %v1719_v11 = vsel %vm7499_vm3, %v1580_v36, %v1718_v23  ;;  %v2546_v34 = vld [vmem:[#allocation2 + $0x140] sm:$0xf]  ;;  %v8010_v58 = vpop.f32.mrb[50].mxu0 }
 0x152   : > { %v2600_v8 = vsel %vm7705_vm8, %v2595_v37, %v2599_v17  ;;  %v6548_v48 = vpack.c.bf16 %v1262_v39, %v1262_v39  ;;  %1717 = vst [vmem:[#allocation2 + $0x68] sm:$0xf] %v1716_v27  ;;  %1720 = vst [vmem:[#allocation2 + $0x6c] sm:$0x1] %v1719_v11  ;;  %v2608_v40 = vor.u32 %v2607_v41, %v2604_v38  ;;  %v2619_v53 = vshll.u32 %v7970_v55, 16  ;;  %v8016_v2 = vpop.f32.mrb[51].mxu0 }
 0x153   : > { %v6295_v50 = vcombine.low %v2586_v47, %v2600_v8  ;;  %v2625_v54 = vshll.u32 %v2545_v29, 16  ;;  %v1127_v63 = vadd.f32 %v7989_v14, %v7897_v1  ;;  %v1265_v33 = vmax.f32 %v1119_v56, 0.0  ;;  %v2547_v24 = vld [vmem:[#allocation2 + $0x144] sm:$0x1]  ;;  %v2548_v38 = vld [vmem:[#allocation2 + $0x148] sm:$0xf] }
 0x154   : > { %v1558_v60 = vshrl.u32 %v6548_v48, 16  ;;  %v1561_v61 = vshll.u32 %v6548_v48, 16  ;;  %v2609_v47 = vrot.slane %v2608_v40, 4  ;;  %v2621_v55 = vrot.slane %v2619_v53, 5  ;;  %v1736_v27 = vld [vmem:[#allocation2 + $0x84] sm:$0x1] }
 0x155   : > { %6797 = vmatprep.mubr.msk.bf16.mxu0 %vm843_vm2, %v6295_v50  ;;  %v2627_v3 = vrot.slane %v2625_v54, 5  ;;  %v1267_v52 = vmax.f32 %v1127_v63, 0.0  ;;  %v2630_v9 = vshrl.u32 %v2546_v34, 16  ;;  %v1268_v12 = vmax.f32 %v1130_v4, 0.0  ;;  %v8023_v10 = vpop.f32.mrb[52].mxu0 }
 0x156   : > { %v1560_v20 = vrot.slane %v1558_v60, 7  ;;  %v2614_v1 = vsel %vm7705_vm8, %v2609_v47, %v2613_v43  ;;  %v2622_v6 = vor.u32 %v2621_v55, %v2618_v45  ;;  %v2633_v15 = vshll.u32 %v2546_v34, 16  ;;  %v8029_v41 = vpop.f32.mrb[53].mxu0  ;;  %v1733_v45 = vld [vmem:[#allocation2 + $0x80] sm:$0xf] }
 0x157   : > { %v6553_v22 = vpack.c.bf16 %v1267_v52, %v1267_v52  ;;  %v6551_v23 = vpack.c.bf16 %v1265_v33, %v1265_v33  ;;  %v6554_v28 = vpack.c.bf16 %v1268_v12, %v1268_v12  ;;  %v2632_v30 = vrot.slane %v2630_v9, 4  ;;  %v8033_v50 = vpop.f32.mrb[54].mxu0  ;;  %v1724_v54 = vld [vmem:[#allocation2 + $0x74] sm:$0x1]  ;;  %v1742_v60 = vld [vmem:[#allocation2 + $0x8c] sm:$0x1] }
 0x158   : > { %v1563_v16 = vor.u32 %v1561_v61, %v1560_v20  ;;  %v1564_v17 = vrot.slane %v1560_v20, 4  ;;  %v2623_v26 = vrot.slane %v2622_v6, 4  ;;  %v2635_v35 = vrot.slane %v2633_v15, 5  ;;  %v8035_v63 = vpop.f32.mrb[55].mxu0  ;;  %v1739_v20 = vld [vmem:[#allocation2 + $0x88] sm:$0xf] }
 0x159   : > { %v1598_v39 = vshrl.u32 %v6553_v22, 16  ;;  %v1601_v29 = vshll.u32 %v6553_v22, 16  ;;  %v1582_v11 = vshrl.u32 %v6551_v23, 16  ;;  %v1585_v8 = vshll.u32 %v6551_v23, 16  ;;  %v2549_v15 = vld [vmem:[#allocation2 + $0x14c] sm:$0x1] }
 0x15a   : > { %v1704_v36 = vsel %vm7720_vm9, %v1563_v16, %v1703_v31  ;;  %v1707_v37 = vsel %vm7499_vm3, %v1564_v17, %v1706_v32  ;;  %v2628_v43 = vsel %vm7705_vm8, %v2623_v26, %v2627_v3  ;;  %v1606_v48 = vshrl.u32 %v6554_v28, 16  ;;  %v1721_v31 = vld [vmem:[#allocation2 + $0x70] sm:$0xf]  ;;  %v2552_v16 = vld [vmem:[#allocation2 + $0x158] sm:$0xf] }
 0x15b   : > { %1705 = vst [vmem:[#allocation2 + $0x58] sm:$0xf] %v1704_v36  ;;  %1708 = vst [vmem:[#allocation2 + $0x5c] sm:$0x1] %v1707_v37  ;;  %v6296_v40 = vcombine.low %v2614_v1, %v2628_v43  ;;  %v1600_v53 = vrot.slane %v1598_v39, 7  ;;  %v1609_v34 = vshll.u32 %v6554_v28, 16  ;;  %v2636_v61 = vor.u32 %v2635_v35, %v2632_v30 }
 0x15c   : > { %v1584_v56 = vrot.slane %v1582_v11, 7  ;;  %v1608_v32 = vrot.slane %v1606_v48, 7  ;;  %v2639_v47 = vshll.u32 %v2547_v24, 16  ;;  %v2644_v55 = vshrl.u32 %v2548_v38, 16  ;;  %v2550_v26 = vld [vmem:[#allocation2 + $0x150] sm:$0xf] }
 0x15d   : > { %6798 = vmatmul.mubr.msk.bf16.vlgmr.msra.gmra.mrb[64].mxu0 %vm843_vm2, %v6296_v40  ;;  %v1603_v3 = vor.u32 %v1601_v29, %v1600_v53  ;;  %v1604_v4 = vrot.slane %v1600_v53, 4  ;;  %v2637_v52 = vrot.slane %v2636_v61, 4  ;;  %v2647_v33 = vshll.u32 %v2548_v38, 16  ;;  %v2551_v28 = vld [vmem:[#allocation2 + $0x154] sm:$0x1]  ;;  %v8052_v37 = vpop.f32.mrb[56].mxu0 }
 0x15e   : > { %v1587_v9 = vor.u32 %v1585_v8, %v1584_v56  ;;  %v1588_v1 = vrot.slane %v1584_v56, 4  ;;  %v1611_v6 = vor.u32 %v1609_v34, %v1608_v32  ;;  %v1612_v12 = vrot.slane %v1608_v32, 4  ;;  %6814 = vmatpush3.bf16.msra.mxu0 %v7887_v25 }
 0x15f   : > { %v1734_v17 = vsel %vm7720_vm9, %v1603_v3, %v1733_v45  ;;  %v1737_v22 = vsel %vm7499_vm3, %v1604_v4, %v1736_v27  ;;  %v2641_v23 = vrot.slane %v2639_v47, 5  ;;  %v2646_v24 = vrot.slane %v2644_v55, 4  ;;  %6815 = vmatprep.subr.bf16.mxu0 %v7919_v21  ;;  %v2553_v45 = vld [vmem:[#allocation2 + $0x15c] sm:$0x1]  ;;  %v8058_v27 = vpop.f32.mrb[57].mxu0 }
 0x160   : > { %1735 = vst [vmem:[#allocation2 + $0x80] sm:$0xf] %v1734_v17  ;;  %1738 = vst [vmem:[#allocation2 + $0x84] sm:$0x1] %v1737_v22  ;;  %v1722_v30 = vsel %vm7720_vm9, %v1587_v9, %v1721_v31  ;;  %v1725_v25 = vsel %vm7499_vm3, %v1588_v1, %v1724_v54  ;;  %v1740_v35 = vsel %vm7720_vm9, %v1611_v6, %v1739_v20  ;;  %v2649_v29 = vrot.slane %v2647_v33, 5  ;;  %v8060_v53 = vpop.f32.mrb[58].mxu0 }
 0x161   : > { %v1743_v36 = vsel %vm7499_vm3, %v1612_v12, %v1742_v60  ;;  %1723 = vst [vmem:[#allocation2 + $0x70] sm:$0xf] %v1722_v30  ;;  %1726 = vst [vmem:[#allocation2 + $0x74] sm:$0x1] %v1725_v25  ;;  %v2642_v39 = vsel %vm7705_vm8, %v2637_v52, %v2641_v23  ;;  %v2653_v38 = vshll.u32 %v2549_v15, 16  ;;  %v1122_v43 = vadd.f32 %v7989_v14, %v7914_v19  ;;  %v8063_v56 = vpop.f32.mrb[59].mxu0 }
 0x162   : > { %1741 = vst [vmem:[#allocation2 + $0x88] sm:$0xf] %v1740_v35  ;;  %1744 = vst [vmem:[#allocation2 + $0x8c] sm:$0x1] %v1743_v36  ;;  %v2658_v11 = vshrl.u32 %v2550_v26, 16  ;;  %v2661_v8 = vshll.u32 %v2550_v26, 16  ;;  %6816 = vmatpush3.bf16.msra.mxu0 %v7919_v21  ;;  %v2650_v54 = vor.u32 %v2649_v29, %v2646_v24  ;;  %v1143_v33 = vadd.f32 %v7989_v14, %v7940_v51 }
 0x163   : > { %v2667_v48 = vshll.u32 %v2551_v28, 16  ;;  %v2672_v40 = vshrl.u32 %v2552_v16, 16  ;;  %v2655_v34 = vrot.slane %v2653_v38, 5  ;;  %v1266_v60 = vmax.f32 %v1122_v43, 0.0  ;;  %v1730_v25 = vld [vmem:[#allocation2 + $0x7c] sm:$0x1] }
 0x164   : > { %v2675_v61 = vshll.u32 %v2552_v16, 16  ;;  %v2660_v31 = vrot.slane %v2658_v11, 4  ;;  %v2663_v32 = vrot.slane %v2661_v8, 5  ;;  %v2651_v55 = vrot.slane %v2650_v54, 4 }
 0x165   : > { %v2669_v19 = vrot.slane %v2667_v48, 5  ;;  %v2674_v47 = vrot.slane %v2672_v40, 4  ;;  %v6552_v3 = vpack.c.bf16 %v1266_v60, %v1266_v60  ;;  %v2681_v20 = vshll.u32 %v2553_v45, 16  ;;  %v8073_v24 = vpop.f32.mrb[60].mxu0 }
 0x166   : > { %v2677_v4 = vrot.slane %v2675_v61, 5  ;;  %v2664_v52 = vor.u32 %v2663_v32, %v2660_v31  ;;  %v1135_v21 = vadd.f32 %v7989_v14, %v7945_v59  ;;  %v1146_v9 = vadd.f32 %v7989_v14, %v7947_v18  ;;  %v8075_v59 = vpop.f32.mrb[61].mxu0  ;;  %v1727_v18 = vld [vmem:[#allocation2 + $0x78] sm:$0xf] }
 0x167   : > { %v2656_v1 = vsel %vm7705_vm8, %v2651_v55, %v2655_v34  ;;  %v1590_v6 = vshrl.u32 %v6552_v3, 16  ;;  %v1593_v12 = vshll.u32 %v6552_v3, 16  ;;  %v2683_v22 = vrot.slane %v2681_v20, 5  ;;  %v8084_v38 = vpop.f32.mrb[62].mxu0  ;;  %v479_v61 = vld [vmem:[#allocation2 + $0x118] sm:$0x1] }
 0x168   : > { %v2678_v15 = vor.u32 %v2677_v4, %v2674_v47  ;;  %v6297_v16 = vcombine.low %v2642_v39, %v2656_v1  ;;  %v2665_v17 = vrot.slane %v2664_v52, 4  ;;  %v1271_v23 = vmax.f32 %v1143_v33, 0.0  ;;  %v8088_v48 = vpop.f32.mrb[63].mxu0  ;;  %v1969_v47 = vld [vmem:[#allocation2 + $0xf4] sm:$0x1] }
 0x169   : > { %v1592_v26 = vrot.slane %v1590_v6, 7  ;;  %v1269_v28 = vmax.f32 %v1135_v21, 0.0  ;;  %v1272_v30 = vmax.f32 %v1146_v9, 0.0  ;;  %v1138_v39 = vadd.f32 %v7989_v14, %v7949_v5  ;;  %v1966_v20 = vld [vmem:[#allocation2 + $0xf0] sm:$0xf] }
 0x16a   : > { %v2679_v51 = vrot.slane %v2678_v15, 4  ;;  %6801 = vmatprep.mubr.msk.bf16.mxu0 %vm843_vm2, %v6297_v16  ;;  %v2670_v35 = vsel %vm7705_vm8, %v2665_v17, %v2669_v19  ;;  %v6557_v36 = vpack.c.bf16 %v1271_v23, %v1271_v23  ;;  %v1159_v29 = vadd.f32 %v7989_v14, %v7960_v49  ;;  %v1957_v15 = vld [vmem:[#allocation2 + $0xe4] sm:$0x1] }
 0x16b   : > { %v1595_v43 = vor.u32 %v1593_v12, %v1592_v26  ;;  %v1596_v45 = vrot.slane %v1592_v26, 4  ;;  %v6555_v8 = vpack.c.bf16 %v1269_v28, %v1269_v28  ;;  %v6558_v60 = vpack.c.bf16 %v1272_v30, %v1272_v30  ;;  %v1954_v12 = vld [vmem:[#allocation2 + $0xe0] sm:$0xf]  ;;  %v1972_v26 = vld [vmem:[#allocation2 + $0xf8] sm:$0xf] }
 0x16c   : > { %v2684_v11 = vsel %vm7705_vm8, %v2679_v51, %v2683_v22  ;;  %v1826_v54 = vshrl.u32 %v6557_v36, 16  ;;  %v1829_v34 = vshll.u32 %v6557_v36, 16  ;;  %v1270_v4 = vmax.f32 %v1138_v39, 0.0  ;;  %v1975_v51 = vld [vmem:[#allocation2 + $0xfc] sm:$0x1] }
 0x16d   : > { %v6298_v40 = vcombine.low %v2670_v35, %v2684_v11  ;;  %v1728_v5 = vsel %vm7720_vm9, %v1595_v43, %v1727_v18  ;;  %v1731_v49 = vsel %vm7499_vm3, %v1596_v45, %v1730_v25  ;;  %v1810_v31 = vshrl.u32 %v6555_v8, 16  ;;  %v473_v36 = vld [vmem:[#allocation2 + $0x108] sm:$0x1]  ;;  %v518_v11 = vld [vmem:[#allocation2 + $0x180] sm:$0x1] }
 0x16e   : > { %v1813_v32 = vshll.u32 %v6555_v8, 16  ;;  %1729 = vst [vmem:[#allocation2 + $0x78] sm:$0xf] %v1728_v5  ;;  %1732 = vst [vmem:[#allocation2 + $0x7c] sm:$0x1] %v1731_v49  ;;  %v1828_v19 = vrot.slane %v1826_v54, 7  ;;  %v1151_v21 = vadd.f32 %v7989_v14, %v7972_v57  ;;  %v6556_v17 = vpack.c.bf16 %v1270_v4, %v1270_v4 }
 0x16f   : > { %6802 = vmatmul.mubr.msk.bf16.gmra.mrb[68].mxu0 %vm843_vm2, %v6298_v40  ;;  %v1834_v55 = vshrl.u32 %v6558_v60, 16  ;;  %v1837_v3 = vshll.u32 %v6558_v60, 16  ;;  %v1812_v52 = vrot.slane %v1810_v31, 7  ;;  %v1275_v33 = vmax.f32 %v1159_v29, 0.0 }
 0x170   : > { %v480_v9 = vsel %vm7499_vm3, 0, %v479_v61  ;;  %v1831_v1 = vor.u32 %v1829_v34, %v1828_v19  ;;  %v1832_v6 = vrot.slane %v1828_v19, 4  ;;  %v1273_v30 = vmax.f32 %v1151_v21, 0.0  ;;  %v1963_v61 = vld [vmem:[#allocation2 + $0xec] sm:$0x1] }
 0x171   : > { %v1836_v16 = vrot.slane %v1834_v55, 7  ;;  %481 = vst [vmem:[#allocation2 + $0x118] sm:$0x1] %v480_v9  ;;  %v1815_v22 = vor.u32 %v1813_v32, %v1812_v52  ;;  %v1816_v23 = vrot.slane %v1812_v52, 4  ;;  %v6561_v28 = vpack.c.bf16 %v1275_v33, %v1275_v33  ;;  %v1960_v32 = vld [vmem:[#allocation2 + $0xe8] sm:$0xf] }
 0x172   : > { %v1967_v18 = vsel %vm7720_vm9, %v1831_v1, %v1966_v20  ;;  %v1970_v57 = vsel %vm7499_vm3, %v1832_v6, %v1969_v47  ;;  %v1818_v43 = vshrl.u32 %v6556_v17, 16  ;;  %v1821_v45 = vshll.u32 %v6556_v17, 16  ;;  %v1993_v47 = vld [vmem:[#allocation2 + $0x114] sm:$0x1]  ;;  %v1990_v33 = vld [vmem:[#allocation2 + $0x110] sm:$0xf] }
 0x173   : > { %v1839_v25 = vor.u32 %v1837_v3, %v1836_v16  ;;  %v1840_v35 = vrot.slane %v1836_v16, 4  ;;  %1968 = vst [vmem:[#allocation2 + $0xf0] sm:$0xf] %v1967_v18  ;;  %1971 = vst [vmem:[#allocation2 + $0xf4] sm:$0x1] %v1970_v57  ;;  %v1955_v39 = vsel %vm7720_vm9, %v1815_v22, %v1954_v12  ;;  %v1958_v29 = vsel %vm7499_vm3, %v1816_v23, %v1957_v15 }
 0x174   : > { %1956 = vst [vmem:[#allocation2 + $0xe0] sm:$0xf] %v1955_v39  ;;  %1959 = vst [vmem:[#allocation2 + $0xe4] sm:$0x1] %v1958_v29  ;;  %v1858_v54 = vshrl.u32 %v6561_v28, 16  ;;  %v1861_v34 = vshll.u32 %v6561_v28, 16  ;;  %v6559_v5 = vpack.c.bf16 %v1273_v30, %v1273_v30  ;;  %v1162_v49 = vadd.f32 %v7989_v14, %v7974_v0 }
 0x175   : > { %v1973_v8 = vsel %vm7720_vm9, %v1839_v25, %v1972_v26  ;;  %v1976_v40 = vsel %vm7499_vm3, %v1840_v35, %v1975_v51  ;;  %v1820_v60 = vrot.slane %v1818_v43, 7  ;;  %v474_v31 = vsel %vm7499_vm3, 0, %v473_v36  ;;  %v512_v15 = vld [vmem:[#allocation2 + $0x170] sm:$0x1]  ;;  %v1981_v22 = vld [vmem:[#allocation2 + $0x104] sm:$0x1] }
 0x176   : > { %1974 = vst [vmem:[#allocation2 + $0xf8] sm:$0xf] %v1973_v8  ;;  %1977 = vst [vmem:[#allocation2 + $0xfc] sm:$0x1] %v1976_v40  ;;  %v1860_v19 = vrot.slane %v1858_v54, 7  ;;  %v1154_v55 = vadd.f32 %v7989_v14, %v7976_v46  ;;  %v519_v3 = vsel %vm7499_vm3, 0, %v518_v11  ;;  %v1175_v4 = vadd.f32 %v7989_v14, %v7994_v44 }
 0x177   : > { %475 = vst [vmem:[#allocation2 + $0x108] sm:$0x1] %v474_v31  ;;  %v1823_v20 = vor.u32 %v1821_v45, %v1820_v60  ;;  %v1824_v52 = vrot.slane %v1820_v60, 4  ;;  %v1842_v0 = vshrl.u32 %v6559_v5, 16  ;;  %v1845_v21 = vshll.u32 %v6559_v5, 16 }
 0x178   : > { %520 = vst [vmem:[#allocation2 + $0x180] sm:$0x1] %v519_v3  ;;  %v1863_v9 = vor.u32 %v1861_v34, %v1860_v19  ;;  %v1864_v1 = vrot.slane %v1860_v19, 4  ;;  %v1276_v6 = vmax.f32 %v1162_v49, 0.0  ;;  %v1274_v12 = vmax.f32 %v1154_v55, 0.0 }
 0x179   : > { %v1961_v46 = vsel %vm7720_vm9, %v1823_v20, %v1960_v32  ;;  %v1964_v16 = vsel %vm7499_vm3, %v1824_v52, %v1963_v61  ;;  %v1844_v17 = vrot.slane %v1842_v0, 7  ;;  %v1279_v44 = vmax.f32 %v1175_v4, 0.0  ;;  %v1978_v51 = vld [vmem:[#allocation2 + $0x100] sm:$0xf]  ;;  %v521_v18 = vld [vmem:[#allocation2 + $0x188] sm:$0x1] }
 0x17a   : > { %1962 = vst [vmem:[#allocation2 + $0xe8] sm:$0xf] %v1961_v46  ;;  %1965 = vst [vmem:[#allocation2 + $0xec] sm:$0x1] %v1964_v16  ;;  %v1991_v23 = vsel %vm7720_vm9, %v1863_v9, %v1990_v33  ;;  %v1994_v26 = vsel %vm7499_vm3, %v1864_v1, %v1993_v47  ;;  %v6562_v28 = vpack.c.bf16 %v1276_v6, %v1276_v6  ;;  %v513_v36 = vsel %vm7499_vm3, 0, %v512_v15 }
 0x17b   : > { %v6560_v30 = vpack.c.bf16 %v1274_v12, %v1274_v12  ;;  %1992 = vst [vmem:[#allocation2 + $0x110] sm:$0xf] %v1991_v23  ;;  %1995 = vst [vmem:[#allocation2 + $0x114] sm:$0x1] %v1994_v26  ;;  %v1847_v57 = vor.u32 %v1845_v21, %v1844_v17  ;;  %v1848_v25 = vrot.slane %v1844_v17, 4  ;;  %v6565_v35 = vpack.c.bf16 %v1279_v44, %v1279_v44 }
 0x17c   : > { %v515_v39 = vld [vmem:[#allocation2 + $0x178] sm:$0x1]  ;;  %v1866_v29 = vshrl.u32 %v6562_v28, 16  ;;  %v1869_v43 = vshll.u32 %v6562_v28, 16  ;;  %514 = vst [vmem:[#allocation2 + $0x170] sm:$0x1] %v513_v36  ;;  %v1167_v32 = vadd.f32 %v7989_v14, %v8002_v13  ;;  %v1178_v4 = vadd.f32 %v7989_v14, %v8010_v58 }
 0x17d   : > { %v1850_v45 = vshrl.u32 %v6560_v30, 16  ;;  %v1853_v11 = vshll.u32 %v6560_v30, 16  ;;  %v1979_v8 = vsel %vm7720_vm9, %v1847_v57, %v1978_v51  ;;  %v1982_v40 = vsel %vm7499_vm3, %v1848_v25, %v1981_v22  ;;  %v1999_v54 = vld [vmem:[#allocation2 + $0x11c] sm:$0x1]  ;;  %v1987_v34 = vld [vmem:[#allocation2 + $0x10c] sm:$0x1] }
 0x17e   : > { %v2083_v60 = vshrl.u32 %v6565_v35, 16  ;;  %v2086_v61 = vshll.u32 %v6565_v35, 16  ;;  %1980 = vst [vmem:[#allocation2 + $0x100] sm:$0xf] %v1979_v8  ;;  %1983 = vst [vmem:[#allocation2 + $0x104] sm:$0x1] %v1982_v40  ;;  %v1170_v52 = vadd.f32 %v7989_v14, %v8016_v2  ;;  %v1191_v57 = vadd.f32 %v7989_v14, %v8023_v10 }
 0x17f   : > { %v1868_v5 = vrot.slane %v1866_v29, 7  ;;  %v1852_v49 = vrot.slane %v1850_v45, 7  ;;  %v2226_v31 = vld [vmem:[#allocation2 + $0x184] sm:$0x1]  ;;  %v522_v19 = vsel %vm7499_vm3, 0, %v521_v18  ;;  %v516_v20 = vsel %vm7499_vm3, 0, %v515_v39 }
 0x180   : > { %v1996_v47 = vld [vmem:[#allocation2 + $0x118] sm:$0xf]  ;;  %v1984_v55 = vld [vmem:[#allocation2 + $0x108] sm:$0xf]  ;;  %v2085_v3 = vrot.slane %v2083_v60, 7  ;;  %v1277_v46 = vmax.f32 %v1167_v32, 0.0 }
 0x181   : > { %523 = vst [vmem:[#allocation2 + $0x188] sm:$0x1] %v522_v19  ;;  %v530_v33 = vld [vmem:[#allocation2 + $0x1a0] sm:$0x1]  ;;  %v1871_v0 = vor.u32 %v1869_v43, %v1868_v5  ;;  %v1872_v21 = vrot.slane %v1868_v5, 4  ;;  %v1855_v13 = vor.u32 %v1853_v11, %v1852_v49  ;;  %v1856_v9 = vrot.slane %v1852_v49, 4 }
 0x182   : > { %v2223_v1 = vld [vmem:[#allocation2 + $0x180] sm:$0xf]  ;;  %517 = vst [vmem:[#allocation2 + $0x178] sm:$0x1] %v516_v20  ;;  %v524_v6 = vld [vmem:[#allocation2 + $0x190] sm:$0x1]  ;;  %v2088_v12 = vor.u32 %v2086_v61, %v2085_v3  ;;  %v6563_v26 = vpack.c.bf16 %v1277_v46, %v1277_v46  ;;  %v1194_v5 = vadd.f32 %v7989_v14, %v8033_v50 }
 0x183   : > { %v2089_v15 = vrot.slane %v2085_v3, 4  ;;  %v1280_v16 = vmax.f32 %v1178_v4, 0.0  ;;  %v1997_v58 = vsel %vm7720_vm9, %v1871_v0, %v1996_v47  ;;  %v2000_v17 = vsel %vm7499_vm3, %v1872_v21, %v1999_v54  ;;  %v533_v28 = vld [vmem:[#allocation2 + $0x1a8] sm:$0x1]  ;;  %v527_v35 = vld [vmem:[#allocation2 + $0x198] sm:$0x1] }
 0x184   : > { %v1985_v2 = vsel %vm7720_vm9, %v1855_v13, %v1984_v55  ;;  %v1988_v22 = vsel %vm7499_vm3, %v1856_v9, %v1987_v34  ;;  %1998 = vst [vmem:[#allocation2 + $0x118] sm:$0xf] %v1997_v58  ;;  %2001 = vst [vmem:[#allocation2 + $0x11c] sm:$0x1] %v2000_v17  ;;  %v2224_v44 = vsel %vm7720_vm9, %v2088_v12, %v2223_v1  ;;  %v1278_v30 = vmax.f32 %v1170_v52, 0.0 }
 0x185   : > { %1986 = vst [vmem:[#allocation2 + $0x108] sm:$0xf] %v1985_v2  ;;  %1989 = vst [vmem:[#allocation2 + $0x10c] sm:$0x1] %v1988_v22  ;;  %v2227_v23 = vsel %vm7499_vm3, %v2089_v15, %v2226_v31  ;;  %v6566_v51 = vpack.c.bf16 %v1280_v16, %v1280_v16  ;;  %v531_v18 = vsel %vm7499_vm3, 0, %v530_v33  ;;  %v525_v25 = vsel %vm7499_vm3, 0, %v524_v6 }
 0x186   : > { %2225 = vst [vmem:[#allocation2 + $0x180] sm:$0xf] %v2224_v44  ;;  %2228 = vst [vmem:[#allocation2 + $0x184] sm:$0x1] %v2227_v23  ;;  %v2067_v36 = vshrl.u32 %v6563_v26, 16  ;;  %v2070_v39 = vshll.u32 %v6563_v26, 16  ;;  %v6564_v8 = vpack.c.bf16 %v1278_v30, %v1278_v30  ;;  %v1183_v54 = vadd.f32 %v7989_v14, %v8029_v41 }
 0x187   : > { %v2091_v29 = vshrl.u32 %v6566_v51, 16  ;;  %v2094_v43 = vshll.u32 %v6566_v51, 16  ;;  %532 = vst [vmem:[#allocation2 + $0x1a0] sm:$0x1] %v531_v18  ;;  %526 = vst [vmem:[#allocation2 + $0x190] sm:$0x1] %v525_v25  ;;  %v1186_v51 = vadd.f32 %v7989_v14, %v8035_v63  ;;  %v1207_v63 = vadd.f32 %v7989_v14, %v8052_v37 }
 0x188   : > { %v2214_v45 = vld [vmem:[#allocation2 + $0x174] sm:$0x1]  ;;  %v2232_v11 = vld [vmem:[#allocation2 + $0x18c] sm:$0x1]  ;;  %v1283_v40 = vmax.f32 %v1191_v57, 0.0  ;;  %v534_v10 = vsel %vm7499_vm3, 0, %v533_v28 }
 0x189   : > { %v2069_v34 = vrot.slane %v2067_v36, 7  ;;  %v2211_v60 = vld [vmem:[#allocation2 + $0x170] sm:$0xf]  ;;  %v2093_v61 = vrot.slane %v2091_v29, 7  ;;  %535 = vst [vmem:[#allocation2 + $0x1a8] sm:$0x1] %v534_v10 }
 0x18a   : > { %v528_v49 = vsel %vm7499_vm3, 0, %v527_v35  ;;  %v2229_v31 = vld [vmem:[#allocation2 + $0x188] sm:$0xf]  ;;  %v2075_v32 = vshrl.u32 %v6564_v8, 16  ;;  %v2078_v19 = vshll.u32 %v6564_v8, 16  ;;  %v6569_v47 = vpack.c.bf16 %v1283_v40, %v1283_v40 }
 0x18b   : > { %v1281_v55 = vmax.f32 %v1183_v54, 0.0  ;;  %529 = vst [vmem:[#allocation2 + $0x198] sm:$0x1] %v528_v49  ;;  %v2072_v41 = vor.u32 %v2070_v39, %v2069_v34  ;;  %v2073_v3 = vrot.slane %v2069_v34, 4  ;;  %v2096_v4 = vor.u32 %v2094_v43, %v2093_v61  ;;  %v572_v52 = vld [vmem:[#allocation2 + $0x210] sm:$0x1] }
 0x18c   : > { %v2097_v20 = vrot.slane %v2093_v61, 4  ;;  %v2077_v33 = vrot.slane %v2075_v32, 7  ;;  %v2115_v0 = vshrl.u32 %v6569_v47, 16  ;;  %v2118_v21 = vshll.u32 %v6569_v47, 16  ;;  %v2217_v12 = vld [vmem:[#allocation2 + $0x178] sm:$0xf] }
 0x18d   : > { %v6567_v13 = vpack.c.bf16 %v1281_v55, %v1281_v55  ;;  %v2212_v50 = vsel %vm7720_vm9, %v2072_v41, %v2211_v60  ;;  %v2215_v9 = vsel %vm7499_vm3, %v2073_v3, %v2214_v45  ;;  %v2230_v1 = vsel %vm7720_vm9, %v2096_v4, %v2229_v31  ;;  %v2220_v15 = vld [vmem:[#allocation2 + $0x17c] sm:$0x1]  ;;  %v2250_v46 = vld [vmem:[#allocation2 + $0x1a4] sm:$0x1]  ;;  %v566_v22 = vld [vmem:[#allocation2 + $0x200] sm:$0x1] }
 0x18e   : > { %v2233_v6 = vsel %vm7499_vm3, %v2097_v20, %v2232_v11  ;;  %2213 = vst [vmem:[#allocation2 + $0x170] sm:$0xf] %v2212_v50  ;;  %2216 = vst [vmem:[#allocation2 + $0x174] sm:$0x1] %v2215_v9  ;;  %v2080_v16 = vor.u32 %v2078_v19, %v2077_v33  ;;  %v2081_v58 = vrot.slane %v2077_v33, 4  ;;  %v2117_v17 = vrot.slane %v2115_v0, 7 }
 0x18f   : > { %2231 = vst [vmem:[#allocation2 + $0x188] sm:$0xf] %v2230_v1  ;;  %2234 = vst [vmem:[#allocation2 + $0x18c] sm:$0x1] %v2233_v6  ;;  %v2099_v2 = vshrl.u32 %v6567_v13, 16  ;;  %v2102_v23 = vshll.u32 %v6567_v13, 16  ;;  %v1199_v54 = vadd.f32 %v7989_v14, %v8058_v27  ;;  %v1210_v55 = vadd.f32 %v7989_v14, %v8060_v53 }
 0x190   : > { %v2247_v44 = vld [vmem:[#allocation2 + $0x1a0] sm:$0xf]  ;;  %v1284_v26 = vmax.f32 %v1194_v5, 0.0  ;;  %v573_v28 = vsel %vm7499_vm3, 0, %v572_v52  ;;  %v2218_v30 = vsel %vm7720_vm9, %v2080_v16, %v2217_v12  ;;  %v2221_v18 = vsel %vm7499_vm3, %v2081_v58, %v2220_v15  ;;  %v575_v29 = vld [vmem:[#allocation2 + $0x218] sm:$0x1] }
 0x191   : > { %v2120_v57 = vor.u32 %v2118_v21, %v2117_v17  ;;  %v2121_v25 = vrot.slane %v2117_v17, 4  ;;  %574 = vst [vmem:[#allocation2 + $0x210] sm:$0x1] %v573_v28  ;;  %2219 = vst [vmem:[#allocation2 + $0x178] sm:$0xf] %v2218_v30  ;;  %v2101_v35 = vrot.slane %v2099_v2, 7 }
 0x192   : > { %2222 = vst [vmem:[#allocation2 + $0x17c] sm:$0x1] %v2221_v18  ;;  %v6570_v36 = vpack.c.bf16 %v1284_v26, %v1284_v26  ;;  %v1282_v39 = vmax.f32 %v1186_v51, 0.0  ;;  %v2235_v11 = vld [vmem:[#allocation2 + $0x190] sm:$0xf]  ;;  %v567_v40 = vsel %vm7499_vm3, 0, %v566_v22 }
 0x193   : > { %v2248_v43 = vsel %vm7720_vm9, %v2120_v57, %v2247_v44  ;;  %v2251_v45 = vsel %vm7499_vm3, %v2121_v25, %v2250_v46  ;;  %v2238_v8 = vld [vmem:[#allocation2 + $0x194] sm:$0x1]  ;;  %v2104_v10 = vor.u32 %v2102_v23, %v2101_v35  ;;  %v2105_v34 = vrot.slane %v2101_v35, 4  ;;  %568 = vst [vmem:[#allocation2 + $0x200] sm:$0x1] %v567_v40 }
 0x194   : > { %2249 = vst [vmem:[#allocation2 + $0x1a0] sm:$0xf] %v2248_v43  ;;  %2252 = vst [vmem:[#allocation2 + $0x1a4] sm:$0x1] %v2251_v45  ;;  %v2123_v37 = vshrl.u32 %v6570_v36, 16  ;;  %v2126_v60 = vshll.u32 %v6570_v36, 16  ;;  %v6568_v61 = vpack.c.bf16 %v1282_v39, %v1282_v39  ;;  %v1202_v35 = vadd.f32 %v7989_v14, %v8063_v56 }
 0x195   : > { %v1287_v5 = vmax.f32 %v1207_v63, 0.0  ;;  %v1285_v49 = vmax.f32 %v1199_v54, 0.0  ;;  %v576_v31 = vsel %vm7499_vm3, 0, %v575_v29  ;;  %v569_v32 = vld [vmem:[#allocation2 + $0x208] sm:$0x1]  ;;  %v2236_v19 = vsel %vm7720_vm9, %v2104_v10, %v2235_v11 }
 0x196   : > { %v2239_v27 = vsel %vm7499_vm3, %v2105_v34, %v2238_v8  ;;  %v2125_v47 = vrot.slane %v2123_v37, 7  ;;  %577 = vst [vmem:[#allocation2 + $0x218] sm:$0x1] %v576_v31  ;;  %2237 = vst [vmem:[#allocation2 + $0x190] sm:$0xf] %v2236_v19  ;;  %v2107_v4 = vshrl.u32 %v6568_v61, 16 }
 0x197   : > { %2240 = vst [vmem:[#allocation2 + $0x194] sm:$0x1] %v2239_v27  ;;  %v2253_v41 = vld [vmem:[#allocation2 + $0x1a8] sm:$0xf]  ;;  %v2256_v3 = vld [vmem:[#allocation2 + $0x1ac] sm:$0x1]  ;;  %v6573_v52 = vpack.c.bf16 %v1287_v5, %v1287_v5  ;;  %v6571_v33 = vpack.c.bf16 %v1285_v49, %v1285_v49 }
 0x198   : > { %v2110_v20 = vshll.u32 %v6568_v61, 16  ;;  %v2128_v0 = vor.u32 %v2126_v60, %v2125_v47  ;;  %v2129_v21 = vrot.slane %v2125_v47, 4  ;;  %v2244_v13 = vld [vmem:[#allocation2 + $0x19c] sm:$0x1]  ;;  %v1288_v50 = vmax.f32 %v1210_v55, 0.0 }
 0x199   : > { %v570_v9 = vsel %vm7499_vm3, 0, %v569_v32  ;;  %v2109_v1 = vrot.slane %v2107_v4, 7  ;;  %v2340_v6 = vshrl.u32 %v6573_v52, 16  ;;  %v2343_v12 = vshll.u32 %v6573_v52, 16  ;;  %v584_v53 = vld [vmem:[#allocation2 + $0x230] sm:$0x1] }
 0x19a   : > { %v2324_v15 = vshrl.u32 %v6571_v33, 16  ;;  %571 = vst [vmem:[#allocation2 + $0x208] sm:$0x1] %v570_v9  ;;  %v2254_v46 = vsel %vm7720_vm9, %v2128_v0, %v2253_v41  ;;  %v2257_v16 = vsel %vm7499_vm3, %v2129_v21, %v2256_v3  ;;  %v2241_v58 = vld [vmem:[#allocation2 + $0x198] sm:$0xf]  ;;  %v2327_v2 = vshll.u32 %v6571_v33, 16 }
 0x19b   : > { %v2483_v17 = vld [vmem:[#allocation2 + $0x214] sm:$0x1]  ;;  %v6574_v22 = vpack.c.bf16 %v1288_v50, %v1288_v50  ;;  %2255 = vst [vmem:[#allocation2 + $0x1a8] sm:$0xf] %v2254_v46  ;;  %2258 = vst [vmem:[#allocation2 + $0x1ac] sm:$0x1] %v2257_v16  ;;  %v2112_v44 = vor.u32 %v2110_v20, %v2109_v1  ;;  %v1223_v61 = vadd.f32 %v7989_v14, %v8073_v24 }
 0x19c   : > { %v2113_v23 = vrot.slane %v2109_v1, 4  ;;  %v2342_v26 = vrot.slane %v2340_v6, 7  ;;  %v2326_v51 = vrot.slane %v2324_v15, 7  ;;  %v2471_v28 = vld [vmem:[#allocation2 + $0x204] sm:$0x1]  ;;  %v585_v36 = vsel %vm7499_vm3, 0, %v584_v53 }
 0x19d   : > { %v578_v30 = vld [vmem:[#allocation2 + $0x220] sm:$0x1]  ;;  %v2480_v18 = vld [vmem:[#allocation2 + $0x210] sm:$0xf]  ;;  %v2348_v57 = vshrl.u32 %v6574_v22, 16  ;;  %v2351_v25 = vshll.u32 %v6574_v22, 16  ;;  %v2242_v39 = vsel %vm7720_vm9, %v2112_v44, %v2241_v58  ;;  %v1215_v24 = vadd.f32 %v7989_v14, %v8075_v59 }
 0x19e   : > { %v2245_v63 = vsel %vm7499_vm3, %v2113_v23, %v2244_v13  ;;  %v2345_v29 = vor.u32 %v2343_v12, %v2342_v26  ;;  %v2346_v43 = vrot.slane %v2342_v26, 4  ;;  %v2468_v45 = vld [vmem:[#allocation2 + $0x200] sm:$0xf]  ;;  %v2489_v11 = vld [vmem:[#allocation2 + $0x21c] sm:$0x1]  ;;  %v2329_v8 = vor.u32 %v2327_v2, %v2326_v51 }
 0x19f   : > { %586 = vst [vmem:[#allocation2 + $0x230] sm:$0x1] %v585_v36  ;;  %2243 = vst [vmem:[#allocation2 + $0x198] sm:$0xf] %v2242_v39  ;;  %v2330_v40 = vrot.slane %v2326_v51, 4  ;;  %v2350_v54 = vrot.slane %v2348_v57, 7  ;;  %v1226_v33 = vadd.f32 %v7989_v14, %v8084_v38 }
 0x1a0   : > { %2246 = vst [vmem:[#allocation2 + $0x19c] sm:$0x1] %v2245_v63  ;;  %v1286_v56 = vmax.f32 %v1202_v35, 0.0  ;;  %v587_v10 = vld [vmem:[#allocation2 + $0x238] sm:$0x1]  ;;  %v2481_v34 = vsel %vm7720_vm9, %v2345_v29, %v2480_v18  ;;  %v2484_v37 = vsel %vm7499_vm3, %v2346_v43, %v2483_v17  ;;  %v579_v5 = vsel %vm7499_vm3, 0, %v578_v30 }
 0x1a1   : > { %v2486_v60 = vld [vmem:[#allocation2 + $0x218] sm:$0xf]  ;;  %v581_v49 = vld [vmem:[#allocation2 + $0x228] sm:$0x1]  ;;  %2482 = vst [vmem:[#allocation2 + $0x210] sm:$0xf] %v2481_v34  ;;  %v2469_v31 = vsel %vm7720_vm9, %v2329_v8, %v2468_v45  ;;  %v2472_v32 = vsel %vm7499_vm3, %v2330_v40, %v2471_v28  ;;  %v2353_v19 = vor.u32 %v2351_v25, %v2350_v54 }
 0x1a2   : > { %2485 = vst [vmem:[#allocation2 + $0x214] sm:$0x1] %v2484_v37  ;;  %v2354_v27 = vrot.slane %v2350_v54, 4  ;;  %580 = vst [vmem:[#allocation2 + $0x220] sm:$0x1] %v579_v5  ;;  %v6572_v47 = vpack.c.bf16 %v1286_v56, %v1286_v56  ;;  %v1291_v55 = vmax.f32 %v1223_v61, 0.0 }
 0x1a3   : > { %2470 = vst [vmem:[#allocation2 + $0x200] sm:$0xf] %v2469_v31  ;;  %2473 = vst [vmem:[#allocation2 + $0x204] sm:$0x1] %v2472_v32  ;;  %v588_v41 = vsel %vm7499_vm3, 0, %v587_v10  ;;  %v2487_v20 = vsel %vm7720_vm9, %v2353_v19, %v2486_v60  ;;  %v582_v0 = vsel %vm7499_vm3, 0, %v581_v49 }
 0x1a4   : > { %v363_v3 = vld [vmem:[#allocation2 + $0x16c] sm:$0x1]  ;;  %v509_v4 = vld [vmem:[#allocation2 + $0x168] sm:$0x1]  ;;  %v2490_v52 = vsel %vm7499_vm3, %v2354_v27, %v2489_v11  ;;  %589 = vst [vmem:[#allocation2 + $0x238] sm:$0x1] %v588_v41  ;;  %v6577_v13 = vpack.c.bf16 %v1291_v55, %v1291_v55 }
 0x1a5   : > { %2488 = vst [vmem:[#allocation2 + $0x218] sm:$0xf] %v2487_v20  ;;  %2491 = vst [vmem:[#allocation2 + $0x21c] sm:$0x1] %v2490_v52  ;;  %v2332_v59 = vshrl.u32 %v6572_v47, 16  ;;  %v2335_v21 = vshll.u32 %v6572_v47, 16 }
 0x1a6   : > { %v1289_v50 = vmax.f32 %v1215_v24, 0.0  ;;  %583 = vst [vmem:[#allocation2 + $0x228] sm:$0x1] %v582_v0  ;;  %v2556_v9 = vld [vmem:[#allocation2 + $0x170] sm:$0xf]  ;;  %v1292_v1 = vmax.f32 %v1226_v33, 0.0 }
 0x1a7   : > { %v7316_v6 = vld [vmem:[%s8788_s2] ss:$0 sm:$0xff]  ;;  %v364_v14 = vsel %vm7499_vm3, 0, %v363_v3  ;;  %v510_v38 = vsel %vm7499_vm3, 0, %v509_v4  ;;  %v2334_v15 = vrot.slane %v2332_v59, 7  ;;  %v2372_v46 = vshrl.u32 %v6577_v13, 16 }
 0x1a8   : > { %v1218_v12 = vadd.f32 %v7316_v6, %v8088_v48  ;;  %v2477_v53 = vld [vmem:[#allocation2 + $0x20c] sm:$0x1]  ;;  %v2375_v16 = vshll.u32 %v6577_v13, 16  ;;  %v6575_v58 = vpack.c.bf16 %v1289_v50, %v1289_v50  ;;  %365 = vst [vmem:[#allocation2 + $0x16c] sm:$0x1] %v364_v14  ;;  %v6578_v22 = vpack.c.bf16 %v1292_v1, %v1292_v1 }
 0x1a9   : > { %511 = vst [vmem:[#allocation2 + $0x168] sm:$0x1] %v510_v38  ;;  %v2474_v17 = vld [vmem:[#allocation2 + $0x208] sm:$0xf]  ;;  %v2507_v2 = vld [vmem:[#allocation2 + $0x234] sm:$0x1]  ;;  %v2337_v48 = vor.u32 %v2335_v21, %v2334_v15 }
 0x1aa   : > { %v1290_v44 = vmax.f32 %v1218_v12, 0.0  ;;  %v2700_v23 = vshrl.u32 %v2556_v9, 16  ;;  %v2703_v26 = vshll.u32 %v2556_v9, 16  ;;  %v2338_v51 = vrot.slane %v2334_v15, 4  ;;  %v2504_v30 = vld [vmem:[#allocation2 + $0x230] sm:$0xf] }
 0x1ab   : > { %v2374_v28 = vrot.slane %v2372_v46, 7  ;;  %v2356_v18 = vshrl.u32 %v6575_v58, 16  ;;  %v2359_v57 = vshll.u32 %v6575_v58, 16  ;;  %v2380_v25 = vshrl.u32 %v6578_v22, 16  ;;  %v2495_v45 = vld [vmem:[#allocation2 + $0x224] sm:$0x1] }
 0x1ac   : > { %v2383_v35 = vshll.u32 %v6578_v22, 16  ;;  %v6576_v36 = vpack.c.bf16 %v1290_v44, %v1290_v44  ;;  %v2475_v39 = vsel %vm7720_vm9, %v2337_v48, %v2474_v17  ;;  %v2478_v63 = vsel %vm7499_vm3, %v2338_v51, %v2477_v53  ;;  %v2513_v11 = vld [vmem:[#allocation2 + $0x23c] sm:$0x1]  ;;  %v2492_v40 = vld [vmem:[#allocation2 + $0x220] sm:$0xf] }
 0x1ad   : > { %v2377_v29 = vor.u32 %v2375_v16, %v2374_v28  ;;  %v2378_v43 = vrot.slane %v2374_v28, 4  ;;  %2476 = vst [vmem:[#allocation2 + $0x208] sm:$0xf] %v2475_v39  ;;  %2479 = vst [vmem:[#allocation2 + $0x20c] sm:$0x1] %v2478_v63  ;;  %v2358_v8 = vrot.slane %v2356_v18, 7 }
 0x1ae   : > { %v2382_v54 = vrot.slane %v2380_v25, 7  ;;  %v2364_v56 = vshrl.u32 %v6576_v36, 16  ;;  %v2367_v10 = vshll.u32 %v6576_v36, 16  ;;  %v2510_v60 = vld [vmem:[#allocation2 + $0x238] sm:$0xf]  ;;  %v2702_v5 = vrot.slane %v2700_v23, 4 }
 0x1af   : > { %v2505_v34 = vsel %vm7720_vm9, %v2377_v29, %v2504_v30  ;;  %v2508_v37 = vsel %vm7499_vm3, %v2378_v43, %v2507_v2  ;;  %v2557_v61 = vld [vmem:[#allocation2 + $0x174] sm:$0x1]  ;;  %v2705_v49 = vrot.slane %v2703_v26, 5  ;;  %v2361_v31 = vor.u32 %v2359_v57, %v2358_v8  ;;  %v2555_v55 = vld [vmem:[#allocation2 + $0x16c] sm:$0x1] }
 0x1b0   : > { %2506 = vst [vmem:[#allocation2 + $0x230] sm:$0xf] %v2505_v34  ;;  %2509 = vst [vmem:[#allocation2 + $0x234] sm:$0x1] %v2508_v37  ;;  %v2362_v32 = vrot.slane %v2358_v8, 4  ;;  %v2385_v19 = vor.u32 %v2383_v35, %v2382_v54  ;;  %v2386_v27 = vrot.slane %v2382_v54, 4 }
 0x1b1   : > { %v2554_v47 = vld [vmem:[#allocation2 + $0x168] sm:$0xf]  ;;  %v2366_v24 = vrot.slane %v2364_v56, 7  ;;  %v2695_v4 = vshll.u32 %v2555_v55, 16  ;;  %v2558_v20 = vld [vmem:[#allocation2 + $0x178] sm:$0xf]  ;;  %v2493_v52 = vsel %vm7720_vm9, %v2361_v31, %v2492_v40  ;;  %v2706_v53 = vor.u32 %v2705_v49, %v2702_v5 }
 0x1b2   : > { %v2686_v41 = vshrl.u32 %v2554_v47, 16  ;;  %v2689_v3 = vshll.u32 %v2554_v47, 16  ;;  %v2496_v33 = vsel %vm7499_vm3, %v2362_v32, %v2495_v45  ;;  %v2511_v0 = vsel %vm7720_vm9, %v2385_v19, %v2510_v60  ;;  %v2498_v21 = vld [vmem:[#allocation2 + $0x228] sm:$0xf]  ;;  %v2501_v13 = vld [vmem:[#allocation2 + $0x22c] sm:$0x1] }
 0x1b3   : > { %v2514_v59 = vsel %vm7499_vm3, %v2386_v27, %v2513_v11  ;;  %v2560_v50 = vld [vmem:[#allocation2 + $0x180] sm:$0xf]  ;;  %2494 = vst [vmem:[#allocation2 + $0x220] sm:$0xf] %v2493_v52  ;;  %2497 = vst [vmem:[#allocation2 + $0x224] sm:$0x1] %v2496_v33  ;;  %v2369_v9 = vor.u32 %v2367_v10, %v2366_v24 }
 0x1b4   : > { %2512 = vst [vmem:[#allocation2 + $0x238] sm:$0xf] %v2511_v0  ;;  %2515 = vst [vmem:[#allocation2 + $0x23c] sm:$0x1] %v2514_v59  ;;  %v2370_v1 = vrot.slane %v2366_v24, 4  ;;  %v2688_v6 = vrot.slane %v2686_v41, 4 }
 0x1b5   : > { %v2691_v12 = vrot.slane %v2689_v3, 5  ;;  %v2559_v14 = vld [vmem:[#allocation2 + $0x17c] sm:$0x1]  ;;  %v563_v38 = vld [vmem:[#allocation2 + $0x1f8] sm:$0x1]  ;;  %v2697_v15 = vrot.slane %v2695_v4, 5  ;;  %v2499_v17 = vsel %vm7720_vm9, %v2369_v9, %v2498_v21 }
 0x1b6   : > { %v2709_v46 = vshll.u32 %v2557_v61, 16  ;;  %v2561_v16 = vld [vmem:[#allocation2 + $0x184] sm:$0x1]  ;;  %v2714_v58 = vshrl.u32 %v2558_v20, 16  ;;  %v2502_v2 = vsel %vm7499_vm3, %v2370_v1, %v2501_v13  ;;  %v2717_v44 = vshll.u32 %v2558_v20, 16 }
 0x1b7   : > { %v2692_v22 = vor.u32 %v2691_v12, %v2688_v6  ;;  %v2562_v23 = vld [vmem:[#allocation2 + $0x188] sm:$0xf]  ;;  %2500 = vst [vmem:[#allocation2 + $0x228] sm:$0xf] %v2499_v17  ;;  %2503 = vst [vmem:[#allocation2 + $0x22c] sm:$0x1] %v2502_v2 }
 0x1b8   : > { %v2707_v26 = vrot.slane %v2706_v53, 4  ;;  %v2711_v48 = vrot.slane %v2709_v46, 5  ;;  %v2716_v51 = vrot.slane %v2714_v58, 4  ;;  %v2723_v28 = vshll.u32 %v2559_v14, 16  ;;  %v2563_v30 = vld [vmem:[#allocation2 + $0x18c] sm:$0x1] }
 0x1b9   : > { %v2693_v18 = vrot.slane %v2692_v22, 4  ;;  %v2719_v57 = vrot.slane %v2717_v44, 5  ;;  %v2728_v25 = vshrl.u32 %v2560_v50, 16  ;;  %v2731_v35 = vshll.u32 %v2560_v50, 16  ;;  %v2564_v29 = vld [vmem:[#allocation2 + $0x190] sm:$0xf] }
 0x1ba   : > { %v2712_v62 = vsel %vm7705_vm8, %v2707_v26, %v2711_v48  ;;  %v2725_v36 = vrot.slane %v2723_v28, 5  ;;  %v2737_v39 = vshll.u32 %v2561_v16, 16  ;;  %v564_v63 = vsel %vm7499_vm3, 0, %v563_v38  ;;  %v2565_v40 = vld [vmem:[#allocation2 + $0x194] sm:$0x1] }
 0x1bb   : > { %v2698_v43 = vsel %vm7705_vm8, %v2693_v18, %v2697_v15  ;;  %v2720_v45 = vor.u32 %v2719_v57, %v2716_v51  ;;  %v2730_v11 = vrot.slane %v2728_v25, 4  ;;  %v2733_v8 = vrot.slane %v2731_v35, 5  ;;  %565 = vst [vmem:[#allocation2 + $0x1f8] sm:$0x1] %v564_v63  ;;  %v2568_v37 = vld [vmem:[#allocation2 + $0x1a0] sm:$0xf] }
 0x1bc   : > { %v6299_v54 = vcombine.low %v2698_v43, %v2712_v62  ;;  %v2739_v56 = vrot.slane %v2737_v39, 5  ;;  %v2742_v10 = vshrl.u32 %v2562_v23, 16  ;;  %v2745_v34 = vshll.u32 %v2562_v23, 16  ;;  %v2566_v31 = vld [vmem:[#allocation2 + $0x198] sm:$0xf]  ;;  %v7278_v15 = vld [vmem:[%s8789_s3 + $0x28] sm:$0xff]  }
 0x1bd   : > { %v2721_v60 = vrot.slane %v2720_v45, 4  ;;  %v2734_v61 = vor.u32 %v2733_v8, %v2730_v11  ;;  %v2751_v5 = vshll.u32 %v2563_v30, 16  ;;  %v2756_v49 = vshrl.u32 %v2564_v29, 16  ;;  %v2567_v55 = vld [vmem:[#allocation2 + $0x19c] sm:$0x1]  ;;  %v7317_v63 = vld [vmem:[%s8789_s3 + $0x20] sm:$0xff]  }
 0x1be   : > { %6805 = vmatprep.mubr.msk.bf16.mxu0 %vm843_vm2, %v6299_v54  ;;  %v2744_v32 = vrot.slane %v2742_v10, 4  ;;  %v2747_v19 = vrot.slane %v2745_v34, 5  ;;  %v2759_v27 = vshll.u32 %v2564_v29, 16  ;;  %v2765_v47 = vshll.u32 %v2565_v40, 16  ;;  %v2569_v20 = vld [vmem:[#allocation2 + $0x1a4] sm:$0x1] }
 0x1bf   : > { %v2726_v24 = vsel %vm7705_vm8, %v2721_v60, %v2725_v36  ;;  %v2735_v41 = vrot.slane %v2734_v61, 4  ;;  %v2753_v3 = vrot.slane %v2751_v5, 5  ;;  %v2758_v4 = vrot.slane %v2756_v49, 4  ;;  %v536_v52 = vld [vmem:[#allocation2 + $0x1b0] sm:$0x1] }
 0x1c0   : > { %v2748_v33 = vor.u32 %v2747_v19, %v2744_v32  ;;  %v2761_v0 = vrot.slane %v2759_v27, 5  ;;  %v2767_v59 = vrot.slane %v2765_v47, 5  ;;  %v7275_v21 = vld [vmem:[#allocation2 + $0x208] ss:$8 sps:$4 sm:$0xff]   ;;  %v2770_v13 = vshrl.u32 %v2566_v31, 16 }
 0x1c1   : > { %v367_v50 = vld [vmem:[#allocation2 + $0x1b4] sm:$0x1]  ;;  %v3134_v9 = vld [vmem:[#allocation2 + $0x1b8] sm:$0xf]  ;;  %v2740_v1 = vsel %vm7705_vm8, %v2735_v41, %v2739_v56  ;;  %v2773_v6 = vshll.u32 %v2566_v31, 16  ;;  %v2779_v12 = vshll.u32 %v2567_v55, 16 }
 0x1c2   : > { %v2784_v14 = vshrl.u32 %v2568_v37, 16  ;;  %v7277_v38 = vld [vmem:[#allocation2 + $0x218] ss:$8 sps:$4 sm:$0xff]   ;;  %v6300_v53 = vcombine.low %v2726_v24, %v2740_v1  ;;  %v2749_v16 = vrot.slane %v2748_v33, 4  ;;  %v2762_v58 = vor.u32 %v2761_v0, %v2758_v4  ;;  %v3135_v26 = vld [vmem:[#allocation2 + $0x1bc] sm:$0x1] }
 0x1c3   : > { %v7273_v46 = vld [vmem:[#allocation2 + $0x1f8] ss:$8 sps:$4 sm:$0xff]   ;;  %v2772_v17 = vrot.slane %v2770_v13, 4  ;;  %v2775_v2 = vrot.slane %v2773_v6, 5  ;;  %v2781_v22 = vrot.slane %v2779_v12, 5  ;;  %v2787_v23 = vshll.u32 %v2568_v37, 16 }
 0x1c4   : > { %v2786_v44 = vrot.slane %v2784_v14, 4  ;;  %6806 = vmatmul.mubr.msk.bf16.gmra.mrb[72].mxu0 %vm843_vm2, %v6300_v53  ;;  %6825 = vmatprep.mubr.msk.bf16.mxu1 %vm843_vm2, %v7273_v46  ;;  %v2754_v48 = vsel %vm7705_vm8, %v2749_v16, %v2753_v3  ;;  %v2763_v51 = vrot.slane %v2762_v58, 4  ;;  %v2793_v28 = vshll.u32 %v2569_v20, 16  ;;  %v3138_v18 = vld [vmem:[#allocation2 + $0x1c8] sm:$0xf]  ;;  %v8303_v10 = vld [vmem:[%s8789_s3 + $0x30] sm:$0xff]  }
 0x1c5   : > { %v537_v30 = vsel %vm7499_vm3, 0, %v536_v52  ;;  %6826 = vmatmul.mubr.msk.bf16.vlgmr.msra.gmra.mrb[0].mxu1 %vm843_vm2, %v7275_v21  ;;  %v2776_v57 = vor.u32 %v2775_v2, %v2772_v17  ;;  %v2789_v25 = vrot.slane %v2787_v23, 5  ;;  %v368_v35 = vsel %vm7499_vm3, 0, %v367_v50  ;;  %v3136_v36 = vld [vmem:[#allocation2 + $0x1c0] sm:$0xf] }
 0x1c6   : > { %538 = vst [vmem:[#allocation2 + $0x1b0] sm:$0x1] %v537_v30  ;;  %v3179_v62 = vshrl.u32 %v3134_v9, 16  ;;  %v2768_v39 = vsel %vm7705_vm8, %v2763_v51, %v2767_v59  ;;  %6834 = vmatpush3.bf16.msra.mxu1 %v7317_v63  ;;  %v2795_v29 = vrot.slane %v2793_v28, 5  ;;  %6829 = vmatprep.mubr.msk.bf16.mxu1 %vm843_vm2, %v7277_v38  ;;  %369 = vst [vmem:[#allocation2 + $0x1b4] sm:$0x1] %v368_v35 }
 0x1c7   : > { %v3182_v43 = vshll.u32 %v3134_v9, 16  ;;  %v3188_v45 = vshll.u32 %v3135_v26, 16  ;;  %v3137_v11 = vld [vmem:[#allocation2 + $0x1c4] sm:$0x1]  ;;  %v6301_v8 = vcombine.low %v2754_v48, %v2768_v39  ;;  %v2777_v40 = vrot.slane %v2776_v57, 4  ;;  %6835 = vmatprep.subr.bf16.mxu1 %v7278_v15 }
 0x1c8   : > { %v2790_v54 = vor.u32 %v2789_v25, %v2786_v44  ;;  %v3181_v56 = vrot.slane %v3179_v62, 4  ;;  %v3139_v60 = vld [vmem:[#allocation2 + $0x1cc] sm:$0x1]  ;;  %v3193_v61 = vshrl.u32 %v3136_v36, 16  ;;  %v3196_v5 = vshll.u32 %v3136_v36, 16 }
 0x1c9   : > { %v3184_v34 = vrot.slane %v3182_v43, 5  ;;  %v8305_v37 = vrot.slane %v3188_v45, 5  ;;  %6809 = vmatprep.mubr.msk.bf16.mxu0 %vm843_vm2, %v6301_v8  ;;  %v2782_v49 = vsel %vm7705_vm8, %v2777_v40, %v2781_v22  ;;  %v7279_v32 = vld [vmem:[#allocation2 + $0x228] ss:$8 sps:$4 sm:$0xff]   ;;  %v3202_v19 = vshll.u32 %v3137_v11, 16 }
 0x1ca   : > { %v2791_v31 = vrot.slane %v2790_v54, 4  ;;  %v3207_v27 = vshrl.u32 %v3138_v18, 16  ;;  %6836 = vmatpush3.bf16.msra.mxu1 %v7278_v15  ;;  %v3195_v55 = vrot.slane %v3193_v61, 4  ;;  %v3198_v24 = vrot.slane %v3196_v5, 5  ;;  %v3140_v33 = vld [vmem:[#allocation2 + $0x1d0] sm:$0xf] }
 0x1cb   : > { %v3185_v47 = vor.u32 %v3184_v34, %v3181_v56  ;;  %v3210_v41 = vshll.u32 %v3138_v18, 16  ;;  %6853 = vmatprep.subr.bf16.mxu1 %v8303_v10  ;;  %v3204_v4 = vrot.slane %v3202_v19, 5  ;;  %v3216_v52 = vshll.u32 %v3139_v60, 16  ;;  %v3141_v50 = vld [vmem:[#allocation2 + $0x1d4] sm:$0x1] }
 0x1cc   : > { %v2796_v3 = vsel %vm7705_vm8, %v2791_v31, %v2795_v29  ;;  %v3209_v20 = vrot.slane %v3207_v27, 4  ;;  %v3199_v13 = vor.u32 %v3198_v24, %v3195_v55  ;;  %v3142_v46 = vld [vmem:[#allocation2 + $0x1d8] sm:$0xf]  ;;  %v3221_v16 = vshrl.u32 %v3140_v33, 16  ;;  %v3143_v44 = vld [vmem:[#allocation2 + $0x1dc] sm:$0x1] }
 0x1cd   : > { %v6302_v0 = vcombine.low %v2782_v49, %v2796_v3  ;;  %v7276_v59 = vld [vmem:[#allocation2 + $0x1b0] ss:$8 sps:$4 sm:$0xff]   ;;  %6830 = vmatmul.mubr.msk.bf16.gmra.mrb[4].mxu1 %vm843_vm2, %v7279_v32  ;;  %v3133_v9 = vld [vmem:[#allocation2 + $0x1b4] sm:$0x1]  ;;  %v3186_v12 = vrot.slane %v3185_v47, 4  ;;  %v3212_v14 = vrot.slane %v3210_v41, 5 }
 0x1ce   : > { %v3132_v21 = vld [vmem:[#allocation2 + $0x1b0] sm:$0xf]  ;;  %v3174_v38 = vshll.u32 %v3133_v9, 16  ;;  %v3200_v15 = vrot.slane %v3199_v13, 4  ;;  %v3218_v53 = vrot.slane %v3216_v52, 5  ;;  %v3223_v51 = vrot.slane %v3221_v16, 4 }
 0x1cf   : > { %v3165_v1 = vshrl.u32 %v3132_v21, 16  ;;  %v3168_v6 = vshll.u32 %v3132_v21, 16  ;;  %6810 = vmatmul.mubr.msk.bf16.gmra.mrb[76].mxu0 %vm843_vm2, %v6302_v0  ;;  %v3191_v2 = vsel %vm7705_vm8, %v3186_v12, %v8305_v37  ;;  %v3213_v22 = vor.u32 %v3212_v14, %v3209_v20  ;;  %v3144_v23 = vld [vmem:[#allocation2 + $0x1e0] sm:$0xf]  ;;  %v3145_v63 = vld [vmem:[#allocation2 + $0x1e4] sm:$0x1] }
 0x1d0   : > { %6817 = vmatprep.mubr.msk.bf16.mxu0 %vm843_vm2, %v7276_v59  ;;  %v3176_v26 = vrot.slane %v3174_v38, 5  ;;  %v3205_v48 = vsel %vm7705_vm8, %v3200_v15, %v3204_v4  ;;  %v3224_v28 = vshll.u32 %v3140_v33, 16  ;;  %v3230_v57 = vshll.u32 %v3141_v50, 16  ;;  %v7280_v35 = vld [vmem:[#allocation2 + $0x1c0] ss:$8 sps:$4 sm:$0xff]   ;;  %v7284_v3 = vld [vmem:[%s8789_s3 + $0x38] sm:$0xff]  }
 0x1d1   : > { %v3167_v58 = vrot.slane %v3165_v1, 4  ;;  %v3170_v17 = vrot.slane %v3168_v6, 5  ;;  %v3214_v18 = vrot.slane %v3213_v22, 4  ;;  %v3235_v25 = vshrl.u32 %v3142_v46, 16  ;;  %v3146_v40 = vld [vmem:[#allocation2 + $0x1e8] sm:$0xf] }
 0x1d2   : > { %v3226_v62 = vrot.slane %v3224_v28, 5  ;;  %v3238_v36 = vshll.u32 %v3142_v46, 16  ;;  %v3244_v39 = vshll.u32 %v3143_v44, 16  ;;  %v3249_v29 = vshrl.u32 %v3144_v23, 16  ;;  %v7281_v54 = vld [vmem:[#allocation2 + $0x1d0] ss:$8 sps:$4 sm:$0xff]  }
 0x1d3   : > { %v3171_v30 = vor.u32 %v3170_v17, %v3167_v58  ;;  %v3219_v45 = vsel %vm7705_vm8, %v3214_v18, %v3218_v53  ;;  %v3232_v11 = vrot.slane %v3230_v57, 5  ;;  %v3237_v8 = vrot.slane %v3235_v25, 4  ;;  %v3147_v61 = vld [vmem:[#allocation2 + $0x1ec] sm:$0x1]  ;;  %v371_v19 = vld [vmem:[#allocation2 + $0x1fc] sm:$0x1] }
 0x1d4   : > { %v6336_v56 = vcombine.low %v3205_v48, %v3219_v45  ;;  %v3227_v34 = vor.u32 %v3226_v62, %v3223_v51  ;;  %v3240_v37 = vrot.slane %v3238_v36, 5  ;;  %v3246_v60 = vrot.slane %v3244_v39, 5  ;;  %v3148_v41 = vld [vmem:[#allocation2 + $0x1f8] sm:$0xf]  ;;  %v3150_v0 = vld [vmem:[#allocation2 + $0x200] sm:$0xf] }
 0x1d5   : > { %v3172_v43 = vrot.slane %v3171_v30, 4  ;;  %v3251_v49 = vrot.slane %v3249_v29, 4  ;;  %v3252_v31 = vshll.u32 %v3144_v23, 16  ;;  %v3258_v32 = vshll.u32 %v3145_v63, 16  ;;  %v3151_v12 = vld [vmem:[#allocation2 + $0x204] sm:$0x1] }
 0x1d6   : > { %v3228_v47 = vrot.slane %v3227_v34, 4  ;;  %v3241_v55 = vor.u32 %v3240_v37, %v3237_v8  ;;  %v3263_v24 = vshrl.u32 %v3146_v40, 16  ;;  %v3266_v52 = vshll.u32 %v3146_v40, 16  ;;  %v3152_v16 = vld [vmem:[#allocation2 + $0x208] sm:$0xf]  ;;  %v8342_v44 = vld [vmem:[%s8789_s3 + $0x40] sm:$0xff]  }
 0x1d7   : > { %v3177_v5 = vsel %vm7705_vm8, %v3172_v43, %v3176_v26  ;;  %6818 = vmatmul.mubr.msk.bf16.vlgmr.msra.gmra.mrb[64].mxu0 %vm843_vm2, %v7280_v35  ;;  %v3254_v4 = vrot.slane %v3252_v31, 5  ;;  %v3260_v20 = vrot.slane %v3258_v32, 5  ;;  %v3272_v33 = vshll.u32 %v3147_v61, 16  ;;  %v7283_v58 = vld [vmem:[#allocation2 + $0x1e0] ss:$8 sps:$4 sm:$0xff]  }
 0x1d8   : > { %v6335_v27 = vcombine.low %v3177_v5, %v3191_v2  ;;  %6821 = vmatprep.mubr.msk.bf16.mxu0 %vm843_vm2, %v7281_v54  ;;  %v3233_v59 = vsel %vm7705_vm8, %v3228_v47, %v3232_v11  ;;  %v3242_v21 = vrot.slane %v3241_v55, 4  ;;  %v3265_v13 = vrot.slane %v3263_v24, 4  ;;  %v3154_v51 = vld [vmem:[#allocation2 + $0x210] sm:$0xf]  ;;  %v3153_v18 = vld [vmem:[#allocation2 + $0x20c] sm:$0x1] }
 0x1d9   : > { %v372_v50 = vsel %vm7499_vm3, 0, %v371_v19  ;;  %v3255_v9 = vor.u32 %v3254_v4, %v3251_v49  ;;  %v3268_v1 = vrot.slane %v3266_v52, 5  ;;  %v3274_v6 = vrot.slane %v3272_v33, 5  ;;  %v3155_v39 = vld [vmem:[#allocation2 + $0x214] sm:$0x1] }
 0x1da   : > { %6837 = vmatprep.mubr.msk.bf16.mxu1 %vm843_vm2, %v6335_v27  ;;  %373 = vst [vmem:[#allocation2 + $0x1fc] sm:$0x1] %v372_v50  ;;  %v3277_v14 = vshrl.u32 %v3148_v41, 16  ;;  %v3247_v38 = vsel %vm7705_vm8, %v3242_v21, %v3246_v60  ;;  %v3280_v15 = vshll.u32 %v3148_v41, 16  ;;  %v3291_v53 = vshrl.u32 %v3150_v0, 16 }
 0x1db   : > { %6838 = vmatmul.mubr.msk.bf16.vlgmr.msra.gmra.mrb[8].mxu1 %vm843_vm2, %v6336_v56  ;;  %v3294_v46 = vshll.u32 %v3150_v0, 16  ;;  %v6337_v7 = vcombine.low %v3233_v59, %v3247_v38  ;;  %v3256_v17 = vrot.slane %v3255_v9, 4  ;;  %v3269_v2 = vor.u32 %v3268_v1, %v3265_v13  ;;  %v3156_v11 = vld [vmem:[#allocation2 + $0x218] sm:$0xf]  ;;  %v3158_v49 = vld [vmem:[#allocation2 + $0x220] sm:$0xf] }
 0x1dc   : > { %6854 = vmatpush3.bf16.msra.mxu1 %v8303_v10  ;;  %v3279_v22 = vrot.slane %v3277_v14, 4  ;;  %v3282_v23 = vrot.slane %v3280_v15, 5  ;;  %v3293_v10 = vrot.slane %v3291_v53, 4  ;;  %v3300_v48 = vshll.u32 %v3151_v12, 16  ;;  %v3157_v41 = vld [vmem:[#allocation2 + $0x21c] sm:$0x1] }
 0x1dd   : > { %6855 = vmatprep.subr.bf16.mxu1 %v7284_v3  ;;  %v3296_v26 = vrot.slane %v3294_v46, 5  ;;  %6841 = vmatprep.mubr.msk.bf16.mxu1 %vm843_vm2, %v6337_v7  ;;  %v3261_v28 = vsel %vm7705_vm8, %v3256_v17, %v3260_v20  ;;  %v3270_v30 = vrot.slane %v3269_v2, 4  ;;  %v3305_v57 = vshrl.u32 %v3152_v16, 16  ;;  %v3160_v33 = vld [vmem:[#allocation2 + $0x228] sm:$0xf] }
 0x1de   : > { %v3308_v25 = vshll.u32 %v3152_v16, 16  ;;  %v3283_v35 = vor.u32 %v3282_v23, %v3279_v22  ;;  %v3302_v36 = vrot.slane %v3300_v48, 5  ;;  %v3319_v45 = vshrl.u32 %v3154_v51, 16  ;;  %v3159_v50 = vld [vmem:[#allocation2 + $0x224] sm:$0x1] }
 0x1df   : > { %6822 = vmatmul.mubr.msk.bf16.gmra.mrb[68].mxu0 %vm843_vm2, %v7283_v58  ;;  %v3297_v62 = vor.u32 %v3296_v26, %v3293_v10  ;;  %v3275_v63 = vsel %vm7705_vm8, %v3270_v30, %v3274_v6  ;;  %v3307_v29 = vrot.slane %v3305_v57, 4  ;;  %v3314_v34 = vshll.u32 %v3153_v18, 16  ;;  %v3161_v15 = vld [vmem:[#allocation2 + $0x22c] sm:$0x1] }
 0x1e0   : > { %6856 = vmatpush3.bf16.msra.mxu1 %v7284_v3  ;;  %v3310_v43 = vrot.slane %v3308_v25, 5  ;;  %v6338_v8 = vcombine.low %v3261_v28, %v3275_v63  ;;  %v3284_v54 = vrot.slane %v3283_v35, 4  ;;  %v3321_v61 = vrot.slane %v3319_v45, 4  ;;  %v3162_v3 = vld [vmem:[#allocation2 + $0x230] sm:$0xf] }
 0x1e1   : > { %6873 = vmatprep.subr.bf16.mxu1 %v8342_v44  ;;  %v3149_v40 = vld [vmem:[#allocation2 + $0x1fc] sm:$0x1]  ;;  %v3298_v56 = vrot.slane %v3297_v62, 4  ;;  %v3322_v5 = vshll.u32 %v3154_v51, 16  ;;  %v3328_v31 = vshll.u32 %v3155_v39, 16  ;;  %v3333_v32 = vshrl.u32 %v3156_v11, 16 }
 0x1e2   : > { %v3286_v37 = vshll.u32 %v3149_v40, 16  ;;  %v3311_v60 = vor.u32 %v3310_v43, %v3307_v29  ;;  %v3336_v19 = vshll.u32 %v3156_v11, 16  ;;  %v3347_v52 = vshrl.u32 %v3158_v49, 16  ;;  %v3163_v51 = vld [vmem:[#allocation2 + $0x234] sm:$0x1] }
 0x1e3   : > { %6842 = vmatmul.mubr.msk.bf16.gmra.mrb[12].mxu1 %vm843_vm2, %v6338_v8  ;;  %v3303_v47 = vsel %vm7705_vm8, %v3298_v56, %v3302_v36  ;;  %v3324_v24 = vrot.slane %v3322_v5, 5  ;;  %v3335_v4 = vrot.slane %v3333_v32, 4  ;;  %v3316_v59 = vrot.slane %v3314_v34, 5  ;;  %v3778_v5 = vld [vmem:[#allocation2 + $0x10] sm:$0xf] }
 0x1e4   : > { %v3288_v27 = vrot.slane %v3286_v37, 5  ;;  %v3312_v55 = vrot.slane %v3311_v60, 4  ;;  %v3338_v20 = vrot.slane %v3336_v19, 5  ;;  %v3330_v13 = vrot.slane %v3328_v31, 5  ;;  %v7285_v60 = vld [vmem:[#allocation2 + $0x98] ss:$8 sps:$4 sm:$0xff]  }
 0x1e5   : > { %v3325_v21 = vor.u32 %v3324_v24, %v3321_v61  ;;  %v3349_v6 = vrot.slane %v3347_v52, 4  ;;  %v3350_v12 = vshll.u32 %v3158_v49, 16  ;;  %v3361_v53 = vshrl.u32 %v3160_v33, 16  ;;  %v3776_v61 = vld [vmem:[#allocation2 + $0x8] sm:$0xf] }
 0x1e6   : > { %v3289_v0 = vsel %vm7705_vm8, %v3284_v54, %v3288_v27  ;;  %v3339_v1 = vor.u32 %v3338_v20, %v3335_v4  ;;  %v3317_v14 = vsel %vm7705_vm8, %v3312_v55, %v3316_v59  ;;  %v3364_v46 = vshll.u32 %v3160_v33, 16  ;;  %v3780_v27 = vld [vmem:[#allocation2 + $0x18] sm:$0xf]  ;;  %v7287_v55 = vld [vmem:[#allocation2 + $0xa8] ss:$8 sps:$4 sm:$0xff]  }
 0x1e7   : > { %v6339_v9 = vcombine.low %v3289_v0, %v3303_v47  ;;  %v3326_v38 = vrot.slane %v3325_v21, 4  ;;  %v3342_v16 = vshll.u32 %v3157_v41, 16  ;;  %v3352_v58 = vrot.slane %v3350_v12, 5  ;;  %v3782_v47 = vld [vmem:[#allocation2 + $0x20] sm:$0xf]  ;;  %v7291_v24 = vld [vmem:[%s8789_s3 + $0x48] sm:$0xff]  }
 0x1e8   : > { %v3356_v7 = vshll.u32 %v3159_v50, 16  ;;  %v3375_v17 = vshrl.u32 %v3162_v3, 16  ;;  %v3363_v22 = vrot.slane %v3361_v53, 4  ;;  %v3366_v23 = vrot.slane %v3364_v46, 5  ;;  %v7288_v41 = vld [vmem:[#allocation2 + $0xb8] ss:$8 sps:$4 sm:$0xff]  }
 0x1e9   : > { %6845 = vmatprep.mubr.msk.bf16.mxu1 %vm843_vm2, %v6339_v9  ;;  %v3331_v2 = vsel %vm7705_vm8, %v3326_v38, %v3330_v13  ;;  %v3340_v26 = vrot.slane %v3339_v1, 4  ;;  %v3353_v48 = vor.u32 %v3352_v58, %v3349_v6  ;;  %v3370_v30 = vshll.u32 %v3161_v15, 16  ;;  %v3777_v4 = vld [vmem:[#allocation2 + $0xc] sm:$0x1]  ;;  %v8382_v50 = vld [vmem:[%s8789_s3 + $0x50] sm:$0xff]  }
 0x1ea   : > { %v6340_v10 = vcombine.low %v3317_v14, %v3331_v2  ;;  %v3367_v28 = vor.u32 %v3366_v23, %v3363_v22  ;;  %v3377_v18 = vrot.slane %v3375_v17, 4  ;;  %v3378_v57 = vshll.u32 %v3162_v3, 16  ;;  %v3784_v9 = vld [vmem:[#allocation2 + $0x28] sm:$0xf]  ;;  %v3779_v1 = vld [vmem:[#allocation2 + $0x14] sm:$0x1] }
 0x1eb   : > { %v3344_v25 = vrot.slane %v3342_v16, 5  ;;  %v3354_v35 = vrot.slane %v3353_v48, 4  ;;  %v3358_v62 = vrot.slane %v3356_v7, 5  ;;  %v3384_v63 = vshll.u32 %v3163_v51, 16  ;;  %v3781_v12 = vld [vmem:[#allocation2 + $0x1c] sm:$0x1] }
 0x1ec   : > { %6846 = vmatmul.mubr.msk.bf16.gmra.mrb[0].mxu1 %vm843_vm2, %v6340_v10  ;;  %v3368_v36 = vrot.slane %v3367_v28, 4  ;;  %v3380_v39 = vrot.slane %v3378_v57, 5  ;;  %v3372_v11 = vrot.slane %v3370_v30, 5  ;;  %v3809_v49 = vshrl.u32 %v3776_v61, 16  ;;  %v7289_v14 = vld [vmem:[#allocation2 + $0xc8] ss:$8 sps:$4 sm:$0xff]  }
 0x1ed   : > { %v3345_v29 = vsel %vm7705_vm8, %v3340_v26, %v3344_v25  ;;  %v3359_v43 = vsel %vm7705_vm8, %v3354_v35, %v3358_v62  ;;  %v3386_v56 = vrot.slane %v3384_v63, 5  ;;  %v3812_v31 = vshll.u32 %v3776_v61, 16  ;;  %v3786_v46 = vld [vmem:[#allocation2 + $0x30] sm:$0xf]  ;;  %v3783_v58 = vld [vmem:[#allocation2 + $0x24] sm:$0x1] }
 0x1ee   : > { %v6341_v45 = vcombine.low %v3345_v29, %v3359_v43  ;;  %v3381_v8 = vor.u32 %v3380_v39, %v3377_v18  ;;  %v3373_v40 = vsel %vm7705_vm8, %v3368_v36, %v3372_v11  ;;  %v3823_v32 = vshrl.u32 %v3778_v5, 16  ;;  %v3788_v23 = vld [vmem:[#allocation2 + $0x38] sm:$0xf]  ;;  %v3790_v10 = vld [vmem:[#allocation2 + $0x40] sm:$0xf] }
 0x1ef   : > { %v3826_v19 = vshll.u32 %v3778_v5, 16  ;;  %v3811_v3 = vrot.slane %v3809_v49, 4  ;;  %v3814_v20 = vrot.slane %v3812_v31, 5  ;;  %v3837_v52 = vshrl.u32 %v3780_v27, 16  ;;  %v7290_v26 = vld [vmem:[#allocation2 + $0xe0] ss:$8 sps:$4 sm:$0xff]  }
 0x1f0   : > { %6849 = vmatprep.mubr.msk.bf16.mxu1 %vm843_vm2, %v6341_v45  ;;  %v3382_v54 = vrot.slane %v3381_v8, 4  ;;  %v3840_v33 = vshll.u32 %v3780_v27, 16  ;;  %v3851_v0 = vshrl.u32 %v3782_v47, 16  ;;  %v3825_v59 = vrot.slane %v3823_v32, 4  ;;  %v3785_v36 = vld [vmem:[#allocation2 + $0x2c] sm:$0x1] }
 0x1f1   : > { %v3828_v21 = vrot.slane %v3826_v19, 5  ;;  %v3854_v13 = vshll.u32 %v3782_v47, 16  ;;  %v3818_v6 = vshll.u32 %v3777_v4, 16  ;;  %v3815_v38 = vor.u32 %v3814_v20, %v3811_v3  ;;  %v3792_v8 = vld [vmem:[#allocation2 + $0x50] sm:$0xf] }
 0x1f2   : > { %v3387_v34 = vsel %vm7705_vm8, %v3382_v54, %v3386_v56  ;;  %v3839_v15 = vrot.slane %v3837_v52, 4  ;;  %v3842_v53 = vrot.slane %v3840_v33, 5  ;;  %v3865_v17 = vshrl.u32 %v3784_v9, 16  ;;  %v3794_v49 = vld [vmem:[#allocation2 + $0x58] sm:$0xf] }
 0x1f3   : > { %v6342_v37 = vcombine.low %v3373_v40, %v3387_v34  ;;  %v3829_v16 = vor.u32 %v3828_v21, %v3825_v59  ;;  %v3856_v7 = vrot.slane %v3854_v13, 5  ;;  %v3868_v2 = vshll.u32 %v3784_v9, 16  ;;  %v7292_v31 = vld [vmem:[#allocation2 + $0xf0] ss:$8 sps:$4 sm:$0xff]   ;;  %v3787_v27 = vld [vmem:[#allocation2 + $0x34] sm:$0x1] }
 0x1f4   : > { %v3832_v22 = vshll.u32 %v3779_v1, 16  ;;  %v3846_v48 = vshll.u32 %v3781_v12, 16  ;;  %v3879_v51 = vshrl.u32 %v3786_v46, 16  ;;  %v3882_v28 = vshll.u32 %v3786_v46, 16  ;;  %v3796_v21 = vld [vmem:[#allocation2 + $0x60] sm:$0xf] }
 0x1f5   : > { %6850 = vmatmul.mubr.msk.bf16.gmra.mrb[4].mxu1 %vm843_vm2, %v6342_v37  ;;  %v3816_v30 = vrot.slane %v3815_v38, 4  ;;  %v3820_v18 = vrot.slane %v3818_v6, 5  ;;  %v3843_v57 = vor.u32 %v3842_v53, %v3839_v15  ;;  %v3860_v25 = vshll.u32 %v3783_v58, 16  ;;  %v3789_v6 = vld [vmem:[#allocation2 + $0x3c] sm:$0x1] }
 0x1f6   : > { %6857 = vmatprep.mubr.msk.bf16.mxu1 %vm843_vm2, %v7285_v60  ;;  %v3830_v35 = vrot.slane %v3829_v16, 4  ;;  %v3867_v39 = vrot.slane %v3865_v17, 4  ;;  %v3870_v63 = vrot.slane %v3868_v2, 5  ;;  %v3834_v29 = vrot.slane %v3832_v22, 5  ;;  %v3791_v15 = vld [vmem:[#allocation2 + $0x44] sm:$0x1] }
 0x1f7   : > { %v3893_v43 = vshrl.u32 %v3788_v23, 16  ;;  %v3907_v45 = vshrl.u32 %v3790_v10, 16  ;;  %v3910_v11 = vshll.u32 %v3790_v10, 16  ;;  %v3848_v40 = vrot.slane %v3846_v48, 5  ;;  %v3793_v53 = vld [vmem:[#allocation2 + $0x54] sm:$0x1] }
 0x1f8   : > { %v3881_v54 = vrot.slane %v3879_v51, 4  ;;  %v3884_v56 = vrot.slane %v3882_v28, 5  ;;  %v3896_v34 = vshll.u32 %v3788_v23, 16  ;;  %v3821_v37 = vsel %vm7705_vm8, %v3816_v30, %v3820_v18  ;;  %v3798_v58 = vld [vmem:[#allocation2 + $0x68] sm:$0xf] }
 0x1f9   : > { %v3844_v60 = vrot.slane %v3843_v57, 4  ;;  %v3862_v61 = vrot.slane %v3860_v25, 5  ;;  %v3874_v5 = vshll.u32 %v3785_v36, 16  ;;  %v3835_v32 = vsel %vm7705_vm8, %v3830_v35, %v3834_v29  ;;  %v3795_v23 = vld [vmem:[#allocation2 + $0x5c] sm:$0x1] }
 0x1fa   : > { %v3871_v47 = vor.u32 %v3870_v63, %v3867_v39  ;;  %v3909_v3 = vrot.slane %v3907_v45, 4  ;;  %v3912_v4 = vrot.slane %v3910_v11, 5  ;;  %v3924_v20 = vshll.u32 %v3792_v8, 16  ;;  %v3797_v18 = vld [vmem:[#allocation2 + $0x64] sm:$0x1] }
 0x1fb   : > { %v3885_v52 = vor.u32 %v3884_v56, %v3881_v54  ;;  %v3898_v33 = vrot.slane %v3896_v34, 5  ;;  %v3938_v59 = vshll.u32 %v3794_v49, 16  ;;  %v6379_v13 = vcombine.low %v3821_v37, %v3835_v32  ;;  %v3800_v36 = vld [vmem:[#allocation2 + $0x70] sm:$0xf]  ;;  %v3802_v37 = vld [vmem:[#allocation2 + $0x78] sm:$0xf] }
 0x1fc   : > { %v3876_v9 = vrot.slane %v3874_v5, 5  ;;  %v3888_v1 = vshll.u32 %v3787_v27, 16  ;;  %v3849_v12 = vsel %vm7705_vm8, %v3844_v60, %v3848_v40  ;;  %v3872_v38 = vrot.slane %v3871_v47, 4  ;;  %v7294_v39 = vld [vmem:[#allocation2 + $0x110] ss:$8 sps:$4 sm:$0xff]  }
 0x1fd   : > { %6858 = vmatmul.mubr.msk.bf16.vlgmr.msra.gmra.mrb[8].mxu1 %vm843_vm2, %v7287_v55  ;;  %v3921_v55 = vshrl.u32 %v3792_v8, 16  ;;  %v3913_v46 = vor.u32 %v3912_v4, %v3909_v3  ;;  %v3926_v16 = vrot.slane %v3924_v20, 5  ;;  %v3952_v17 = vshll.u32 %v3796_v21, 16 }
 0x1fe   : > { %6874 = vmatpush3.bf16.msra.mxu1 %v8342_v44  ;;  %6861 = vmatprep.mubr.msk.bf16.mxu1 %vm843_vm2, %v7288_v41  ;;  %v3853_v44 = vrot.slane %v3851_v0, 4  ;;  %v3895_v41 = vrot.slane %v3893_v43, 4  ;;  %v3935_v0 = vshrl.u32 %v3794_v49, 16  ;;  %v3886_v2 = vrot.slane %v3885_v52, 4  ;;  %v3801_v52 = vld [vmem:[#allocation2 + $0x74] sm:$0x1] }
 0x1ff   : > { %6875 = vmatprep.subr.bf16.mxu1 %v7291_v24  ;;  %v3890_v51 = vrot.slane %v3888_v1, 5  ;;  %v3902_v28 = vshll.u32 %v3789_v6, 16  ;;  %v3916_v30 = vshll.u32 %v3791_v15, 16  ;;  %v3877_v57 = vsel %vm7705_vm8, %v3872_v38, %v3876_v9  ;;  %v3804_v9 = vld [vmem:[#allocation2 + $0x80] sm:$0xf] }
 0x200   : > { %v3857_v62 = vor.u32 %v3856_v7, %v3853_v44  ;;  %v3923_v44 = vrot.slane %v3921_v55, 4  ;;  %v3949_v7 = vshrl.u32 %v3796_v21, 16  ;;  %v3899_v22 = vor.u32 %v3898_v33, %v3895_v41  ;;  %v3799_v55 = vld [vmem:[#allocation2 + $0x6c] sm:$0x1]  ;;  %v3806_v41 = vld [vmem:[#allocation2 + $0x88] sm:$0xf] }
 0x201   : > { %v3937_v10 = vrot.slane %v3935_v0, 4  ;;  %v3930_v25 = vshll.u32 %v3793_v53, 16  ;;  %v3963_v35 = vshrl.u32 %v3798_v58, 16  ;;  %v3914_v63 = vrot.slane %v3913_v46, 4  ;;  %v4210_v38 = vld [vmem:[#allocation2 + $0x98] sm:$0xf] }
 0x202   : > { %6876 = vmatpush3.bf16.msra.mxu1 %v7291_v24  ;;  %v3858_v19 = vrot.slane %v3857_v62, 4  ;;  %v7293_v24 = vld [vmem:[#allocation2 + $0x100] ss:$8 sps:$4 sm:$0xff]   ;;  %v3966_v62 = vshll.u32 %v3798_v58, 16  ;;  %v3927_v29 = vor.u32 %v3926_v16, %v3923_v44  ;;  %v3951_v43 = vrot.slane %v3949_v7, 4  ;;  %v7296_v53 = vld [vmem:[%s8789_s3 + $0x58] sm:$0xff]  }
 0x203   : > { %6893 = vmatprep.subr.bf16.mxu1 %v8382_v50  ;;  %v3954_v45 = vrot.slane %v3952_v17, 5  ;;  %v3891_v11 = vsel %vm7705_vm8, %v3886_v2, %v3890_v51  ;;  %v3900_v8 = vrot.slane %v3899_v22, 4  ;;  %v3944_v54 = vshll.u32 %v3795_v23, 16  ;;  %v4212_v58 = vld [vmem:[#allocation2 + $0xa0] sm:$0xf] }
 0x204   : > { %v3918_v56 = vrot.slane %v3916_v30, 5  ;;  %v3958_v34 = vshll.u32 %v3797_v18, 16  ;;  %v3977_v60 = vshrl.u32 %v3800_v36, 16  ;;  %v3904_v5 = vrot.slane %v3902_v28, 5  ;;  %v3803_v23 = vld [vmem:[#allocation2 + $0x7c] sm:$0x1] }
 0x205   : > { %6862 = vmatmul.mubr.msk.bf16.gmra.mrb[12].mxu1 %vm843_vm2, %v7289_v14  ;;  %v3863_v14 = vsel %vm7705_vm8, %v3858_v19, %v3862_v61  ;;  %v3980_v61 = vshll.u32 %v3800_v36, 16  ;;  %v3932_v49 = vrot.slane %v3930_v25, 5  ;;  %v3968_v32 = vrot.slane %v3966_v62, 5 }
 0x206   : > { %6865 = vmatprep.mubr.msk.bf16.mxu1 %vm843_vm2, %v7290_v26  ;;  %v3940_v26 = vrot.slane %v3938_v59, 5  ;;  %v6380_v48 = vcombine.low %v3849_v12, %v3863_v14  ;;  %v6381_v19 = vcombine.low %v3877_v57, %v3891_v11  ;;  %v3919_v27 = vsel %vm7705_vm8, %v3914_v63, %v3918_v56  ;;  %v8424_v63 = vld [vmem:[%s8789_s3 + $0x60] sm:$0xff]   ;;  %v3807_v56 = vld [vmem:[#allocation2 + $0x8c] sm:$0x1] }
 0x207   : > { %v3928_v47 = vrot.slane %v3927_v29, 4  ;;  %v3905_v3 = vsel %vm7705_vm8, %v3900_v8, %v3904_v5  ;;  %v3946_v20 = vrot.slane %v3944_v54, 5  ;;  %v3991_v33 = vshrl.u32 %v3802_v37, 16  ;;  %v4216_v29 = vld [vmem:[#allocation2 + $0xb0] sm:$0xf] }
 0x208   : > { %v3941_v40 = vor.u32 %v3940_v26, %v3937_v10  ;;  %v8407_v0 = vrot.slane %v3958_v34, 5  ;;  %v3979_v59 = vrot.slane %v3977_v60, 4  ;;  %v3982_v21 = vrot.slane %v3980_v61, 5 }
 0x209   : > { %v6382_v1 = vcombine.low %v3905_v3, %v3919_v27  ;;  %v4019_v12 = vshrl.u32 %v3806_v41, 16  ;;  %v4022_v14 = vshll.u32 %v3806_v41, 16  ;;  %v3933_v15 = vsel %vm7705_vm8, %v3928_v47, %v3932_v49  ;;  %v4218_v47 = vld [vmem:[#allocation2 + $0xb8] sm:$0xf] }
 0x20a   : > { %v3942_v4 = vrot.slane %v3941_v40, 4  ;;  %v3972_v46 = vshll.u32 %v3799_v55, 16  ;;  %v3986_v16 = vshll.u32 %v3801_v52, 16  ;;  %v3993_v17 = vrot.slane %v3991_v33, 4  ;;  %v4211_v33 = vld [vmem:[#allocation2 + $0x9c] sm:$0x1] }
 0x20b   : > { %v4005_v2 = vshrl.u32 %v3804_v9, 16  ;;  %v4008_v22 = vshll.u32 %v3804_v9, 16  ;;  %v3983_v10 = vor.u32 %v3982_v21, %v3979_v59  ;;  %v4243_v51 = vshrl.u32 %v4210_v38, 16  ;;  %v4220_v9 = vld [vmem:[#allocation2 + $0xc0] sm:$0xf] }
 0x20c   : > { %v3947_v7 = vsel %vm7705_vm8, %v3942_v4, %v3946_v20  ;;  %v4246_v28 = vshll.u32 %v4210_v38, 16  ;;  %v4021_v18 = vrot.slane %v4019_v12, 4  ;;  %v4024_v57 = vrot.slane %v4022_v14, 5  ;;  %v4215_v38 = vld [vmem:[#allocation2 + $0xac] sm:$0x1] }
 0x20d   : > { %6866 = vmatmul.mubr.msk.bf16.gmra.mrb[0].mxu1 %vm843_vm2, %v7292_v31  ;;  %v3965_v31 = vrot.slane %v3963_v35, 4  ;;  %v4257_v25 = vshrl.u32 %v4212_v58, 16  ;;  %v4214_v35 = vld [vmem:[#allocation2 + $0xa8] sm:$0xf]  ;;  %v6383_v62 = vcombine.low %v3933_v15, %v3947_v7  ;;  %v3974_v36 = vrot.slane %v3972_v46, 5 }
 0x20e   : > { %6869 = vmatprep.mubr.msk.bf16.mxu1 %vm843_vm2, %v7293_v24  ;;  %v3955_v24 = vor.u32 %v3954_v45, %v3951_v43  ;;  %v4000_v43 = vshll.u32 %v3803_v23, 16  ;;  %v3805_v45 = vld [vmem:[#allocation2 + $0x84] sm:$0x1]  ;;  %v4007_v11 = vrot.slane %v4005_v2, 4  ;;  %v4010_v8 = vrot.slane %v4008_v22, 5 }
 0x20f   : > { %v3969_v6 = vor.u32 %v3968_v32, %v3965_v31  ;;  %v3984_v40 = vrot.slane %v3983_v10, 4  ;;  %v4245_v34 = vrot.slane %v4243_v51, 4  ;;  %v4025_v61 = vor.u32 %v4024_v57, %v4021_v18  ;;  %v4217_v10 = vld [vmem:[#allocation2 + $0xb4] sm:$0x1] }
 0x210   : > { %v3956_v44 = vrot.slane %v3955_v24, 4  ;;  %v4259_v5 = vrot.slane %v4257_v25, 4  ;;  %v4271_v49 = vshrl.u32 %v4214_v35, 16  ;;  %v4274_v32 = vshll.u32 %v4214_v35, 16  ;;  %v4219_v35 = vld [vmem:[#allocation2 + $0xbc] sm:$0x1] }
 0x211   : > { %v3970_v30 = vrot.slane %v3969_v6, 4  ;;  %v4288_v27 = vshll.u32 %v4216_v29, 16  ;;  %v4002_v55 = vrot.slane %v4000_v43, 5  ;;  %v4011_v24 = vor.u32 %v4010_v8, %v4007_v11  ;;  %v4224_v11 = vld [vmem:[#allocation2 + $0xd0] sm:$0xf] }
 0x212   : > { %v4014_v41 = vshll.u32 %v3805_v45, 16  ;;  %v4028_v3 = vshll.u32 %v3807_v56, 16  ;;  %v4026_v21 = vrot.slane %v4025_v61, 4  ;;  %v4299_v6 = vshrl.u32 %v4218_v47, 16 }
 0x213   : > { %v3975_v60 = vsel %vm7705_vm8, %v3970_v30, %v3974_v36  ;;  %v4302_v12 = vshll.u32 %v4218_v47, 16  ;;  %v4276_v15 = vrot.slane %v4274_v32, 5  ;;  %v4313_v2 = vshrl.u32 %v4220_v9, 16 }
 0x214   : > { %v4016_v46 = vrot.slane %v4014_v41, 5  ;;  %v4316_v22 = vshll.u32 %v4220_v9, 16  ;;  %v4301_v51 = vrot.slane %v4299_v6, 4  ;;  %v4308_v56 = vshll.u32 %v4219_v35, 16 }
 0x215   : > { %6870 = vmatmul.mubr.msk.bf16.gmra.mrb[4].mxu1 %vm843_vm2, %v7294_v39  ;;  %v8419_v39 = vrot.slane %v3986_v16, 5  ;;  %v4030_v16 = vrot.slane %v4028_v3, 5  ;;  %v4315_v43 = vrot.slane %v4313_v2, 4  ;;  %v4344_v47 = vshll.u32 %v4224_v11, 16  ;;  %v4227_v2 = vld [vmem:[#allocation2 + $0xe4] sm:$0x1] }
 0x216   : > { %6877 = vmatprep.mubr.msk.bf16.mxu1 %vm843_vm2, %v6379_v13  ;;  %v3994_v13 = vshll.u32 %v3802_v37, 16  ;;  %v4248_v37 = vrot.slane %v4246_v28, 5  ;;  %v4304_v28 = vrot.slane %v4302_v12, 5  ;;  %v4318_v45 = vrot.slane %v4316_v22, 5  ;;  %v4236_v22 = vld [vmem:[#allocation2 + $0x108] sm:$0xf] }
 0x217   : > { %v3989_v20 = vsel %vm7705_vm8, %v3984_v40, %v8419_v39  ;;  %v4031_v30 = vsel %vm7705_vm8, %v4026_v21, %v4030_v16  ;;  %v4232_v16 = vld [vmem:[#allocation2 + $0xf8] sm:$0xf] }
 0x218   : > { %v3996_v26 = vrot.slane %v3994_v13, 5  ;;  %v4249_v59 = vor.u32 %v4248_v37, %v4245_v34  ;;  %v4273_v13 = vrot.slane %v4271_v49, 4  ;;  %v4228_v34 = vld [vmem:[#allocation2 + $0xe8] sm:$0xf]  ;;  %v4221_v49 = vld [vmem:[#allocation2 + $0xc4] sm:$0x1]  ;;  %v4319_v41 = vor.u32 %v4318_v45, %v4315_v43 }
 0x219   : > { %v4369_v3 = vshrl.u32 %v4228_v34, 16  ;;  %v4400_v35 = vshll.u32 %v4232_v16, 16  ;;  %v4364_v43 = vshll.u32 %v4227_v2, 16 }
 0x21a   : > { %v3997_v54 = vor.u32 %v3996_v26, %v3993_v17  ;;  %v4250_v23 = vrot.slane %v4249_v59, 4  ;;  %v4280_v26 = vshll.u32 %v4215_v38, 16  ;;  %v4277_v57 = vor.u32 %v4276_v15, %v4273_v13 }
 0x21b   : > { %v4346_v38 = vrot.slane %v4344_v47, 5  ;;  %v4240_v47 = vld [vmem:[#allocation2 + $0x118] sm:$0xf] }
 0x21c   : > { %v3998_v52 = vrot.slane %v3997_v54, 4  ;;  %v4282_v40 = vrot.slane %v4280_v26, 5  ;;  %v4305_v54 = vor.u32 %v4304_v28, %v4301_v51  ;;  %v4278_v61 = vrot.slane %v4277_v57, 4  ;;  %v4230_v28 = vld [vmem:[#allocation2 + $0xf0] sm:$0xf] }
 0x21d   : > { %6878 = vmatmul.mubr.msk.bf16.vlgmr.msra.gmra.mrb[8].mxu1 %vm843_vm2, %v6380_v48  ;;  %v4260_v48 = vshll.u32 %v4212_v58, 16  ;;  %v4252_v58 = vshll.u32 %v4211_v33, 16  ;;  %v4310_v33 = vrot.slane %v4308_v56, 5  ;;  %v4229_v57 = vld [vmem:[#allocation2 + $0xec] sm:$0x1]  ;;  %v4383_v45 = vshrl.u32 %v4230_v28, 16 }
 0x21e   : > { %6894 = vmatpush3.bf16.msra.mxu1 %v8382_v50  ;;  %6881 = vmatprep.mubr.msk.bf16.mxu1 %vm843_vm2, %v6381_v19  ;;  %v3961_v50 = vsel %vm7705_vm8, %v3956_v44, %v8407_v0  ;;  %v4285_v19 = vshrl.u32 %v4216_v29, 16  ;;  %v4213_v0 = vld [vmem:[#allocation2 + $0xa4] sm:$0x1]  ;;  %v4012_v44 = vrot.slane %v4011_v24, 4  ;;  %v4003_v7 = vsel %vm7705_vm8, %v3998_v52, %v4002_v55  ;;  %v4226_v55 = vld [vmem:[#allocation2 + $0xe0] sm:$0xf] }
 0x21f   : > { %6895 = vmatprep.subr.bf16.mxu1 %v7296_v53  ;;  %v4262_v31 = vrot.slane %v4260_v48, 5  ;;  %v6384_v4 = vcombine.low %v3961_v50, %v3975_v60  ;;  %v4266_v17 = vshll.u32 %v4213_v0, 16  ;;  %v4254_v39 = vrot.slane %v4252_v58, 5  ;;  %v4222_v48 = vld [vmem:[#allocation2 + $0xc8] sm:$0xf]  ;;  %v7311_v58 = vld [vmem:[%s8791_s5] sm:$0xff]  }
 0x220   : > { %v4017_v36 = vsel %vm7705_vm8, %v4012_v44, %v4016_v46  ;;  %v4294_v50 = vshll.u32 %v4217_v10, 16  ;;  %v4327_v32 = vshrl.u32 %v4222_v48, 16  ;;  %v4306_v52 = vrot.slane %v4305_v54, 4  ;;  %6973 = vmatprep.subr.bf16.mxu0 %v7311_v58  ;;  %v7298_v54 = vld [vmem:[%s8789_s3 + $0x68] sm:$0xff]  }
 0x221   : > { %v4263_v14 = vor.u32 %v4262_v31, %v4259_v5  ;;  %v4268_v29 = vrot.slane %v4266_v17, 5  ;;  %v6386_v8 = vcombine.low %v4017_v36, %v4031_v30  ;;  %v4255_v37 = vsel %vm7705_vm8, %v4250_v23, %v4254_v39  ;;  %v4223_v31 = vld [vmem:[#allocation2 + $0xcc] sm:$0x1]  ;;  %6974 = vmatpush3.bf16.msra.mxu0 %v7311_v58 }
 0x222   : > { %6896 = vmatpush3.bf16.msra.mxu1 %v7296_v53  ;;  %v4290_v53 = vrot.slane %v4288_v27, 5  ;;  %v4341_v27 = vshrl.u32 %v4224_v11, 16  ;;  %v4296_v24 = vrot.slane %v4294_v50, 5  ;;  %v4322_v0 = vshll.u32 %v4221_v49, 16 }
 0x223   : > { %6913 = vmatprep.subr.bf16.mxu1 %v8424_v63  ;;  %v4264_v18 = vrot.slane %v4263_v14, 4  ;;  %v4336_v21 = vshll.u32 %v4223_v31, 16  ;;  %v4355_v13 = vshrl.u32 %v4226_v55, 16  ;;  %v4358_v9 = vshll.u32 %v4226_v55, 16  ;;  %v8471_v55 = vld [vmem:[%s8789_s3 + $0x70] sm:$0xff]  }
 0x224   : > { %v4329_v6 = vrot.slane %v4327_v32, 4  ;;  %v4343_v14 = vrot.slane %v4341_v27, 4  ;;  %v4283_v15 = vsel %vm7705_vm8, %v4278_v61, %v4282_v40  ;;  %v4371_v44 = vrot.slane %v4369_v3, 4  ;;  %v4231_v61 = vld [vmem:[#allocation2 + $0xf4] sm:$0x1] }
 0x225   : > { %6882 = vmatmul.mubr.msk.bf16.gmra.mrb[12].mxu1 %vm843_vm2, %v6382_v1  ;;  %v4287_v1 = vrot.slane %v4285_v19, 4  ;;  %v4269_v60 = vsel %vm7705_vm8, %v4264_v18, %v4268_v29  ;;  %v4330_v19 = vshll.u32 %v4222_v48, 16  ;;  %v4324_v17 = vrot.slane %v4322_v0, 5  ;;  %v4233_v3 = vld [vmem:[#allocation2 + $0xfc] sm:$0x1] }
 0x226   : > { %6885 = vmatprep.mubr.msk.bf16.mxu1 %vm843_vm2, %v6383_v62  ;;  %v6385_v62 = vcombine.low %v3989_v20, %v4003_v7  ;;  %v6401_v20 = vcombine.low %v4255_v37, %v4269_v60  ;;  %v4311_v23 = vsel %vm7705_vm8, %v4306_v52, %v4310_v33  ;;  %v8460_v10 = vrot.slane %v4336_v21, 5  ;;  %v4238_v21 = vld [vmem:[#allocation2 + $0x110] sm:$0xf] }
 0x227   : > { %v4291_v25 = vor.u32 %v4290_v53, %v4287_v1  ;;  %v4332_v12 = vrot.slane %v4330_v19, 5  ;;  %v4320_v1 = vrot.slane %v4319_v41, 4  ;;  %v4225_v53 = vld [vmem:[#allocation2 + $0xd4] sm:$0x1]  ;;  %v4357_v26 = vrot.slane %v4355_v13, 4 }
 0x228   : > { %v4360_v51 = vrot.slane %v4358_v9, 5  ;;  %v4347_v18 = vor.u32 %v4346_v38, %v4343_v14  ;;  %v4425_v48 = vshrl.u32 %v4236_v22, 16  ;;  %v4428_v29 = vshll.u32 %v4236_v22, 16 }
 0x229   : > { %v4292_v5 = vrot.slane %v4291_v25, 4  ;;  %v4333_v30 = vor.u32 %v4332_v12, %v4329_v6  ;;  %v4397_v25 = vshrl.u32 %v4232_v16, 16  ;;  %v4325_v36 = vsel %vm7705_vm8, %v4320_v1, %v4324_v17  ;;  %v4237_v6 = vld [vmem:[#allocation2 + $0x10c] sm:$0x1] }
 0x22a   : > { %v4350_v50 = vshll.u32 %v4225_v53, 16  ;;  %v4386_v11 = vshll.u32 %v4230_v28, 16  ;;  %v4378_v40 = vshll.u32 %v4229_v57, 16  ;;  %v6403_v37 = vcombine.low %v4311_v23, %v4325_v36 }
 0x22b   : > { %v4297_v59 = vsel %vm7705_vm8, %v4292_v5, %v4296_v24  ;;  %v4348_v60 = vrot.slane %v4347_v18, 4  ;;  %v4399_v5 = vrot.slane %v4397_v25, 4  ;;  %v4402_v49 = vrot.slane %v4400_v35, 5 }
 0x22c   : > { %v6402_v7 = vcombine.low %v4283_v15, %v4297_v59  ;;  %v4334_v31 = vrot.slane %v4333_v30, 4  ;;  %v4427_v19 = vrot.slane %v4425_v48, 4  ;;  %v4430_v27 = vrot.slane %v4428_v29, 5 }
 0x22d   : > { %6886 = vmatmul.mubr.msk.bf16.gmra.mrb[0].mxu1 %vm843_vm2, %v6384_v4  ;;  %v4372_v4 = vshll.u32 %v4228_v34, 16  ;;  %v4352_v24 = vrot.slane %v4350_v50, 5  ;;  %v4366_v41 = vrot.slane %v4364_v43, 5  ;;  %v4380_v33 = vrot.slane %v4378_v40, 5 }
 0x22e   : > { %6889 = vmatprep.mubr.msk.bf16.mxu1 %vm843_vm2, %v6385_v62  ;;  %v4234_v62 = vld [vmem:[#allocation2 + $0x100] sm:$0xf]  ;;  %v4403_v9 = vor.u32 %v4402_v49, %v4399_v5  ;;  %v4453_v12 = vshrl.u32 %v4240_v47, 16  ;;  %v4339_v14 = vsel %vm7705_vm8, %v4334_v31, %v8460_v10  ;;  %v4392_v15 = vshll.u32 %v4231_v61, 16 }
 0x22f   : > { %v4374_v46 = vrot.slane %v4372_v4, 5  ;;  %v4411_v56 = vshrl.u32 %v4234_v62, 16  ;;  %v4414_v34 = vshll.u32 %v4234_v62, 16  ;;  %v4385_v4 = vrot.slane %v4383_v45, 4 }
 0x230   : > { %v4353_v13 = vsel %vm7705_vm8, %v4348_v60, %v4352_v24  ;;  %v4431_v1 = vor.u32 %v4430_v27, %v4427_v19  ;;  %v4439_v16 = vshrl.u32 %v4238_v21, 16  ;;  %v4442_v58 = vshll.u32 %v4238_v21, 16  ;;  %v4854_v24 = vld [vmem:[#allocation2 + $0x128] sm:$0xf]  ;;  %v7305_v21 = vld [vmem:[%s8789_s3 + $0x78] sm:$0xff]  }
 0x231   : > { %v4375_v39 = vor.u32 %v4374_v46, %v4371_v44  ;;  %v4413_v0 = vrot.slane %v4411_v56, 4  ;;  %v4416_v59 = vrot.slane %v4414_v34, 5  ;;  %v4406_v44 = vshll.u32 %v4233_v3, 16  ;;  %v4235_v46 = vld [vmem:[#allocation2 + $0x104] sm:$0x1] }
 0x232   : > { %v4434_v22 = vshll.u32 %v4237_v6, 16  ;;  %v4404_v10 = vrot.slane %v4403_v9, 4  ;;  %v4420_v28 = vshll.u32 %v4235_v46, 16  ;;  %v4432_v30 = vrot.slane %v4431_v1, 4  ;;  %v4855_v6 = vld [vmem:[#allocation2 + $0x12c] sm:$0x1] }
 0x233   : > { %v4376_v32 = vrot.slane %v4375_v39, 4  ;;  %v4417_v2 = vor.u32 %v4416_v59, %v4413_v0  ;;  %v4408_v57 = vrot.slane %v4406_v44, 5  ;;  %v4441_v25 = vrot.slane %v4439_v16, 4  ;;  %v4241_v39 = vld [vmem:[#allocation2 + $0x11c] sm:$0x1]  ;;  %v8512_v44 = vld [vmem:[%s8789_s3 + $0x80] sm:$0xff]  }
 0x234   : > { %v4444_v35 = vrot.slane %v4442_v58, 5  ;;  %v4436_v36 = vrot.slane %v4434_v22, 5  ;;  %v4394_v48 = vrot.slane %v4392_v15, 5  ;;  %v4422_v43 = vrot.slane %v4420_v28, 5  ;;  %v4860_v0 = vld [vmem:[#allocation2 + $0x140] sm:$0xf] }
 0x235   : > { %6890 = vmatmul.mubr.msk.bf16.gmra.mrb[4].mxu1 %vm843_vm2, %v6386_v8  ;;  %v4361_v8 = vor.u32 %v4360_v51, %v4357_v26  ;;  %v4381_v38 = vsel %vm7705_vm8, %v4376_v32, %v4380_v33  ;;  %v4455_v26 = vrot.slane %v4453_v12, 4  ;;  %v4418_v62 = vrot.slane %v4417_v2, 4  ;;  %v4858_v33 = vld [vmem:[#allocation2 + $0x138] sm:$0xf]  ;;  %v7301_v59 = vld [vmem:[#allocation2 + $0x1c8] ss:$8 sps:$4 sm:$0xff]  }
 0x236   : > { %6897 = vmatprep.mubr.msk.bf16.mxu1 %vm843_vm2, %v6401_v20  ;;  %v4388_v20 = vrot.slane %v4386_v11, 5  ;;  %v4409_v29 = vsel %vm7705_vm8, %v4404_v10, %v4408_v57  ;;  %v4437_v45 = vsel %vm7705_vm8, %v4432_v30, %v4436_v36  ;;  %v4239_v11 = vld [vmem:[#allocation2 + $0x114] sm:$0x1]  ;;  %v4445_v40 = vor.u32 %v4444_v35, %v4441_v25  ;;  %v4862_v46 = vld [vmem:[#allocation2 + $0x148] sm:$0xf] }
 0x237   : > { %v4362_v52 = vrot.slane %v4361_v8, 4  ;;  %v4423_v34 = vsel %vm7705_vm8, %v4418_v62, %v4422_v43  ;;  %v4448_v60 = vshll.u32 %v4239_v11, 16  ;;  %v4887_v3 = vshrl.u32 %v4854_v24, 16  ;;  %v4857_v16 = vld [vmem:[#allocation2 + $0x134] sm:$0x1] }
 0x238   : > { %v4389_v53 = vor.u32 %v4388_v20, %v4385_v4  ;;  %v4446_v5 = vrot.slane %v4445_v40, 4  ;;  %v4890_v4 = vshll.u32 %v4854_v24, 16  ;;  %v4896_v58 = vshll.u32 %v4855_v6, 16  ;;  %v4864_v10 = vld [vmem:[#allocation2 + $0x150] sm:$0xf] }
 0x239   : > { %v4367_v17 = vsel %vm7705_vm8, %v4362_v52, %v4366_v41  ;;  %v4450_v31 = vrot.slane %v4448_v60, 5  ;;  %v4856_v41 = vld [vmem:[#allocation2 + $0x130] sm:$0xf]  ;;  %v4889_v9 = vrot.slane %v4887_v3, 4  ;;  %v4943_v30 = vshrl.u32 %v4862_v46, 16 }
 0x23a   : > { %v6405_v23 = vcombine.low %v4367_v17, %v4381_v38  ;;  %v4390_v18 = vrot.slane %v4389_v53, 4  ;;  %v4901_v20 = vshrl.u32 %v4856_v41, 16  ;;  %v4904_v52 = vshll.u32 %v4856_v41, 16  ;;  %v7303_v17 = vld [vmem:[#allocation2 + $0x1e8] ss:$8 sps:$4 sm:$0xff]  }
 0x23b   : > { %v4451_v19 = vsel %vm7705_vm8, %v4446_v5, %v4450_v31  ;;  %v4892_v12 = vrot.slane %v4890_v4, 5  ;;  %v4929_v38 = vshrl.u32 %v4860_v0, 16  ;;  %v4932_v53 = vshll.u32 %v4860_v0, 16  ;;  %v7304_v57 = vld [vmem:[#allocation2 + $0x200] ss:$8 sps:$4 sm:$0xff]  }
 0x23c   : > { %v4395_v8 = vsel %vm7705_vm8, %v4390_v18, %v4394_v48  ;;  %v4903_v15 = vrot.slane %v4901_v20, 4  ;;  %v4906_v1 = vrot.slane %v4904_v52, 5  ;;  %v4946_v18 = vshll.u32 %v4862_v46, 16  ;;  %v4866_v35 = vld [vmem:[#allocation2 + $0x158] sm:$0xf] }
 0x23d   : > { %6898 = vmatmul.mubr.msk.bf16.vlgmr.msra.gmra.mrb[8].mxu1 %vm843_vm2, %v6402_v7  ;;  %v6404_v7 = vcombine.low %v4339_v14, %v4353_v13  ;;  %v6406_v56 = vcombine.low %v4395_v8, %v4409_v29  ;;  %v7302_v13 = vld [vmem:[#allocation2 + $0x1d8] ss:$8 sps:$4 sm:$0xff]   ;;  %v4918_v14 = vshll.u32 %v4858_v33, 16  ;;  %v4893_v2 = vor.u32 %v4892_v12, %v4889_v9  ;;  %v4863_v40 = vld [vmem:[#allocation2 + $0x14c] sm:$0x1] }
 0x23e   : > { %6914 = vmatpush3.bf16.msra.mxu1 %v8424_v63  ;;  %6901 = vmatprep.mubr.msk.bf16.mxu1 %vm843_vm2, %v6403_v37  ;;  %v4456_v63 = vshll.u32 %v4240_v47, 16  ;;  %v6407_v37 = vcombine.low %v4423_v34, %v4437_v45  ;;  %v7299_v47 = vld [vmem:[#allocation2 + $0x1b8] ss:$8 sps:$4 sm:$0xff]   ;;  %v4934_v28 = vrot.slane %v4932_v53, 5  ;;  %v4910_v25 = vshll.u32 %v4857_v16, 16 }
 0x23f   : > { %6915 = vmatprep.subr.bf16.mxu1 %v7298_v54  ;;  %v4957_v36 = vshrl.u32 %v4864_v10, 16  ;;  %v4868_v48 = vld [vmem:[#allocation2 + $0x160] sm:$0xf]  ;;  %v4894_v29 = vrot.slane %v4893_v2, 4  ;;  %v4870_v5 = vld [vmem:[#allocation2 + $0x170] sm:$0xf] }
 0x240   : > { %v4458_v51 = vrot.slane %v4456_v63, 5  ;;  %v4915_v63 = vshrl.u32 %v4858_v33, 16  ;;  %v4912_v34 = vrot.slane %v4910_v25, 5  ;;  %v4985_v60 = vshrl.u32 %v4868_v48, 16  ;;  %v4872_v3 = vld [vmem:[#allocation2 + $0x178] sm:$0xf] }
 0x241   : > { %v4959_v31 = vrot.slane %v4957_v36, 4  ;;  %v4952_v41 = vshll.u32 %v4863_v40, 16  ;;  %v7306_v4 = vld [vmem:[#allocation2 + $0x210] ss:$8 sps:$4 sm:$0xff]   ;;  %v4865_v33 = vld [vmem:[#allocation2 + $0x154] sm:$0x1] }
 0x242   : > { %6916 = vmatpush3.bf16.msra.mxu1 %v7298_v54  ;;  %v4459_v50 = vor.u32 %v4458_v51, %v4455_v26  ;;  %v4462_v54 = vshll.u32 %v4241_v39, 16  ;;  %v4917_v22 = vrot.slane %v4915_v63, 4  ;;  %v4907_v26 = vor.u32 %v4906_v1, %v4903_v15  ;;  %v4861_v51 = vld [vmem:[#allocation2 + $0x144] sm:$0x1]  ;;  %v4874_v1 = vld [vmem:[#allocation2 + $0x180] sm:$0xf] }
 0x243   : > { %6933 = vmatprep.subr.bf16.mxu1 %v8471_v55  ;;  %v4960_v39 = vshll.u32 %v4864_v10, 16  ;;  %v4938_v45 = vshll.u32 %v4861_v51, 16  ;;  %v4987_v9 = vrot.slane %v4985_v60, 4  ;;  %v5002_v12 = vshll.u32 %v4870_v5, 16  ;;  %v4876_v51 = vld [vmem:[#allocation2 + $0x188] sm:$0xf] }
 0x244   : > { %v4460_v61 = vrot.slane %v4459_v50, 4  ;;  %v4464_v49 = vrot.slane %v4462_v54, 5  ;;  %v4898_v50 = vrot.slane %v4896_v58, 5  ;;  %v4908_v11 = vrot.slane %v4907_v26, 4  ;;  %v4867_v58 = vld [vmem:[#allocation2 + $0x15c] sm:$0x1] }
 0x245   : > { %6902 = vmatmul.mubr.msk.bf16.gmra.mrb[12].mxu1 %vm843_vm2, %v6404_v7  ;;  %v4859_v7 = vld [vmem:[#allocation2 + $0x13c] sm:$0x1]  ;;  %v4945_v54 = vrot.slane %v4943_v30, 4  ;;  %v4940_v24 = vrot.slane %v4938_v45, 5  ;;  %v5016_v15 = vshll.u32 %v4872_v3, 16  ;;  %v4954_v46 = vrot.slane %v4952_v41, 5 }
 0x246   : > { %6905 = vmatprep.mubr.msk.bf16.mxu1 %vm843_vm2, %v6405_v23  ;;  %v4465_v32 = vsel %vm7705_vm8, %v4460_v61, %v4464_v49  ;;  %v4920_v23 = vrot.slane %v4918_v14, 5  ;;  %v4924_v62 = vshll.u32 %v4859_v7, 16  ;;  %v4988_v61 = vshll.u32 %v4868_v48, 16  ;;  %v4873_v25 = vld [vmem:[#allocation2 + $0x17c] sm:$0x1] }
 0x247   : > { %v6408_v27 = vcombine.low %v4451_v19, %v4465_v32  ;;  %v4962_v32 = vrot.slane %v4960_v39, 5  ;;  %v4974_v19 = vshll.u32 %v4866_v35, 16  ;;  %v4913_v20 = vsel %vm7705_vm8, %v4908_v11, %v4912_v34  ;;  %v4878_v40 = vld [vmem:[#allocation2 + $0x190] sm:$0xf] }
 0x248   : > { %v4921_v43 = vor.u32 %v4920_v23, %v4917_v22  ;;  %v4926_v49 = vrot.slane %v4924_v62, 5  ;;  %v4990_v6 = vrot.slane %v4988_v61, 5  ;;  %v4966_v16 = vshll.u32 %v4865_v33, 16  ;;  %v4869_v22 = vld [vmem:[#allocation2 + $0x164] sm:$0x1] }
 0x249   : > { %v4963_v63 = vor.u32 %v4962_v32, %v4959_v31  ;;  %v4976_v14 = vrot.slane %v4974_v19, 5  ;;  %v4871_v23 = vld [vmem:[#allocation2 + $0x174] sm:$0x1]  ;;  %v5004_v26 = vrot.slane %v5002_v12, 5  ;;  %v5030_v30 = vshll.u32 %v4874_v1, 16 }
 0x24a   : > { %v4991_v10 = vor.u32 %v4990_v6, %v4987_v9  ;;  %v5018_v62 = vrot.slane %v5016_v15, 5  ;;  %v4968_v39 = vrot.slane %v4966_v16, 5  ;;  %v4980_v48 = vshll.u32 %v4867_v58, 16 }
 0x24b   : > { %v5008_v45 = vshll.u32 %v4871_v23, 16  ;;  %v5041_v11 = vshrl.u32 %v4876_v51, 16  ;;  %v5032_v60 = vrot.slane %v5030_v30, 5  ;;  %v5022_v31 = vshll.u32 %v4873_v25, 16  ;;  %v7310_v23 = vld [vmem:[%s8789_s3 + $0x88] sm:$0xff]  }
 0x24c   : > { %v4982_v41 = vrot.slane %v4980_v48, 5  ;;  %v4881_v25 = vld [vmem:[#allocation2 + $0x19c] sm:$0x1] }
 0x24d   : > { %6906 = vmatmul.mubr.msk.bf16.gmra.mrb[0].mxu1 %vm843_vm2, %v6406_v56  ;;  %v4948_v56 = vrot.slane %v4946_v18, 5  ;;  %v4964_v18 = vrot.slane %v4963_v63, 4  ;;  %v5024_v12 = vrot.slane %v5022_v31, 5  ;;  %v4879_v63 = vld [vmem:[#allocation2 + $0x194] sm:$0x1] }
 0x24e   : > { %6909 = vmatprep.mubr.msk.bf16.mxu1 %vm843_vm2, %v6407_v37  ;;  %v4971_v37 = vshrl.u32 %v4866_v35, 16  ;;  %v4885_v31 = vld [vmem:[#allocation2 + $0x1ac] sm:$0x1] }
 0x24f   : > { %v4949_v0 = vor.u32 %v4948_v56, %v4945_v54  ;;  %v7308_v54 = vld [vmem:[#allocation2 + $0x230] ss:$8 sps:$4 sm:$0xff]   ;;  %v4992_v56 = vrot.slane %v4991_v10, 4  ;;  %v4969_v61 = vsel %vm7705_vm8, %v4964_v18, %v4968_v39 }
 0x251   : > { %v4950_v2 = vrot.slane %v4949_v0, 4 }
 0x255   : > { %6910 = vmatmul.mubr.msk.bf16.gmra.mrb[4].mxu1 %vm843_vm2, %v6408_v27  ;;  %v4899_v27 = vsel %vm7705_vm8, %v4894_v29, %v4898_v50  ;;  %v4994_v29 = vshll.u32 %v4869_v22, 16  ;;  %v4875_v50 = vld [vmem:[#allocation2 + $0x184] sm:$0x1] }
 0x256   : > { %6917 = vmatprep.mubr.msk.bf16.mxu1 %vm843_vm2, %v7299_v47  ;;  %v4922_v47 = vrot.slane %v4921_v43, 4  ;;  %v6445_v53 = vcombine.low %v4899_v27, %v4913_v20  ;;  %v4955_v43 = vsel %vm7705_vm8, %v4950_v2, %v4954_v46  ;;  %v5036_v19 = vshll.u32 %v4875_v50, 16  ;;  %v4880_v27 = vld [vmem:[#allocation2 + $0x198] sm:$0xf]  ;;  %v4882_v46 = vld [vmem:[#allocation2 + $0x1a0] sm:$0xf] }
 0x257   : > { %v4996_v32 = vrot.slane %v4994_v29, 5  ;;  %v5288_v2 = vld [vmem:[#allocation2 + $0x1b8] sm:$0xf]  ;;  %v5083_v18 = vshrl.u32 %v4882_v46, 16 }
 0x258   : > { %v4927_v7 = vsel %vm7705_vm8, %v4922_v47, %v4926_v49  ;;  %v5055_v47 = vshrl.u32 %v4878_v40, 16  ;;  %v5321_v39 = vshrl.u32 %v5288_v2, 16  ;;  %v5324_v48 = vshll.u32 %v5288_v2, 16 }
 0x259   : > { %v4997_v33 = vsel %vm7705_vm8, %v4992_v56, %v4996_v32  ;;  %v5292_v56 = vld [vmem:[#allocation2 + $0x1c8] sm:$0xf] }
 0x25a   : > { %v5057_v15 = vrot.slane %v5055_v47, 4  ;;  %v5323_v32 = vrot.slane %v5321_v39, 4 }
 0x25d   : > { %6918 = vmatmul.mubr.msk.bf16.vlgmr.msra.gmra.mrb[8].mxu1 %vm843_vm2, %v7301_v59  ;;  %v4999_v59 = vshrl.u32 %v4870_v5, 16 }
 0x25e   : > { %6934 = vmatpush3.bf16.msra.mxu1 %v8471_v55  ;;  %6921 = vmatprep.mubr.msk.bf16.mxu1 %vm843_vm2, %v7302_v13  ;;  %v4931_v55 = vrot.slane %v4929_v38, 4  ;;  %v4973_v13 = vrot.slane %v4971_v37, 4  ;;  %v5013_v38 = vshrl.u32 %v4872_v3, 16  ;;  %v5010_v3 = vrot.slane %v5008_v45, 5 }
 0x25f   : > { %6935 = vmatprep.subr.bf16.mxu1 %v7305_v21 }
 0x260   : > { %v4935_v8 = vor.u32 %v4934_v28, %v4931_v55  ;;  %v5001_v55 = vrot.slane %v4999_v59, 4  ;;  %v5027_v28 = vshrl.u32 %v4874_v1, 16  ;;  %v5015_v35 = vrot.slane %v5013_v38, 4  ;;  %v4877_v59 = vld [vmem:[#allocation2 + $0x18c] sm:$0x1] }
 0x261   : > { %v8537_v38 = vrot.slane %v5036_v19, 5  ;;  %v5050_v10 = vshll.u32 %v4877_v59, 16  ;;  %v5326_v19 = vrot.slane %v5324_v48, 5 }
 0x262   : > { %6936 = vmatpush3.bf16.msra.mxu1 %v7305_v21  ;;  %v4936_v52 = vrot.slane %v4935_v8, 4  ;;  %v7307_v21 = vld [vmem:[#allocation2 + $0x220] ss:$8 sps:$4 sm:$0xff]   ;;  %v5044_v8 = vshll.u32 %v4876_v51, 16  ;;  %v5005_v34 = vor.u32 %v5004_v26, %v5001_v55  ;;  %v5029_v37 = vrot.slane %v5027_v28, 4 }
 0x263   : > { %6953 = vmatprep.subr.bf16.mxu1 %v8512_v44  ;;  %v5019_v49 = vor.u32 %v5018_v62, %v5015_v35  ;;  %v5064_v26 = vshll.u32 %v4879_v63, 16  ;;  %v5290_v51 = vld [vmem:[#allocation2 + $0x1c0] sm:$0xf]  ;;  %v5289_v63 = vld [vmem:[#allocation2 + $0x1bc] sm:$0x1] }
 0x264   : > { %v5046_v20 = vrot.slane %v5044_v8, 5  ;;  %v5006_v0 = vrot.slane %v5005_v34, 4  ;;  %v5335_v45 = vshrl.u32 %v5290_v51, 16  ;;  %v5052_v8 = vrot.slane %v5050_v10, 5 }
 0x265   : > { %6922 = vmatmul.mubr.msk.bf16.gmra.mrb[12].mxu1 %vm843_vm2, %v7303_v17  ;;  %v4941_v17 = vsel %vm7705_vm8, %v4936_v52, %v4940_v24  ;;  %v5058_v24 = vshll.u32 %v4878_v40, 16  ;;  %v6447_v52 = vcombine.low %v4955_v43, %v4969_v61  ;;  %v5020_v6 = vrot.slane %v5019_v49, 4  ;;  %v5294_v61 = vld [vmem:[#allocation2 + $0x1d0] sm:$0xf] }
 0x266   : > { %6925 = vmatprep.mubr.msk.bf16.mxu1 %vm843_vm2, %v7304_v57  ;;  %v4977_v57 = vor.u32 %v4976_v14, %v4973_v13  ;;  %v6446_v36 = vcombine.low %v4927_v7, %v4941_v17  ;;  %v4884_v13 = vld [vmem:[#allocation2 + $0x1a8] sm:$0xf]  ;;  %v5069_v14 = vshrl.u32 %v4880_v27, 16  ;;  %v5011_v22 = vsel %vm7705_vm8, %v5006_v0, %v5010_v3 }
 0x267   : > { %v5060_v1 = vrot.slane %v5058_v24, 5  ;;  %v5097_v7 = vshrl.u32 %v4884_v13, 16  ;;  %v5100_v17 = vshll.u32 %v4884_v13, 16  ;;  %v5025_v28 = vsel %vm7705_vm8, %v5020_v6, %v5024_v12 }
 0x268   : > { %v4978_v5 = vrot.slane %v4977_v57, 4  ;;  %v5071_v30 = vrot.slane %v5069_v14, 4  ;;  %v5086_v57 = vshll.u32 %v4882_v46, 16  ;;  %v8549_v40 = vrot.slane %v5064_v26, 5  ;;  %v5291_v14 = vld [vmem:[#allocation2 + $0x1c4] sm:$0x1] }
 0x269   : > { %v5061_v35 = vor.u32 %v5060_v1, %v5057_v15  ;;  %v5099_v50 = vrot.slane %v5097_v7, 4  ;;  %v5102_v43 = vrot.slane %v5100_v17, 5  ;;  %v5337_v24 = vrot.slane %v5335_v45, 4  ;;  %v5293_v17 = vld [vmem:[#allocation2 + $0x1cc] sm:$0x1] }
 0x26a   : > { %v4983_v9 = vsel %vm7705_vm8, %v4978_v5, %v4982_v41  ;;  %v5349_v41 = vshrl.u32 %v5292_v56, 16  ;;  %v5106_v13 = vshll.u32 %v4885_v31, 16  ;;  %v5330_v26 = vshll.u32 %v5289_v63, 16  ;;  %v5297_v45 = vld [vmem:[#allocation2 + $0x1dc] sm:$0x1] }
 0x26b   : > { %v6448_v16 = vcombine.low %v4983_v9, %v4997_v33  ;;  %v5062_v5 = vrot.slane %v5061_v35, 4  ;;  %v5103_v47 = vor.u32 %v5102_v43, %v5099_v50  ;;  %v5296_v33 = vld [vmem:[#allocation2 + $0x1d8] sm:$0xf]  ;;  %v5358_v35 = vshll.u32 %v5293_v17, 16  ;;  %v5306_v31 = vld [vmem:[#allocation2 + $0x208] sm:$0xf] }
 0x26c   : > { %v5351_v1 = vrot.slane %v5349_v41, 4  ;;  %v5377_v46 = vshrl.u32 %v5296_v33, 16  ;;  %v5108_v10 = vrot.slane %v5106_v13, 5  ;;  %v5301_v41 = vld [vmem:[#allocation2 + $0x1ec] sm:$0x1]  ;;  %v5450_v13 = vshll.u32 %v5306_v31, 16 }
 0x26d   : > { %6926 = vmatmul.mubr.msk.bf16.gmra.mrb[0].mxu1 %vm843_vm2, %v7306_v4  ;;  %v5043_v4 = vrot.slane %v5041_v11, 4  ;;  %v6449_v11 = vcombine.low %v5011_v22, %v5025_v28  ;;  %v5067_v6 = vsel %vm7705_vm8, %v5062_v5, %v8549_v40  ;;  %v5104_v15 = vrot.slane %v5103_v47, 4 }
 0x26e   : > { %6929 = vmatprep.mubr.msk.bf16.mxu1 %vm843_vm2, %v7307_v21  ;;  %v5033_v21 = vor.u32 %v5032_v60, %v5029_v37  ;;  %v5078_v37 = vshll.u32 %v4881_v25, 16  ;;  %v5088_v60 = vrot.slane %v5086_v57, 5  ;;  %v5344_v28 = vshll.u32 %v5291_v14, 16  ;;  %v5295_v25 = vld [vmem:[#allocation2 + $0x1d4] sm:$0x1] }
 0x26f   : > { %v5047_v58 = vor.u32 %v5046_v20, %v5043_v4  ;;  %v5352_v4 = vshll.u32 %v5292_v56, 16  ;;  %v5363_v20 = vshrl.u32 %v5294_v61, 16  ;;  %v5109_v48 = vsel %vm7705_vm8, %v5104_v15, %v5108_v10  ;;  %v5310_v10 = vld [vmem:[#allocation2 + $0x218] sm:$0xf] }
 0x270   : > { %v5034_v55 = vrot.slane %v5033_v21, 4  ;;  %v5080_v0 = vrot.slane %v5078_v37, 5  ;;  %v5332_v40 = vrot.slane %v5330_v26, 5  ;;  %v5372_v56 = vshll.u32 %v5295_v25, 16 }
 0x271   : > { %v5048_v29 = vrot.slane %v5047_v58, 4  ;;  %v5380_v58 = vshll.u32 %v5296_v33, 16  ;;  %v5354_v2 = vrot.slane %v5352_v4, 5  ;;  %v5304_v33 = vld [vmem:[#allocation2 + $0x200] sm:$0xf] }
 0x272   : > { %v5039_v34 = vsel %vm7705_vm8, %v5034_v55, %v8537_v38  ;;  %v5327_v38 = vor.u32 %v5326_v19, %v5323_v32  ;;  %v5433_v15 = vshrl.u32 %v5304_v33, 16 }
 0x273   : > { %v5382_v39 = vrot.slane %v5380_v58, 5  ;;  %v5355_v50 = vor.u32 %v5354_v2, %v5351_v1  ;;  %v5436_v1 = vshll.u32 %v5304_v33, 16  ;;  %v5318_v33 = vld [vmem:[#allocation2 + $0x238] sm:$0xf] }
 0x274   : > { %v5328_v57 = vrot.slane %v5327_v38, 4  ;;  %v5414_v38 = vshll.u32 %v5301_v41, 16 }
 0x275   : > { %6930 = vmatmul.mubr.msk.bf16.gmra.mrb[4].mxu1 %vm843_vm2, %v7308_v54  ;;  %v4883_v54 = vld [vmem:[#allocation2 + $0x1a4] sm:$0x1] }
 0x276   : > { %6937 = vmatprep.mubr.msk.bf16.mxu1 %vm843_vm2, %v6445_v53  ;;  %v5072_v53 = vshll.u32 %v4880_v27, 16  ;;  %v5053_v27 = vsel %vm7705_vm8, %v5048_v29, %v5052_v8  ;;  %v5092_v21 = vshll.u32 %v4883_v54, 16  ;;  %v5300_v54 = vld [vmem:[#allocation2 + $0x1e8] sm:$0xf]  ;;  %v5333_v32 = vsel %vm7705_vm8, %v5328_v57, %v5332_v40 }
 0x277   : > { %v6450_v9 = vcombine.low %v5039_v34, %v5053_v27  ;;  %v5356_v27 = vrot.slane %v5355_v50, 4  ;;  %v5408_v4 = vshll.u32 %v5300_v54, 16 }
 0x278   : > { %v5074_v62 = vrot.slane %v5072_v53, 5  ;;  %v5298_v53 = vld [vmem:[#allocation2 + $0x1e0] sm:$0xf]  ;;  %v5094_v55 = vrot.slane %v5092_v21, 5  ;;  %v5447_v21 = vshrl.u32 %v5306_v31, 16 }
 0x27a   : > { %v5075_v49 = vor.u32 %v5074_v62, %v5071_v30  ;;  %v5391_v30 = vshrl.u32 %v5298_v53, 16  ;;  %v5379_v62 = vrot.slane %v5377_v46, 4  ;;  %v5410_v46 = vrot.slane %v5408_v4, 5 }
 0x27c   : > { %v5076_v12 = vrot.slane %v5075_v49, 4  ;;  %v5393_v34 = vrot.slane %v5391_v30, 4  ;;  %v5383_v5 = vor.u32 %v5382_v39, %v5379_v62  ;;  %v5386_v49 = vshll.u32 %v5297_v45, 16  ;;  %v5305_v30 = vld [vmem:[#allocation2 + $0x204] sm:$0x1] }
 0x27d   : > { %6938 = vmatmul.mubr.msk.bf16.vlgmr.msra.gmra.mrb[8].mxu1 %vm843_vm2, %v6446_v36  ;;  %v5338_v36 = vshll.u32 %v5290_v51, 16  ;;  %v5307_v62 = vld [vmem:[#allocation2 + $0x20c] sm:$0x1]  ;;  %v5435_v39 = vrot.slane %v5433_v15, 4  ;;  %v5475_v45 = vshrl.u32 %v5310_v10, 16 }
 0x27e   : > { %6954 = vmatpush3.bf16.msra.mxu1 %v8512_v44  ;;  %6941 = vmatprep.mubr.msk.bf16.mxu1 %vm843_vm2, %v6447_v52  ;;  %v5085_v44 = vrot.slane %v5083_v18, 4  ;;  %v5366_v52 = vshll.u32 %v5294_v61, 16  ;;  %v5081_v51 = vsel %vm7705_vm8, %v5076_v12, %v5080_v0  ;;  %v5394_v18 = vshll.u32 %v5298_v53, 16 }
 0x27f   : > { %6955 = vmatprep.subr.bf16.mxu1 %v7310_v23  ;;  %v5340_v3 = vrot.slane %v5338_v36, 5  ;;  %v5346_v36 = vrot.slane %v5344_v28, 5  ;;  %v5360_v61 = vrot.slane %v5358_v35, 5  ;;  %v5374_v0 = vrot.slane %v5372_v56, 5 }
 0x280   : > { %v5089_v59 = vor.u32 %v5088_v60, %v5085_v44  ;;  %v5368_v22 = vrot.slane %v5366_v52, 5  ;;  %v5396_v37 = vrot.slane %v5394_v18, 5  ;;  %v5302_v44 = vld [vmem:[#allocation2 + $0x1f0] sm:$0xf]  ;;  %v5388_v12 = vrot.slane %v5386_v49, 5 }
 0x281   : > { %v5341_v7 = vor.u32 %v5340_v3, %v5337_v24  ;;  %v5299_v24 = vld [vmem:[#allocation2 + $0x1e4] sm:$0x1]  ;;  %v5405_v3 = vshrl.u32 %v5300_v54, 16  ;;  %v5422_v52 = vshll.u32 %v5302_v44, 16  ;;  %v5361_v17 = vsel %vm7705_vm8, %v5356_v27, %v5360_v61  ;;  %v5314_v18 = vld [vmem:[#allocation2 + $0x228] sm:$0xf] }
 0x282   : > { %6956 = vmatpush3.bf16.msra.mxu1 %v7310_v23  ;;  %v5090_v23 = vrot.slane %v5089_v59, 4  ;;  %v5397_v59 = vor.u32 %v5396_v37, %v5393_v34  ;;  %v5400_v63 = vshll.u32 %v5299_v24, 16  ;;  %v8585_v35 = vrot.slane %v5414_v38, 5  ;;  %v5316_v38 = vld [vmem:[#allocation2 + $0x230] sm:$0xf] }
 0x283   : > { %v5342_v29 = vrot.slane %v5341_v7, 4  ;;  %v5407_v53 = vrot.slane %v5405_v3, 4  ;;  %v5424_v7 = vrot.slane %v5422_v52, 5  ;;  %v5503_v56 = vshrl.u32 %v5314_v18, 16 }
 0x284   : > { %v5095_v8 = vsel %vm7705_vm8, %v5090_v23, %v5094_v55  ;;  %v5398_v2 = vrot.slane %v5397_v59, 4  ;;  %v5452_v23 = vrot.slane %v5450_v13, 5  ;;  %v5308_v55 = vld [vmem:[#allocation2 + $0x210] sm:$0xf]  ;;  %v5402_v28 = vrot.slane %v5400_v63, 5 }
 0x285   : > { %6942 = vmatmul.mubr.msk.bf16.gmra.mrb[12].mxu1 %vm843_vm2, %v6448_v16  ;;  %v5365_v16 = vrot.slane %v5363_v20, 4  ;;  %v6452_v60 = vcombine.low %v5095_v8, %v5109_v48  ;;  %v5347_v19 = vsel %vm7705_vm8, %v5342_v29, %v5346_v36  ;;  %v5419_v20 = vshrl.u32 %v5302_v44, 16  ;;  %v5312_v8 = vld [vmem:[#allocation2 + $0x220] sm:$0xf] }
 0x286   : > { %6945 = vmatprep.mubr.msk.bf16.mxu1 %vm843_vm2, %v6449_v11  ;;  %v6451_v11 = vcombine.low %v5067_v6, %v5081_v51  ;;  %v5384_v6 = vrot.slane %v5383_v5, 4  ;;  %v5438_v48 = vrot.slane %v5436_v1, 5  ;;  %v5411_v50 = vor.u32 %v5410_v46, %v5407_v53  ;;  %v5315_v46 = vld [vmem:[#allocation2 + $0x22c] sm:$0x1] }
 0x287   : > { %v5369_v43 = vor.u32 %v5368_v22, %v5365_v16  ;;  %v5421_v58 = vrot.slane %v5419_v20, 4  ;;  %v5303_v16 = vld [vmem:[#allocation2 + $0x1f4] sm:$0x1]  ;;  %v5449_v22 = vrot.slane %v5447_v21, 4  ;;  %v5403_v54 = vsel %vm7705_vm8, %v5398_v2, %v5402_v28  ;;  %v5311_v21 = vld [vmem:[#allocation2 + $0x21c] sm:$0x1] }
 0x288   : > { %v5389_v25 = vsel %vm7705_vm8, %v5384_v6, %v5388_v12  ;;  %v5506_v34 = vshll.u32 %v5314_v18, 16  ;;  %v5428_v37 = vshll.u32 %v5303_v16, 16  ;;  %v5442_v44 = vshll.u32 %v5305_v30, 16  ;;  %v5313_v28 = vld [vmem:[#allocation2 + $0x224] sm:$0x1] }
 0x289   : > { %v5370_v47 = vrot.slane %v5369_v43, 4  ;;  %v5425_v43 = vor.u32 %v5424_v7, %v5421_v58  ;;  %v5453_v36 = vor.u32 %v5452_v23, %v5449_v22  ;;  %v5464_v61 = vshll.u32 %v5308_v55, 16 }
 0x28a   : > { %v5439_v5 = vor.u32 %v5438_v48, %v5435_v39  ;;  %v5456_v49 = vshll.u32 %v5307_v62, 16  ;;  %v5489_v31 = vshrl.u32 %v5312_v8, 16  ;;  %v5477_v24 = vrot.slane %v5475_v45, 4 }
 0x28b   : > { %v5375_v14 = vsel %vm7705_vm8, %v5370_v47, %v5374_v0  ;;  %v5426_v27 = vrot.slane %v5425_v43, 4  ;;  %v5309_v47 = vld [vmem:[#allocation2 + $0x214] sm:$0x1]  ;;  %v5412_v3 = vrot.slane %v5411_v50, 4  ;;  %v5454_v4 = vrot.slane %v5453_v36, 4 }
 0x28c   : > { %v6468_v51 = vcombine.low %v5361_v17, %v5375_v14  ;;  %v5505_v20 = vrot.slane %v5503_v56, 4  ;;  %v5508_v52 = vrot.slane %v5506_v34, 5  ;;  %v5430_v0 = vrot.slane %v5428_v37, 5 }
 0x28d   : > { %6946 = vmatmul.mubr.msk.bf16.gmra.mrb[0].mxu1 %vm843_vm2, %v6450_v9  ;;  %v6467_v9 = vcombine.low %v5333_v32, %v5347_v19  ;;  %v5492_v32 = vshll.u32 %v5312_v8, 16  ;;  %v6469_v19 = vcombine.low %v5389_v25, %v5403_v54  ;;  %v5444_v59 = vrot.slane %v5442_v44, 5 }
 0x28e   : > { %6949 = vmatprep.mubr.msk.bf16.mxu1 %vm843_vm2, %v6451_v11  ;;  %v5478_v11 = vshll.u32 %v5310_v10, 16  ;;  %v5440_v6 = vrot.slane %v5439_v5, 4  ;;  %v5458_v12 = vrot.slane %v5456_v49, 5  ;;  %v5491_v63 = vrot.slane %v5489_v31, 4 }
 0x28f   : > { %v5494_v14 = vrot.slane %v5492_v32, 5  ;;  %v5431_v1 = vsel %vm7705_vm8, %v5426_v27, %v5430_v0  ;;  %v5531_v58 = vshrl.u32 %v5318_v33, 16  ;;  %v5534_v7 = vshll.u32 %v5318_v33, 16 }
 0x290   : > { %v5480_v41 = vrot.slane %v5478_v11, 5  ;;  %v5417_v2 = vsel %vm7705_vm8, %v5412_v3, %v8585_v35  ;;  %v5459_v16 = vsel %vm7705_vm8, %v5454_v4, %v5458_v12  ;;  %v5470_v22 = vshll.u32 %v5309_v47, 16 }
 0x291   : > { %v5509_v23 = vor.u32 %v5508_v52, %v5505_v20  ;;  %v5517_v30 = vshrl.u32 %v5316_v38, 16  ;;  %v5520_v18 = vshll.u32 %v5316_v38, 16  ;;  %v6470_v62 = vcombine.low %v5417_v2, %v5431_v1  ;;  %v7313_v2 = vld [vmem:[%s8793_s7] sm:$0xff]  }
 0x292   : > { %v5481_v53 = vor.u32 %v5480_v41, %v5477_v24  ;;  %v5445_v39 = vsel %vm7705_vm8, %v5440_v6, %v5444_v59  ;;  %v5495_v48 = vor.u32 %v5494_v14, %v5491_v63  ;;  %v5512_v35 = vshll.u32 %v5315_v46, 16  ;;  %v5317_v24 = vld [vmem:[#allocation2 + $0x234] sm:$0x1] }
 0x293   : > { %v6471_v50 = vcombine.low %v5445_v39, %v5459_v16  ;;  %v5533_v45 = vrot.slane %v5531_v58, 4  ;;  %v5536_v11 = vrot.slane %v5534_v7, 5  ;;  %v5498_v8 = vshll.u32 %v5313_v28, 16  ;;  %v7312_v7 = vld [vmem:[%s8791_s5 + $0x8] sm:$0xff]  }
 0x294   : > { %v5482_v43 = vrot.slane %v5481_v53, 4  ;;  %v5510_v54 = vrot.slane %v5509_v23, 4  ;;  %v5519_v34 = vrot.slane %v5517_v30, 4  ;;  %v5522_v37 = vrot.slane %v5520_v18, 5  ;;  %6975 = vmatprep.subr.bf16.mxu0 %v7312_v7 }
 0x295   : > { %6950 = vmatmul.mubr.msk.bf16.gmra.mrb[4].mxu1 %vm843_vm2, %v6452_v60  ;;  %v5461_v60 = vshrl.u32 %v5308_v55, 16  ;;  %v5496_v44 = vrot.slane %v5495_v48, 4  ;;  %v5472_v49 = vrot.slane %v5470_v22, 5  ;;  %v5537_v32 = vor.u32 %v5536_v11, %v5533_v45  ;;  %6976 = vmatpush3.bf16.msra.mxu0 %v7312_v7 }
 0x296   : > { %6957 = vmatprep.mubr.msk.bf16.mxu1 %vm843_vm2, %v6467_v9  ;;  %v5466_v9 = vrot.slane %v5464_v61, 5  ;;  %v5319_v61 = vld [vmem:[#allocation2 + $0x23c] sm:$0x1]  ;;  %v5500_v27 = vrot.slane %v5498_v8, 5  ;;  %v5523_v4 = vor.u32 %v5522_v37, %v5519_v34  ;;  %6993 = vmatprep.subr.bf16.mxu0 %v7313_v2 }
 0x297   : > { %v8579_v26 = vpop.f32.mrb[72].mxu0  ;;  %v5463_v13 = vrot.slane %v5461_v60, 4  ;;  %v5514_v60 = vrot.slane %v5512_v35, 5  ;;  %v5540_v20 = vshll.u32 %v5319_v61, 16 }
 0x298   : > { %v8581_v57 = vpop.f32.mrb[73].mxu0  ;;  %v5501_v0 = vsel %vm7705_vm8, %v5496_v44, %v5500_v27 }
 0x299   : > { %v8587_v29 = vpop.f32.mrb[74].mxu0  ;;  %v5467_v10 = vor.u32 %v5466_v9, %v5463_v13  ;;  %v5515_v47 = vsel %vm7705_vm8, %v5510_v54, %v5514_v60  ;;  %v5538_v13 = vrot.slane %v5537_v32, 4  ;;  %v5524_v9 = vrot.slane %v5523_v4, 4 }
 0x29a   : > { %v8589_v40 = vpop.f32.mrb[75].mxu0  ;;  %v6473_v59 = vcombine.low %v5501_v0, %v5515_v47  ;;  %v5542_v6 = vrot.slane %v5540_v20, 5 }
 0x29b   : > { %v5468_v36 = vrot.slane %v5467_v10, 4 }
 0x29c   : > { %v5543_v14 = vsel %vm7705_vm8, %v5538_v13, %v5542_v6 }
 0x29d   : > { %6958 = vmatmul.mubr.msk.bf16.vlgmr.msra.gmra.mrb[8].mxu1 %vm843_vm2, %v6468_v51  ;;  %v5484_v51 = vshll.u32 %v5311_v21, 16  ;;  %v5473_v3 = vsel %vm7705_vm8, %v5468_v36, %v5472_v49  ;;  %v5526_v21 = vshll.u32 %v5317_v24, 16  ;;  %v7314_v49 = vld [vmem:[%s8793_s7 + $0x8] sm:$0xff]  }
 0x29e   : > { %6961 = vmatprep.mubr.msk.bf16.mxu1 %vm843_vm2, %v6469_v19 }
 0x29f   : > { %v5486_v56 = vrot.slane %v5484_v51, 5  ;;  %v5528_v63 = vrot.slane %v5526_v21, 5 }
 0x2a1   : > { %v5487_v31 = vsel %vm7705_vm8, %v5482_v43, %v5486_v56  ;;  %v5529_v53 = vsel %vm7705_vm8, %v5524_v9, %v5528_v63 }
 0x2a2   : > { %v8595_v15 = vpop.f32.mrb[76].mxu0  ;;  %v6472_v33 = vcombine.low %v5473_v3, %v5487_v31  ;;  %v6474_v58 = vcombine.low %v5529_v53, %v5543_v14 }
 0x2a3   : > { %v8599_v17 = vpop.f32.mrb[77].mxu0 }
 0x2a4   : > { %v8606_v55 = vpop.f32.mrb[78].mxu0 }
 0x2a5   : > { %v8608_v25 = vpop.f32.mrb[79].mxu0  ;;  %6962 = vmatmul.mubr.msk.bf16.gmra.mrb[12].mxu1 %vm843_vm2, %v6470_v62 }
 0x2a6   : > { %6965 = vmatprep.mubr.msk.bf16.mxu1 %vm843_vm2, %v6471_v50 }
 0x2aa   : > { %v6819_v5 = vpop.f32.mrb[64].mxu0 }
 0x2ab   : > { %v3069_v19 = vpop.f32.mrb[65].mxu0 }
 0x2ac   : > { %v6820_v41 = vpop.f32.mrb[66].mxu0 }
 0x2ad   : > { %v3072_v52 = vpop.f32.mrb[67].mxu0  ;;  %6966 = vmatmul.mubr.msk.bf16.gmra.mrb[0].mxu1 %vm843_vm2, %v6472_v33 }
 0x2ae   : > { %6969 = vmatprep.mubr.msk.bf16.mxu1 %vm843_vm2, %v6473_v59 }
 0x2b2   : > { %v6823_v12 = vpop.f32.mrb[68].mxu0 }
 0x2b3   : > { %v3085_v38 = vpop.f32.mrb[69].mxu0 }
 0x2b4   : > { %v6824_v1 = vpop.f32.mrb[70].mxu0 }
 0x2b5   : > { %v3088_v46 = vpop.f32.mrb[71].mxu0  ;;  %6970 = vmatmul.mubr.msk.bf16.gmra.mrb[4].mxu1 %vm843_vm2, %v6474_v58 }
 0x370   : > { %v6959_v16 = vpop.f32.mrb[8].mxu1 }
 0x371   : > { %v7017_v22 = vadd.f32 %v6959_v16, %v6819_v5  ;;  %v5643_v23 = vpop.f32.mrb[9].mxu1 }
 0x372   : > { %v7018_v10 = vadd.f32 %v5643_v23, %v3069_v19  ;;  %v6960_v51 = vpop.f32.mrb[10].mxu1 }
 0x373   : > { %v5730_v28 = vadd.f32 %v7017_v22, %v8638_v42  ;;  %v7019_v30 = vadd.f32 %v6960_v51, %v6820_v41  ;;  %v5646_v18 = vpop.f32.mrb[11].mxu1 }
 0x374   : > { %v5728_v62 = vadd.f32 %v7018_v10, %v8638_v42  ;;  %v7020_v39 = vadd.f32 %v5646_v18, %v3072_v52 }
 0x375   : > { %v5731_v48 = vadd.f32 %v7019_v30, %v8638_v42  ;;  %v5746_v50 = vmax.f32 %v5730_v28, 0.0 }
 0x376   : > { %v5729_v35 = vadd.f32 %v7020_v39, %v8638_v42  ;;  %v5744_v45 = vmax.f32 %v5728_v62, 0.0 }
 0x377   : > { %v5747_v43 = vmax.f32 %v5731_v48, 0.0 }
 0x378   : > { %v5745_v11 = vmax.f32 %v5729_v35, 0.0  ;;  %v6963_v8 = vpop.f32.mrb[12].mxu1  ;;  %v7319_v35 = vld [vmem:[%s7516_s29 + $0x8] sm:$0xff]  }
 0x379   : > { %v5761_v54 = vpack.c.bf16 %v5747_v43, %v5746_v50  ;;  %v7021_v36 = vadd.f32 %v6963_v8, %v6823_v12  ;;  %v5659_v56 = vpop.f32.mrb[13].mxu1  ;;  %v7321_v50 = vld [vmem:[%s7516_s29 + $0x18] sm:$0xff]   ;;  %v7322_v43 = vld [vmem:[%s7516_s29 + $0x80] sm:$0xff]  }
 0x37a   : > { %v5760_v34 = vpack.c.bf16 %v5745_v11, %v5744_v45  ;;  %v7022_v37 = vadd.f32 %v5659_v56, %v3085_v38  ;;  %v6964_v44 = vpop.f32.mrb[14].mxu1  ;;  %v7323_v45 = vld [vmem:[%s7516_s29 + $0x88] sm:$0xff]   ;;  %v7324_v11 = vld [vmem:[%s7516_s29 + $0x90] sm:$0xff]   ;;  %v7325_v8 = vld [vmem:[%s7516_s29 + $0x98] sm:$0xff]  }
 0x37b   : > { %v5734_v60 = vadd.f32 %v7021_v36, %v8638_v42  ;;  %v7023_v61 = vadd.f32 %v6964_v44, %v6824_v1  ;;  %v5662_v5 = vpop.f32.mrb[15].mxu1  ;;  %v6497_v36 = vld [vmem:[%s8794_s8] ss:$0 sm:$0xff] }
 0x37c   : > { %v5732_v31 = vadd.f32 %v7022_v37, %v8638_v42  ;;  %v7024_v32 = vadd.f32 %v5662_v5, %v3088_v46  ;;  %6977 = vmatprep.mubr.msk.bf16.mxu0 %vm843_vm2, %v5760_v34 }
 0x37d   : > { %v5735_v19 = vadd.f32 %v7023_v61, %v8638_v42  ;;  %6978 = vmatmul.mubr.msk.bf16.vlgmr.msra.gmra.mrb[80].mxu0 %vm843_vm2, %v5761_v54  ;;  %v5750_v47 = vmax.f32 %v5734_v60, 0.0  ;;  %v6486_v54 = vld [vmem:[%s8792_s6] ss:$0 sm:$0xff] }
 0x37e   : > { %v5733_v27 = vadd.f32 %v7024_v32, %v8638_v42  ;;  %6994 = vmatpush3.bf16.msra.mxu0 %v7313_v2  ;;  %v5748_v41 = vmax.f32 %v5732_v31, 0.0  ;;  %v8698_v56 = vadd.f32 %v6497_v36, %v6486_v54 }
 0x37f   : > { %v5751_v24 = vmax.f32 %v5735_v19, 0.0  ;;  %6995 = vmatprep.subr.bf16.mxu0 %v7314_v49 }
 0x380   : > { %v5749_v3 = vmax.f32 %v5733_v27, 0.0  ;;  %v6967_v4 = vpop.f32.mrb[0].mxu1 }
 0x381   : > { %v5763_v20 = vpack.c.bf16 %v5751_v24, %v5750_v47  ;;  %v7025_v52 = vadd.f32 %v6967_v4, %v8579_v26  ;;  %v5675_v33 = vpop.f32.mrb[1].mxu1 }
 0x382   : > { %v5762_v0 = vpack.c.bf16 %v5749_v3, %v5748_v41  ;;  %v7026_v59 = vadd.f32 %v5675_v33, %v8581_v57  ;;  %v6968_v21 = vpop.f32.mrb[2].mxu1  ;;  %6996 = vmatpush3.bf16.msra.mxu0 %v7314_v49 }
 0x383   : > { %v5738_v13 = vadd.f32 %v7025_v52, %v8638_v42  ;;  %v7027_v9 = vadd.f32 %v6968_v21, %v8587_v29  ;;  %v5678_v6 = vpop.f32.mrb[3].mxu1 }
 0x384   : > { %v5736_v12 = vadd.f32 %v7026_v59, %v8638_v42  ;;  %v7028_v63 = vadd.f32 %v5678_v6, %v8589_v40  ;;  %6981 = vmatprep.mubr.msk.bf16.mxu0 %vm843_vm2, %v5762_v0 }
 0x385   : > { %v5739_v14 = vadd.f32 %v7027_v9, %v8638_v42  ;;  %6982 = vmatmul.mubr.msk.bf16.gmra.mrb[84].mxu0 %vm843_vm2, %v5763_v20  ;;  %v5754_v57 = vmax.f32 %v5738_v13, 0.0 }
 0x386   : > { %v5737_v26 = vadd.f32 %v7028_v63, %v8638_v42  ;;  %v5752_v1 = vmax.f32 %v5736_v12, 0.0 }
 0x387   : > { %v5755_v38 = vmax.f32 %v5739_v14, 0.0 }
 0x388   : > { %v5753_v53 = vmax.f32 %v5737_v26, 0.0  ;;  %v6971_v46 = vpop.f32.mrb[4].mxu1 }
 0x389   : > { %v5765_v58 = vpack.c.bf16 %v5755_v38, %v5754_v57  ;;  %v7029_v29 = vadd.f32 %v6971_v46, %v8595_v15  ;;  %v5691_v7 = vpop.f32.mrb[5].mxu1 }
 0x38a   : > { %v5764_v2 = vpack.c.bf16 %v5753_v53, %v5752_v1  ;;  %v7030_v40 = vadd.f32 %v5691_v7, %v8599_v17  ;;  %v6972_v16 = vpop.f32.mrb[6].mxu1 }
 0x38b   : > { %v5742_v22 = vadd.f32 %v7029_v29, %v8638_v42  ;;  %v7031_v23 = vadd.f32 %v6972_v16, %v8606_v55  ;;  %v5694_v10 = vpop.f32.mrb[7].mxu1 }
 0x38c   : > { %v5740_v51 = vadd.f32 %v7030_v40, %v8638_v42  ;;  %v7032_v28 = vadd.f32 %v5694_v10, %v8608_v25  ;;  %6985 = vmatprep.mubr.msk.bf16.mxu0 %vm843_vm2, %v5764_v2  ;;  %v7318_v25 = vld [vmem:[%s7516_s29] sm:$0xff]  }
 0x38d   : > { %v5743_v15 = vadd.f32 %v7031_v23, %v8638_v42  ;;  %6986 = vmatmul.mubr.msk.bf16.gmra.mrb[88].mxu0 %vm843_vm2, %v5765_v58  ;;  %v5758_v30 = vmax.f32 %v5742_v22, 0.0 }
 0x38e   : > { %v5741_v17 = vadd.f32 %v7032_v28, %v8638_v42  ;;  %v5756_v18 = vmax.f32 %v5740_v51, 0.0  ;;  %v7320_v42 = vld [vmem:[%s7516_s29 + $0x10] sm:$0xff]   ;;  %s8704_s29 = scalar_lea.vmem [#allocation3], %s6156_s22 }
 0x38f   : > { %v5759_v55 = vmax.f32 %v5743_v15, 0.0  ;;  %s6090_s24 = sshll.u32 %s8704_s29, 4  ;;  %s8738_s24 = int_to_ptr.vmem [resolvable:$true] %s6090_s24 }
 0x390   : > { %v5757_v62 = vmax.f32 %v5741_v17, 0.0  ;;  %s7326_s28 = scalar_lea.vmem %s8738_s24, 2048  ;;  %p7333_p0 = scmp.lt.s32.totalorder %s8738_s24, %s7331_s16 }
 0x391   : > { %v5767_v39 = vpack.c.bf16 %v5759_v55, %v5758_v30  ;;  %p7327_p11 = scmp.ne.s32.totalorder %s8738_s24, %s7326_s28  ;;  %p7334_p1 = scmp.lt.s32.totalorder %s7332_s17, %s7326_s28 }
 0x392   : > { %v5766_v48 = vpack.c.bf16 %v5757_v62, %v5756_v18 }
 0x393   : > { %p7328_p12 = pnand %p7327_p11, %p7482_p5  ;;  %p7335_p2 = por %p7334_p1, %p7333_p0 }
 0x394   : > { %6989 = vmatprep.mubr.msk.bf16.mxu0 %vm843_vm2, %v5766_v48 }
 0x395   : > { %6990 = vmatmul.mubr.msk.bf16.gmra.mrb[92].mxu0 %vm843_vm2, %v5767_v39  ;;  %p7329_p13 = pneg %p7328_p12 }
 0x396   : > { %6997 = vmatprep.mubr.msk.bf16.mxu0 %vm843_vm2, %v7318_v25 }
 0x397   : > { %p7336_p3 = pnand %p7335_p2, %p7329_p13 }
 0x39d   : > { %6998 = vmatmul.mubr.msk.bf16.vlgmr.msra.gmra.mrb[80].mxu0 %vm843_vm2, %v7319_v35 }
 0x39e   : > { %7001 = vmatprep.mubr.msk.bf16.mxu0 %vm843_vm2, %v7320_v42 }
 0x3a5   : > { %7002 = vmatmul.mubr.msk.bf16.gmra.mrb[84].mxu0 %vm843_vm2, %v7321_v50 }
 0x3a6   : > { %7005 = vmatprep.mubr.msk.bf16.mxu0 %vm843_vm2, %v7322_v43 }
 0x3ad   : > { %7006 = vmatmul.mubr.msk.bf16.gmra.mrb[88].mxu0 %vm843_vm2, %v7323_v45 }
 0x3ae   : > { %7009 = vmatprep.mubr.msk.bf16.mxu0 %vm843_vm2, %v7324_v11 }
 0x3b5   : > { %7010 = vmatmul.mubr.msk.bf16.gmra.mrb[92].mxu0 %vm843_vm2, %v7325_v8 }
 0x470   : > { %v6999_v34 = vpop.f32.mrb[80].mxu0 }
 0x471   : > { %v7033_v37 = vadd.f32 %v6999_v34, %v6486_v54  ;;  %v5964_v44 = vpop.f32.mrb[81].mxu0 }
 0x472   : > { %v7035_v60 = vadd.f32 %v6486_v54, %v5964_v44  ;;  %v7000_v61 = vpop.f32.mrb[82].mxu0 }
 0x473   : > { %v7034_v5 = vadd.f32 %v7033_v37, %v6497_v36  ;;  %v7038_v49 = vadd.f32 %v8698_v56, %v7000_v61  ;;  %v5967_v31 = vpop.f32.mrb[83].mxu0 }
 0x474   : > { %v7036_v32 = vadd.f32 %v7035_v60, %v6497_v36  ;;  %v7040_v19 = vadd.f32 %v8698_v56, %v5967_v31 }
 0x475   : > { %v6045_v27 = vmax.f32 %v7034_v5, 0.0  ;;  %v6046_v47 = vmax.f32 %v7038_v49, 0.0 }
 0x476   : > { %v6043_v24 = vmax.f32 %v7036_v32, 0.0  ;;  %v6044_v41 = vmax.f32 %v7040_v19, 0.0 }
 0x477   : > { %6061 = vst [vmem:[%s8704_s29 + $0x10] sm:$0xff] %v6045_v27  ;;  %6062 = vst [vmem:[%s8704_s29 + $0x18] sm:$0xff] %v6046_v47 }
 0x478   : > { %6059 = vst [vmem:[%s8704_s29] sm:$0xff] %v6043_v24  ;;  %6060 = vst [vmem:[%s8704_s29 + $0x8] sm:$0xff] %v6044_v41  ;;  %v7003_v3 = vpop.f32.mrb[84].mxu0 }
 0x479   : > { %v7042_v4 = vadd.f32 %v8698_v56, %v7003_v3  ;;  %v5980_v20 = vpop.f32.mrb[85].mxu0 }
 0x47a   : > { %v7044_v52 = vadd.f32 %v8698_v56, %v5980_v20  ;;  %v7004_v33 = vpop.f32.mrb[86].mxu0 }
 0x47b   : > { %v6049_v0 = vmax.f32 %v7042_v4, 0.0  ;;  %v7046_v59 = vadd.f32 %v8698_v56, %v7004_v33  ;;  %v5983_v21 = vpop.f32.mrb[87].mxu0 }
 0x47c   : > { %v6047_v13 = vmax.f32 %v7044_v52, 0.0  ;;  %v7048_v9 = vadd.f32 %v8698_v56, %v5983_v21 }
 0x47d   : > { %6065 = vst [vmem:[%s8704_s29 + $0x30] sm:$0xff] %v6049_v0  ;;  %v6050_v6 = vmax.f32 %v7046_v59, 0.0 }
 0x47e   : > { %6063 = vst [vmem:[%s8704_s29 + $0x20] sm:$0xff] %v6047_v13  ;;  %v6048_v12 = vmax.f32 %v7048_v9, 0.0 }
 0x47f   : > { %6066 = vst [vmem:[%s8704_s29 + $0x38] sm:$0xff] %v6050_v6 }
 0x480   : > { %6064 = vst [vmem:[%s8704_s29 + $0x28] sm:$0xff] %v6048_v12  ;;  %v7007_v63 = vpop.f32.mrb[88].mxu0 }
 0x481   : > { %v7050_v14 = vadd.f32 %v8698_v56, %v7007_v63  ;;  %v5996_v26 = vpop.f32.mrb[89].mxu0 }
 0x482   : > { %v7052_v57 = vadd.f32 %v8698_v56, %v5996_v26  ;;  %v7008_v38 = vpop.f32.mrb[90].mxu0 }
 0x483   : > { %v6053_v1 = vmax.f32 %v7050_v14, 0.0  ;;  %v7054_v53 = vadd.f32 %v8698_v56, %v7008_v38  ;;  %v5999_v46 = vpop.f32.mrb[91].mxu0 }
 0x484   : > { %v6051_v58 = vmax.f32 %v7052_v57, 0.0  ;;  %v7056_v29 = vadd.f32 %v8698_v56, %v5999_v46 }
 0x485   : > { %6069 = vst [vmem:[%s8704_s29 + $0x50] sm:$0xff] %v6053_v1  ;;  %v6054_v7 = vmax.f32 %v7054_v53, 0.0 }
 0x486   : > { %6067 = vst [vmem:[%s8704_s29 + $0x40] sm:$0xff] %v6051_v58  ;;  %v6052_v2 = vmax.f32 %v7056_v29, 0.0 }
 0x487   : > { %6070 = vst [vmem:[%s8704_s29 + $0x58] sm:$0xff] %v6054_v7 }
 0x488   : > { %6068 = vst [vmem:[%s8704_s29 + $0x48] sm:$0xff] %v6052_v2  ;;  %v7011_v40 = vpop.f32.mrb[92].mxu0 }
 0x489   : > { %v7058_v16 = vadd.f32 %v8698_v56, %v7011_v40  ;;  %v6012_v22 = vpop.f32.mrb[93].mxu0 }
 0x48a   : > { %v7060_v23 = vadd.f32 %v8698_v56, %v6012_v22  ;;  %v7012_v10 = vpop.f32.mrb[94].mxu0 }
 0x48b   : > { %v6057_v51 = vmax.f32 %v7058_v16, 0.0  ;;  %v7062_v28 = vadd.f32 %v8698_v56, %v7012_v10  ;;  %v6015_v15 = vpop.f32.mrb[95].mxu0 }
 0x48c   : > { %v6055_v17 = vmax.f32 %v7060_v23, 0.0  ;;  %v7064_v30 = vadd.f32 %v8698_v56, %v6015_v15 }
 0x48d   : > { %6073 = vst [vmem:[%s8704_s29 + $0x70] sm:$0xff] %v6057_v51  ;;  %v6058_v55 = vmax.f32 %v7062_v28, 0.0 }
 0x48e   : > { %6071 = vst [vmem:[%s8704_s29 + $0x60] sm:$0xff] %v6055_v17  ;;  %v6056_v18 = vmax.f32 %v7064_v30, 0.0 }
 0x48f   : > { %6074 = vst [vmem:[%s8704_s29 + $0x78] sm:$0xff] %v6058_v55 }
 0x490   : > { %6072 = vst [vmem:[%s8704_s29 + $0x68] sm:$0xff] %v6056_v18 }
 0x491   : > { %7339 = shalt.err (!%p7336_p3)
}
 0x492   : > { %s7340_s21 = scalar_lea.hbm %s8736_s27, 2048  ;;  %s7344_s23 = scalar_lea.hbm %s8795_s9, 4096 }
 0x493   : > { %p7341_p4 = scmp.ne.s32.totalorder %s8736_s27, %s7340_s21  ;;  %p7345_p9 = scmp.lt.u32.totalorder %s8736_s27, %s8795_s9 }
 0x494   : > { %p7346_p10 = scmp.lt.u32.totalorder %s7344_s23, %s7340_s21  ;;  %p7348_p12 = scmp.lt.u32.totalorder %s7340_s21, %s8736_s27 }
 0x495   : > { %p7342_p7 = pnand %p7341_p4, %p7482_p5 }
 0x496   : > { %p7347_p11 = por %p7346_p10, %p7345_p9 }
 0x497   : > { %p7343_p8 = pneg %p7342_p7 }
 0x498   : > { %p7349_p13 = por %p7348_p12, %p7347_p11 }
 0x49a   : > { %p7350_p0 = pnand %p7349_p13, %p7343_p8 }
 0x49c   : > { %7353 = shalt.err (!%p7350_p0)
}
 0x49d   : > { %s7392_s28 = smov 128   ;;  %s7393_s14 = smov 8  }
 0x49e   : > { %7193 = dma.vmem_to_hbm [thread:$0]  (%p7482_p5), %s8738_s24, 2048, %s8736_s27, %s8745_s13, %s7392_s28, %s7392_s28, %s7393_s14  }
 0x49f PF: > { %p7199_p1 = scmp.ge.s32.totalorder %s7388_s12, 2  ;;  %s6105_s16 = sand.u32 1, %s7376_s30  }
 0x4a0   : > { %s6106_s17 = scalar_lea.sflag [#allocation4], %s6105_s16 }
 0x4a1   : > { %p7196_p2 = pnand %p7199_p1, %p7486_p6 }
 0x4a3   : > { %7371 = dma.done.wait (!%p7196_p2), %s6106_s17, 2048  }
 0x4a4   : > { %7373 = vsyncadd (!%p7196_p2), %s6106_s17, 4294965248  ;;  %p19_p3 = scmp.ge.s32.totalorder %s7469_s15, 4   ;;  %s8804_s30 = smov %s7380_s10 }
 0x4a5   : > { %s8805_s10 = smov %s7384_s11  ;;  %s8806_s11 = smov %s7480_s18 }
 0x4a6   : > { %s8807_s12 = smov %s7469_s15  ;;  %21 = sbr.rel (!%p19_p3) target bundleno = 3 (0x3), region = 105 }
 0x4ad   :  { %6111 = vsyncpa [#allocation4], 1 }
 0x4ae   :  { %6113 = vsyncpa [#allocation4 + $0x1], 1 }

</bundles_post_ra>
